<compile_context>
chip_gen: v7x
topology: tpu7x:2x2x1
jax: 0.10.0
libtpu: 0.0.40
codegen_flags: <defaults>
</compile_context>

<pallas_src>
import jax
import jax.numpy as jnp
from jax import lax
from jax.experimental import pallas as pl
from jax.experimental.pallas import tpu as pltpu

# Model dimensions implied by tete.__init__ / forward
CIN = 3          # Conv1d in_channels
KTAP = 3         # Conv1d kernel_size
KC = 16          # 3 taps * 3 channels = 9, zero-padded to 16 (zeros don't change math)
COUT = 50        # Conv1d out_channels
L = 50           # sequence length (MUST be 50: Linear(50, 768) acts on the last dim)
DOUT = 768       # Linear out_features (lane-dense: 768 = 6*128)
EPS = 1e-12      # F.normalize default eps (denominator clamp)


def tete_kernel(xw_ref, wc_ref, bconv_ref, wlin_ref, blin_ref, out_ref):
    bn = out_ref.shape[0] // COUT

    # ---- Stage 1: Conv1d fused into ONE block-level matmul --------------------------
    # xw_ref is (bn*L, KC): each row is the 3-tap / 3-channel window of one (b, l).
    y = jnp.dot(xw_ref[...], wc_ref[...], preferred_element_type=jnp.float32)
    y = y + bconv_ref[...]                                             # (bn*L, COUT)
    # F.normalize over conv channels (last axis here): x / max(||x||, eps), then ReLU.
    s1 = jnp.sum(y * y, axis=-1, keepdims=True)
    y = y * jnp.where(s1 > EPS * EPS, lax.rsqrt(s1), 1.0 / EPS)
    y = jnp.maximum(y, 0.0)

    # ---- Layout: (bn*L, COUT) -> (bn*COUT, L) so the Linear contracts L -------------
    # Small arrays (bn*50*50 f32): relayout/transpose cost is negligible vs writeback.
    y = y.reshape(bn, L, COUT)
    y = jnp.transpose(y, (0, 2, 1))                                    # (bn, COUT, L)
    y = y.reshape(bn * COUT, L)

    # ---- Stage 2: Linear(50, 768) as ONE block-level matmul (M = bn*COUT) -----------
    # y is cast to wlin's dtype (f32 by default; bf16 if bf16_stage2=True in wrapper).
    h = jnp.dot(y.astype(wlin_ref.dtype), wlin_ref[...],
                preferred_element_type=jnp.float32) + blin_ref[...]    # (bn*COUT, DOUT)

    # ---- F.normalize over the COUT rows of each element (PyTorch dim=1) -------------
    # Group-sum (bn groups of COUT consecutive rows) and group-broadcast are done with
    # block-diagonal 0/1 matrices on the MXU, so h stays flat and the final store is
    # a dense (bn*COUT, 768) slab.
    r = lax.broadcasted_iota(jnp.int32, (bn, bn * COUT), 1)
    g = lax.broadcasted_iota(jnp.int32, (bn, bn * COUT), 0)
    smat = jnp.where((r >= g * COUT) & (r < (g + 1) * COUT), 1.0, 0.0)   # (bn, bn*COUT)
    s2 = jnp.dot(smat, h * h, preferred_element_type=jnp.float32)        # (bn, DOUT)
    inv = jnp.where(s2 > EPS * EPS, lax.rsqrt(s2), 1.0 / EPS)            # (bn, DOUT)
    rT = lax.broadcasted_iota(jnp.int32, (bn * COUT, bn), 0)
    gT = lax.broadcasted_iota(jnp.int32, (bn * COUT, bn), 1)
    smatT = jnp.where((rT >= gT * COUT) & (rT < (gT + 1) * COUT), 1.0, 0.0)
    inv_rows = jnp.dot(smatT, inv, preferred_element_type=jnp.float32)    # (bn*COUT, DOUT)

    out_ref[...] = jnp.maximum(h * inv_rows, 0.0).astype(out_ref.dtype)


def tete_forward(x, conv_w, conv_b, lin_w, lin_b, *, block_b=32,
                 out_dtype=jnp.float32, bf16_stage2=False):
    """x: (N, 3, 50) float32 (PyTorch NCL layout).  Returns (N, 50, 768) out_dtype.

    block_b: batch elements per grid step.  Default 32 fits comfortably everywhere
      (v5e/v6e 128 MiB VMEM, v7x 64 MiB per TC); on v7x keep block_b <= 32 for f32
      output (<= 48 for bf16) and make sure N gives at least 2 grid blocks so both
      TensorCores are used (the wrapper below already prefers >= 2 blocks).
    out_dtype=jnp.bfloat16 halves the HBM writeback (the kernel is writeback-bound);
      bf16_stage2=True runs the big Linear matmul with bf16 operands (v5e MXU win).
      Both change numerics vs the PyTorch f32 module, so they default to off.
    """
    N = x.shape[0]
    assert x.shape[1] == CIN and x.shape[2] == L, "tete requires input (N, 3, 50)"

    # Block-size policy: prefer >= 2 blocks (v7x megacore), keep blocks even-sized to
    # minimize tail padding, and round to a multiple of 4 so bn*50 is sublane-dense.
    bn_cap = int(max(1, min(block_b, N, max(4, pl.cdiv(N, 2)))))
    n_blocks_tgt = pl.cdiv(N, bn_cap)
    bn = (-(-pl.cdiv(N, n_blocks_tgt) // 4)) * 4
    n_pad = pl.cdiv(N, bn) * bn
    n_blocks = n_pad // bn

    # Layout plumbing (wrapper side, all free/cheap XLA ops): channels-last, zero-pad
    # the length by 1 each side, build the 3-tap sliding window, flatten to 2D so the
    # conv becomes ONE matmul in-kernel and the input block is (bn*L, KC).
    x_nlc = jnp.transpose(x, (0, 2, 1)).astype(jnp.float32)                 # (N, L, 3)
    x_p = jnp.pad(x_nlc, ((0, n_pad - N), (1, 1), (0, 0)))                  # (n_pad, L+2, 3)
    x_win = jnp.concatenate(
        [x_p[:, 0:L, :], x_p[:, 1:L + 1, :], x_p[:, 2:L + 2, :]], axis=-1)  # (n_pad, L, 9)
    x_win = jnp.pad(x_win, ((0, 0), (0, 0), (0, KC - KTAP * CIN)))          # (n_pad, L, KC)
    x_win = x_win.reshape(n_pad * L, KC)                                    # (n_pad*L, KC)

    # conv_w (COUT, CIN, 3) -> stacked (KC, COUT): wc[k*CIN + c, o] = conv_w[o, c, k]
    wc = jnp.transpose(conv_w, (2, 1, 0)).reshape(KTAP * CIN, COUT)
    wc = jnp.pad(wc, ((0, KC - KTAP * CIN), (0, 0))).astype(jnp.float32)    # (KC, COUT)
    bconv = conv_b.reshape(1, COUT).astype(jnp.float32)
    w2_dtype = jnp.bfloat16 if bf16_stage2 else jnp.float32
    wlin = jnp.transpose(lin_w).astype(w2_dtype)                            # (L, DOUT) lane-dense
    blin = lin_b.reshape(1, DOUT).astype(jnp.float32)

    # Scoped-VMEM request: double-buffered in/out blocks + the big f32 temporaries
    # (h, h*h, inv_rows) + slack.  This raises v5e's 16 MiB default and stays within
    # v7x's 64 MiB physical VMEM at the default block size.
    out_isz = jnp.dtype(out_dtype).itemsize
    big = bn * COUT * DOUT * 4
    vmem_est = (2 * bn * COUT * DOUT * out_isz      # output block, double-buffered
                + 2 * bn * L * 128 * 4              # input block (lanes padded 16->128)
                + 3 * big                           # h / h*h / inv_rows temporaries
                + 2 * bn * bn * COUT * 4            # smat / smatT
                + (6 << 20))                        # weights + headroom
    vmem_limit = int(min(vmem_est, 64 * 1024 * 1024))

    out2d = pl.pallas_call(
        tete_kernel,
        out_shape=jax.ShapeDtypeStruct((n_pad * COUT, DOUT), out_dtype),
        grid=(n_blocks,),
        in_specs=[
            pl.BlockSpec((bn * L, KC), lambda i: (i, 0)),
            pl.BlockSpec((KC, COUT), lambda i: (0, 0)),
            pl.BlockSpec((1, COUT), lambda i: (0, 0)),
            pl.BlockSpec((L, DOUT), lambda i: (0, 0)),
            pl.BlockSpec((1, DOUT), lambda i: (0, 0)),
        ],
        out_specs=pl.BlockSpec((bn * COUT, DOUT), lambda i: (i, 0)),
        compiler_params=pltpu.CompilerParams(
            dimension_semantics=("parallel",),      # batch blocks independent (2 TCs on v7x)
            vmem_limit_bytes=vmem_limit),
    )(x_win, wc, bconv, wlin, blin)

    # Free row-major reshape back to (N, 50, 768).
    return out2d[: N * COUT].reshape(N, COUT, DOUT)


def ref_forward(x, conv_w, conv_b, lin_w, lin_b):
    """Pure-JAX reference mirroring the PyTorch forward (for verification)."""
    y = lax.conv_general_dilated(x, conv_w, (1,), [(1, 1)],
                                 dimension_numbers=('NCH', 'OIH', 'NCH'),
                                 precision=lax.Precision.HIGHEST)
    y = y + conv_b[None, :, None]
    y = y / jnp.maximum(jnp.sqrt(jnp.sum(y * y, axis=1, keepdims=True)), EPS)
    y = jnp.maximum(y, 0.0)
    h = jnp.einsum('ncl,dl->ncd', y, lin_w, precision=lax.Precision.HIGHEST) + lin_b
    h = h / jnp.maximum(jnp.sqrt(jnp.sum(h * h, axis=1, keepdims=True)), EPS)
    return jnp.maximum(h, 0.0)


if __name__ == "__main__":
    # Deterministic synthetic parameters (shapes from tete.__init__).
    key = jax.random.PRNGKey(0)
    k0, k1, k2, k3, k4 = jax.random.split(key, 5)
    conv_w = jax.random.normal(k1, (COUT, CIN, KTAP), jnp.float32) * 0.1
    conv_b = jax.random.normal(k2, (COUT,), jnp.float32) * 0.1
    lin_w = jax.random.normal(k3, (DOUT, L), jnp.float32) * 0.05
    lin_b = jax.random.normal(k4, (DOUT,), jnp.float32) * 0.05

    # Input: (batch=6, channels=3, length=50); block_b=4 exercises grid>1 (both v7x TCs)
    # plus the remainder-padding path (N=6 padded to 8, sliced back to 6).
    x = jax.random.normal(k0, (6, CIN, L), jnp.float32)

    out = tete_forward(x, conv_w, conv_b, lin_w, lin_b, block_b=4)
    out = jax.block_until_ready(out)

    ref = ref_forward(x, conv_w, conv_b, lin_w, lin_b)
    assert out.shape == (6, COUT, DOUT)
    max_err = float(jnp.max(jnp.abs(out - ref)))
    assert bool(jnp.allclose(out, ref, atol=1e-3, rtol=1e-3)), max_err

    print("KERNEL_OK")
</pallas_src>

<mosaic_0001>
module attributes {stable_mosaic.version = 11 : i64} {
  func.func @tete_kernel(%arg0: i32, %arg1: memref<200x16xf32, #tpu.memory_space<vmem>>, %arg2: memref<16x50xf32, #tpu.memory_space<vmem>>, %arg3: memref<1x50xf32, #tpu.memory_space<vmem>>, %arg4: memref<50x768xf32, #tpu.memory_space<vmem>>, %arg5: memref<1x768xf32, #tpu.memory_space<vmem>>, %arg6: memref<200x768xf32, #tpu.memory_space<vmem>>) attributes {dimension_semantics = [#tpu.dimension_semantics<parallel>], iteration_bounds = array<i64: 2>, scalar_prefetch = 0 : i64, scratch_operands = 0 : i64, tpu.core_type = #tpu.core_type<tc>, window_params = [{transform_indices = @transform_0, window_bounds = array<i64: 200, 16>}, {pipeline_mode = #tpu.pipeline_mode<synchronous>, transform_indices = @transform_1, window_bounds = array<i64: 16, 50>}, {pipeline_mode = #tpu.pipeline_mode<synchronous>, transform_indices = @transform_2, window_bounds = array<i64: 1, 50>}, {pipeline_mode = #tpu.pipeline_mode<synchronous>, transform_indices = @transform_3, window_bounds = array<i64: 50, 768>}, {pipeline_mode = #tpu.pipeline_mode<synchronous>, transform_indices = @transform_4, window_bounds = array<i64: 1, 768>}, {transform_indices = @transform_5, window_bounds = array<i64: 200, 768>}]} {
    %c0 = arith.constant 0 : index
    %c0_0 = arith.constant 0 : index
    %0 = vector.load %arg1[%c0, %c0_0] : memref<200x16xf32, #tpu.memory_space<vmem>>, vector<200x16xf32>
    %c0_1 = arith.constant 0 : index
    %c0_2 = arith.constant 0 : index
    %1 = vector.load %arg2[%c0_1, %c0_2] : memref<16x50xf32, #tpu.memory_space<vmem>>, vector<16x50xf32>
    %cst = arith.constant dense<0.000000e+00> : vector<200x50xf32>
    %2 = tpu.matmul %0, %1, %cst {dimension_numbers = #tpu.dot_dimension_numbers<[1], [0], [0], [1], [0, 0, 1, 1], [], []>} : vector<200x16xf32>, vector<16x50xf32>, vector<200x50xf32> -> vector<200x50xf32>
    %c0_3 = arith.constant 0 : index
    %c0_4 = arith.constant 0 : index
    %3 = vector.load %arg3[%c0_3, %c0_4] : memref<1x50xf32, #tpu.memory_space<vmem>>, vector<1x50xf32>
    %4 = vector.broadcast %3 : vector<1x50xf32> to vector<200x50xf32>
    %5 = arith.addf %2, %4 : vector<200x50xf32>
    %6 = arith.mulf %5, %5 : vector<200x50xf32>
    %cst_5 = arith.constant dense<0.000000e+00> : vector<200xf32>
    %7 = vector.multi_reduction <add>, %6, %cst_5 [1] : vector<200x50xf32> to vector<200xf32>
    %8 = vector.shape_cast %7 : vector<200xf32> to vector<200x1xf32>
    %cst_6 = arith.constant 1.000000e-24 : f32
    %9 = vector.broadcast %cst_6 : f32 to vector<200x1xf32>
    %10 = arith.cmpf ogt, %8, %9 : vector<200x1xf32>
    %11 = math.rsqrt %8 : vector<200x1xf32>
    %cst_7 = arith.constant 9.99999995E+11 : f32
    %12 = vector.broadcast %cst_7 : f32 to vector<200x1xf32>
    %13 = arith.select %10, %11, %12 : vector<200x1xi1>, vector<200x1xf32>
    %14 = vector.broadcast %13 : vector<200x1xf32> to vector<200x50xf32>
    %15 = arith.mulf %5, %14 : vector<200x50xf32>
    %cst_8 = arith.constant 0.000000e+00 : f32
    %16 = vector.broadcast %cst_8 : f32 to vector<200x50xf32>
    %17 = arith.maximumf %15, %16 : vector<200x50xf32>
    %18 = vector.shape_cast %17 : vector<200x50xf32> to vector<4x50x50xf32>
    %19 = tpu.transpose %18, [0, 2, 1] : vector<4x50x50xf32> -> vector<4x50x50xf32>
    %20 = vector.shape_cast %19 : vector<4x50x50xf32> to vector<200x50xf32>
    %c0_9 = arith.constant 0 : index
    %c0_10 = arith.constant 0 : index
    %21 = vector.load %arg4[%c0_9, %c0_10] : memref<50x768xf32, #tpu.memory_space<vmem>>, vector<50x768xf32>
    %cst_11 = arith.constant dense<0.000000e+00> : vector<200x768xf32>
    %22 = tpu.matmul %20, %21, %cst_11 {dimension_numbers = #tpu.dot_dimension_numbers<[1], [0], [0], [1], [0, 0, 1, 1], [], []>} : vector<200x50xf32>, vector<50x768xf32>, vector<200x768xf32> -> vector<200x768xf32>
    %c0_12 = arith.constant 0 : index
    %c0_13 = arith.constant 0 : index
    %23 = vector.load %arg5[%c0_12, %c0_13] : memref<1x768xf32, #tpu.memory_space<vmem>>, vector<1x768xf32>
    %24 = vector.broadcast %23 : vector<1x768xf32> to vector<200x768xf32>
    %25 = arith.addf %22, %24 : vector<200x768xf32>
    %26 = tpu.iota {dimensions = array<i32: 1>} : vector<4x200xi32>
    %27 = tpu.iota {dimensions = array<i32: 0>} : vector<4x200xi32>
    %c50_i32 = arith.constant 50 : i32
    %28 = vector.broadcast %c50_i32 : i32 to vector<4x200xi32>
    %29 = arith.muli %27, %28 : vector<4x200xi32>
    %30 = arith.cmpi sge, %26, %29 : vector<4x200xi32>
    %c1_i32 = arith.constant 1 : i32
    %31 = vector.broadcast %c1_i32 : i32 to vector<4x200xi32>
    %32 = arith.addi %27, %31 : vector<4x200xi32>
    %c50_i32_14 = arith.constant 50 : i32
    %33 = vector.broadcast %c50_i32_14 : i32 to vector<4x200xi32>
    %34 = arith.muli %32, %33 : vector<4x200xi32>
    %35 = arith.cmpi slt, %26, %34 : vector<4x200xi32>
    %36 = arith.andi %30, %35 : vector<4x200xi1>
    %cst_15 = arith.constant 1.000000e+00 : f32
    %cst_16 = arith.constant 0.000000e+00 : f32
    %37 = vector.broadcast %cst_15 : f32 to vector<4x200xf32>
    %38 = vector.broadcast %cst_16 : f32 to vector<4x200xf32>
    %39 = arith.select %36, %37, %38 : vector<4x200xi1>, vector<4x200xf32>
    %40 = arith.mulf %25, %25 : vector<200x768xf32>
    %cst_17 = arith.constant dense<0.000000e+00> : vector<4x768xf32>
    %41 = tpu.matmul %39, %40, %cst_17 {dimension_numbers = #tpu.dot_dimension_numbers<[1], [0], [0], [1], [0, 0, 1, 1], [], []>} : vector<4x200xf32>, vector<200x768xf32>, vector<4x768xf32> -> vector<4x768xf32>
    %cst_18 = arith.constant 1.000000e-24 : f32
    %42 = vector.broadcast %cst_18 : f32 to vector<4x768xf32>
    %43 = arith.cmpf ogt, %41, %42 : vector<4x768xf32>
    %44 = math.rsqrt %41 : vector<4x768xf32>
    %cst_19 = arith.constant 9.99999995E+11 : f32
    %45 = vector.broadcast %cst_19 : f32 to vector<4x768xf32>
    %46 = arith.select %43, %44, %45 : vector<4x768xi1>, vector<4x768xf32>
    %47 = tpu.iota {dimensions = array<i32: 0>} : vector<200x4xi32>
    %48 = tpu.iota {dimensions = array<i32: 1>} : vector<200x4xi32>
    %c50_i32_20 = arith.constant 50 : i32
    %49 = vector.broadcast %c50_i32_20 : i32 to vector<200x4xi32>
    %50 = arith.muli %48, %49 : vector<200x4xi32>
    %51 = arith.cmpi sge, %47, %50 : vector<200x4xi32>
    %c1_i32_21 = arith.constant 1 : i32
    %52 = vector.broadcast %c1_i32_21 : i32 to vector<200x4xi32>
    %53 = arith.addi %48, %52 : vector<200x4xi32>
    %c50_i32_22 = arith.constant 50 : i32
    %54 = vector.broadcast %c50_i32_22 : i32 to vector<200x4xi32>
    %55 = arith.muli %53, %54 : vector<200x4xi32>
    %56 = arith.cmpi slt, %47, %55 : vector<200x4xi32>
    %57 = arith.andi %51, %56 : vector<200x4xi1>
    %cst_23 = arith.constant 1.000000e+00 : f32
    %cst_24 = arith.constant 0.000000e+00 : f32
    %58 = vector.broadcast %cst_23 : f32 to vector<200x4xf32>
    %59 = vector.broadcast %cst_24 : f32 to vector<200x4xf32>
    %60 = arith.select %57, %58, %59 : vector<200x4xi1>, vector<200x4xf32>
    %cst_25 = arith.constant dense<0.000000e+00> : vector<200x768xf32>
    %61 = tpu.matmul %60, %46, %cst_25 {dimension_numbers = #tpu.dot_dimension_numbers<[1], [0], [0], [1], [0, 0, 1, 1], [], []>} : vector<200x4xf32>, vector<4x768xf32>, vector<200x768xf32> -> vector<200x768xf32>
    %62 = arith.mulf %25, %61 : vector<200x768xf32>
    %cst_26 = arith.constant 0.000000e+00 : f32
    %63 = vector.broadcast %cst_26 : f32 to vector<200x768xf32>
    %64 = arith.maximumf %62, %63 : vector<200x768xf32>
    %c0_27 = arith.constant 0 : index
    %c0_28 = arith.constant 0 : index
    %65 = vector.load %arg6[%c0_27, %c0_28] : memref<200x768xf32, #tpu.memory_space<vmem>>, vector<200x768xf32>
    tpu.vector_store %arg6[%c0_27, %c0_28], %64 {strides = array<i32>} : memref<200x768xf32, #tpu.memory_space<vmem>>, vector<200x768xf32>,
    return
  }
  func.func @transform_0(%arg0: i32) -> (i32, i32) {
    %c0_i32 = arith.constant 0 : i32
    %c0_i32_0 = arith.constant 0 : i32
    return %arg0, %c0_i32 : i32, i32
  }
  func.func @transform_1(%arg0: i32) -> (i32, i32) {
    %c0_i32 = arith.constant 0 : i32
    %c0_i32_0 = arith.constant 0 : i32
    %c0_i32_1 = arith.constant 0 : i32
    return %c0_i32, %c0_i32_0 : i32, i32
  }
  func.func @transform_2(%arg0: i32) -> (i32, i32) {
    %c0_i32 = arith.constant 0 : i32
    %c0_i32_0 = arith.constant 0 : i32
    %c0_i32_1 = arith.constant 0 : i32
    return %c0_i32, %c0_i32_0 : i32, i32
  }
  func.func @transform_3(%arg0: i32) -> (i32, i32) {
    %c0_i32 = arith.constant 0 : i32
    %c0_i32_0 = arith.constant 0 : i32
    %c0_i32_1 = arith.constant 0 : i32
    return %c0_i32, %c0_i32_0 : i32, i32
  }
  func.func @transform_4(%arg0: i32) -> (i32, i32) {
    %c0_i32 = arith.constant 0 : i32
    %c0_i32_0 = arith.constant 0 : i32
    %c0_i32_1 = arith.constant 0 : i32
    return %c0_i32, %c0_i32_0 : i32, i32
  }
  func.func @transform_5(%arg0: i32) -> (i32, i32) {
    %c0_i32 = arith.constant 0 : i32
    %c0_i32_0 = arith.constant 0 : i32
    return %arg0, %c0_i32 : i32, i32
  }
}

</mosaic_0001>

<bundles_post_ra>
// kernel: tpu_custom_call.1
= control target key start
LH: loop header
LB: loop body
LE: loop exit
PB: predicated region body
PF: predicated region fallthrough
CT: control target
= control target key end

     0   :  { %s9063_s0 = inlined_call_operand.vmem [shape: f32[400,16], index: 0, kind: input, shape index: {}]   ;;  %s9064_s1 = inlined_call_operand.hbm [shape: f32[16,50], index: 1, kind: input, shape index: {}]   ;;  %s9065_s2 = inlined_call_operand.hbm [shape: f32[1,50], index: 2, kind: input, shape index: {}]   ;;  %s9066_s3 = inlined_call_operand.hbm [shape: f32[50,768], index: 3, kind: input, shape index: {}]   ;;  %s9067_s4 = inlined_call_operand.hbm [shape: f32[1,768], index: 4, kind: input, shape index: {}]   ;;  %s9068_s5 = inlined_call_operand.hbm [shape: f32[400,768], index: 5, kind: output, shape index: {}]  }
   0x1   :  { %9194 = sst [smem:[#allocation133_spill]] %s9064_s1 }
   0x2   :  { %10 = vsyncpa [#allocation3], 0 }
   0x3   :  { %11 = vsyncpa [#allocation6], 0 }
   0x4   :  { %12 = vsyncpa [#allocation9], 0 }
   0x5   :  { %13 = vsyncpa [#allocation4], 0 }
   0x6   :  { %15 = vsyncpa [#allocation4 + $0x1], 0  ;;  %s6259_s18 = smov 0   ;;  %s6261_s19 = smov 0  }
   0x7   :  { %s6263_s20 = smov 0   ;;  %s6265_s21 = smov 0  }
   0x8 LB: > { %s6280_s22 = sadd.s32 4294967295, %s6211_s21   ;;  %s5362_s23 = sadd.s32 4294967294, %s6211_s21   ;;  %s6211_s21 = sphi %s6265_s21, %s9453_s21   ;;  %s6207_s20 = sphi %s6263_s20, %s9452_s20   ;;  %s6203_s19 = sphi %s6261_s19, %s9451_s19   ;;  %s6199_s18 = sphi %s6259_s18, %s9450_s18  }
   0x9   : > { %s6284_s24 = sadd.s32 1, %s6211_s21   ;;  %s138_s25 = sadd.s32 1, %s6207_s20 }
   0xa   : > { %s135_s26 = ssub.s32 %s6211_s21, %s6284_s24  ;;  %p148_p0 = scmp.ne.s32.totalorder %s6207_s20, %s6203_s19 }
   0xb   : > { %p136_p1 = scmp.eq.s32.totalorder %s135_s26, 0  ;;  %p149_p2 = scmp.eq.s32.totalorder %s6280_s22, 1 }
   0xc   : > { %p154_p3 = scmp.ne.s32.totalorder %s6203_s19, %s6199_s18  ;;  %p155_p4 = scmp.eq.s32.totalorder %s5362_s23, 1 }
   0xd   : > { %s6295_s27 = scalar_select %p136_p1, %s6207_s20, %s138_s25  }
   0xe   : > { %p6297_p5 = por %p149_p2, %p148_p0  ;;  %p6301_p6 = por %p155_p4, %p154_p3 }
   0xf   : > { %p5363_p7 = scmp.ge.s32.totalorder %s6211_s21, 1  ;;  %p162_p8 = scmp.lt.s32.totalorder %s6211_s21, 3 }
  0x10   : > { %s9195_s28 = scalar_select %p6297_p5, 1, 0 }
  0x11   : > { %s9196_s29 = scalar_select %p6301_p6, 1, 0 }
  0x12   : > { %p9069_p9 = scmp.eq.s32.totalorder %s6280_s22, 0  ;;  %p6308_p10 = pnand %p5363_p7, %p162_p8 }
  0x13   : > { %s6213_s6 = smov [#allocation5]   ;;  %s6214_s8 = smov [#allocation2]  }
  0x14   : > { %s9197_s30 = scalar_select %p6308_p10, 1, 0 }
  0x15   : > { %s188_s7 = sshll.u32 %s6213_s6, 4  ;;  %p5889_p11 = pneg %p6308_p10  ;;  %s189_s7 = int_to_ptr.vmem [resolvable:$true] %s188_s7 }
  0x16   : > { %s174_s9 = sshll.u32 %s6214_s8, 4  ;;  %s6215_s11 = smov [#allocation7]   ;;  %s6320_s9 = int_to_ptr.vmem [resolvable:$true] %s174_s9 }
  0x17   : > { %p6316_p12 = pnand %p9069_p9, %p5889_p11  ;;  %s6322_s12 = sshll.u32 %s6215_s11, 4  ;;  %s199_s12 = int_to_ptr.vmem [resolvable:$true] %s6322_s12 }
  0x18   : > { %s6025_s15 = scalar_lea.hbm %s9065_s2, 16 }
  0x19   : > { %p6026_p13 = scmp.ne.s32.totalorder %s9065_s2, %s6025_s15  ;;  %p6332_p0 = pneg %p6316_p12 }
  0x1a   : > { %p6032_p3 = scmp.lt.u32.totalorder %s6025_s15, %s9065_s2 }
  0x1b   : > { %p6028_p1 = pnand %p6332_p0, %p6026_p13 }
  0x1d   : > { %p6029_p2 = pneg %p6028_p1 }
  0x1f   : > { %p6034_p4 = pnand %p6032_p3, %p6029_p2 }
  0x21   : > { %6037 = shalt.err (!%p6034_p4)
}
  0x22   : > { %s6038_s6 = scalar_lea.vmem %s189_s7, 16  ;;  %s6045_s8 = scalar_lea.vmem %s189_s7, 32 }
  0x23   : > { %p6039_p7 = scmp.ne.s32.totalorder %s189_s7, %s6038_s6  ;;  %p6046_p9 = scmp.lt.s32.totalorder %s189_s7, %s189_s7 }
  0x24   : > { %p6047_p6 = scmp.lt.s32.totalorder %s6045_s8, %s6038_s6 }
  0x25   : > { %p6041_p8 = pnand %p6039_p7, %p6332_p0 }
  0x26   : > { %p6048_p5 = por %p6047_p6, %p6046_p9 }
  0x27   : > { %p6042_p11 = pneg %p6041_p8 }
  0x29   : > { %p6049_p10 = pnand %p6048_p5, %p6042_p11 }
  0x2b   : > { %6052 = shalt.err (!%p6049_p10)
}
  0x2c   : > { %5895 = dma.hbm_to_vmem [thread:$0]  (!%p6316_p12), %s9065_s2, 16, %s189_s7, [#allocation6]  }
  0x2d   : > { %s9200_s1 = sld [smem:[#allocation133_spill]] }
  0x33   : > { %s6053_s16 = scalar_lea.hbm %s9200_s1, 256 }
  0x34   : > { %p6054_p13 = scmp.ne.s32.totalorder %s9200_s1, %s6053_s16  ;;  %p6060_p5 = scmp.lt.u32.totalorder %s6053_s16, %s9200_s1 }
  0x36   : > { %p6056_p1 = pnand %p6054_p13, %p6332_p0 }
  0x38   : > { %p6057_p6 = pneg %p6056_p1 }
  0x3a   : > { %p6062_p9 = pnand %p6060_p5, %p6057_p6 }
  0x3c   : > { %6065 = shalt.err (!%p6062_p9)
}
  0x3d   : > { %s6066_s7 = scalar_lea.vmem %s6320_s9, 256  ;;  %p6074_p4 = scmp.lt.s32.totalorder %s6320_s9, %s6320_s9 }
  0x3e   : > { %p6067_p10 = scmp.ne.s32.totalorder %s6320_s9, %s6066_s7  ;;  %p6075_p7 = scmp.lt.s32.totalorder %s6066_s7, %s6066_s7 }
  0x40   : > { %p6069_p2 = pnand %p6067_p10, %p6332_p0  ;;  %p6076_p8 = por %p6075_p7, %p6074_p4 }
  0x42   : > { %p6070_p3 = pneg %p6069_p2 }
  0x44   : > { %p6077_p11 = pnand %p6076_p8, %p6070_p3 }
  0x46   : > { %6080 = shalt.err (!%p6077_p11)
}
  0x47   : > { %s6216_s8 = smov 128   ;;  %s6217_s11 = smov 8  }
  0x48   : > { %5892 = dma.hbm_to_vmem [thread:$0]  (!%p6316_p12), %s9200_s1, 256, %s6320_s9, [#allocation3], %s6216_s8, %s6216_s8, %s6217_s11  }
  0x49   : > { %s6081_s17 = scalar_lea.hbm %s9066_s3, 5376 }
  0x4a   : > { %p6082_p13 = scmp.ne.s32.totalorder %s9066_s3, %s6081_s17  ;;  %p6088_p5 = scmp.lt.u32.totalorder %s6081_s17, %s9066_s3 }
  0x4c   : > { %p6084_p1 = pnand %p6082_p13, %p6332_p0 }
  0x4e   : > { %p6085_p6 = pneg %p6084_p1 }
  0x50   : > { %p6090_p9 = pnand %p6088_p5, %p6085_p6 }
  0x52   : > { %6093 = shalt.err (!%p6090_p9)
}
  0x53   : > { %s6094_s13 = scalar_lea.vmem %s199_s12, 5376  ;;  %p6102_p4 = scmp.lt.s32.totalorder %s199_s12, %s199_s12 }
  0x54   : > { %p6095_p10 = scmp.ne.s32.totalorder %s199_s12, %s6094_s13  ;;  %p6103_p7 = scmp.lt.s32.totalorder %s6094_s13, %s6094_s13 }
  0x56   : > { %p6097_p2 = pnand %p6095_p10, %p6332_p0  ;;  %p6104_p8 = por %p6103_p7, %p6102_p4 }
  0x58   : > { %p6098_p3 = pneg %p6097_p2 }
  0x5a   : > { %p6105_p11 = pnand %p6104_p8, %p6098_p3 }
  0x5c   : > { %6108 = shalt.err (!%p6105_p11)
}
  0x5d   : > { %s6218_s9 = smov 768   ;;  %s6219_s8 = smov 48  }
  0x5e   : > { %5898 = dma.hbm_to_vmem [thread:$0]  (!%p6316_p12), %s9066_s3, 5376, %s199_s12, [#allocation6], %s6218_s9, %s6218_s9, %s6219_s8  }
  0x5f   : > { %s6220_s15 = smov [#allocation8]   ;;  %s6109_s26 = scalar_lea.hbm %s9067_s4, 96 }
  0x60   : > { %s212_s16 = sshll.u32 %s6220_s15, 4  ;;  %p6110_p13 = scmp.ne.s32.totalorder %s9067_s4, %s6109_s26  ;;  %s213_s16 = int_to_ptr.vmem [resolvable:$true] %s212_s16 }
  0x61   : > { %p6116_p5 = scmp.lt.u32.totalorder %s6109_s26, %s9067_s4 }
  0x62   : > { %p6112_p1 = pnand %p6110_p13, %p6332_p0 }
  0x64   : > { %p6113_p6 = pneg %p6112_p1 }
  0x66   : > { %p6118_p9 = pnand %p6116_p5, %p6113_p6 }
  0x68   : > { %6121 = shalt.err (!%p6118_p9)
}
  0x69   : > { %s6122_s12 = scalar_lea.vmem %s213_s16, 96  ;;  %p6130_p4 = scmp.lt.s32.totalorder %s213_s16, %s213_s16 }
  0x6a   : > { %p6123_p10 = scmp.ne.s32.totalorder %s213_s16, %s6122_s12  ;;  %p6131_p7 = scmp.lt.s32.totalorder %s6122_s12, %s6122_s12 }
  0x6c   : > { %p6125_p2 = pnand %p6123_p10, %p6332_p0  ;;  %p6132_p8 = por %p6131_p7, %p6130_p4 }
  0x6e   : > { %p6126_p3 = pneg %p6125_p2 }
  0x70   : > { %p6133_p11 = pnand %p6132_p8, %p6126_p3 }
  0x72   : > { %6136 = shalt.err (!%p6133_p11)
}
  0x73   : > { %5901 = dma.hbm_to_vmem [thread:$0]  (!%p6316_p12), %s9067_s4, 96, %s213_s16, [#allocation9]  }
  0x74   : > { %p9201_p13 = scmp.ne.s32.totalorder %s9197_s30, 0 }
  0x76   : > { %234 = sbr.rel (%p9201_p13) target bundleno = 1666 (0x682), region = 40 }
  0x7d   : > { %p9202_p1 = scmp.eq.s32.totalorder %s6280_s22, 0 }
  0x7f   : > { %6182 = dma.done.wait (%p9202_p1), [#allocation3], 256   ;;  %p9203_p0 = pmov %p9202_p1 }
  0x81   : > { %6184 = vsyncadd (%p9203_p0), [#allocation3], 4294967040  ;;  %p9204_p6 = pmov %p9203_p0 }
  0x82   : > { %p9205_p5 = pmov %p9203_p0 }
  0x83   : > { %6186 = dma.done.wait (%p9204_p6), [#allocation6], 5392  }
  0x84   : > { %6188 = vsyncadd (%p9205_p5), [#allocation6], 4294961904  ;;  %p9206_p9 = pmov %p9203_p0 }
  0x85   : > { %p9207_p12 = pmov %p9203_p0 }
  0x86   : > { %6190 = dma.done.wait (%p9206_p9), [#allocation9], 96  }
  0x87   : > { %6192 = vsyncadd (%p9207_p12), [#allocation9], 4294967200  ;;  %s274_s1 = smul.u32 25, %s6280_s22  ;;  %v6221_v0 = vmov 0.0|0.0   ;;  %vm6222_vm0 = vmmov 0   ;;  %v9072_v1 = vmov 0.0  }
  0x88   : > { %5678 = vmatprep.subr.bf16.mxu0 %v6221_v0  ;;  %5603 = vmatprep.mubr.msk.f32.mxu0 %vm6222_vm0, %v9072_v1  ;;  %v306_v2 = vld [vmem:[#allocation2] sm:$0xff]  ;;  %v307_v3 = vld [vmem:[#allocation2 + $0x8] sm:$0xff]  ;;  %vm315_vm1 = vcmask 130048   ;;  %v6530_v30 = vld [vmem:[#allocation5] ss:$0 sm:$0xff]  ;;  %vm606_vm2 = vcmask 408576  }
  0x89   : > { %p275_p10 = scmp.lt.s32.totalorder %s274_s1, 49  ;;  %2987 = vmatprep.mubr.f32.mxu1 %v9072_v1  ;;  %v5679_v4 = vpack.c.bf16 %v307_v3, %v306_v2  ;;  %s271_s14 = sand.u32 1, %s6203_s19  }
  0x8a   : > { %s5869_s15 = smul.u32 1200, %s271_s14  ;;  %p9448_p3 = scmp.ne.s32.totalorder %s9195_s28, 0 }
  0x8b   : > { %s9455_s1 = smov (!%p275_p10, %s274_s1), 49  ;;  %5680 = vmatpush3.bf16.msra.mxu0 %v5679_v4  ;;  %s5914_s17 = smul.u32 19200, %s6280_s22 }
  0x8c   : > { %s5374_s30 = sshll.u32 %s9455_s1, 3  ;;  %s8711_s16 = scalar_lea.vmem [#allocation10], %s5869_s15 }
  0x8d   : > { %s6429_s11 = scalar_lea.vmem %s9063_s0, %s5374_s30  ;;  %s5259_s25 = sshll.u32 %s8711_s16, 4  ;;  %s9016_s25 = int_to_ptr.vmem [resolvable:$true] %s5259_s25 }
  0x8e   : > { %v281_v5 = vld [vmem:[%s6429_s11] sm:$0xff]  ;;  %v282_v6 = vld [vmem:[%s6429_s11 + $0x8] sm:$0xff]  ;;  %v283_v7 = vld [vmem:[%s6429_s11 + $0x10] sm:$0xff]  ;;  %s9014_s7 = scalar_lea.hbm %s9068_s5, %s5914_s17  ;;  %s9022_s22 = scalar_lea.sflag [#allocation4], %s271_s14 }
  0x8f   : > { %5604 = vmatmul.mubr.msk.f32.vlgmr.msra.gmra.mrb[0].mxu0 %vm315_vm1, %v281_v5  ;;  %v284_v8 = vld [vmem:[%s6429_s11 + $0x18] sm:$0xff]  ;;  %v285_v9 = vld [vmem:[%s6429_s11 + $0x20] sm:$0xff]  ;;  %v286_v10 = vld [vmem:[%s6429_s11 + $0x28] sm:$0xff]  ;;  %s6137_s13 = scalar_lea.vmem %s9016_s25, 19200  ;;  %s6226_s12 = smov [#allocation10]  }
  0x90   : > { %5606 = vmatprep.mubr.msk.f32.mxu0 %vm6222_vm0, %v9072_v1  ;;  %v287_v11 = vld [vmem:[%s6429_s11 + $0x30] sm:$0xff]  ;;  %v288_v12 = vld [vmem:[%s6429_s11 + $0x38] sm:$0xff]  ;;  %v289_v13 = vld [vmem:[%s6429_s11 + $0x40] sm:$0xff]  ;;  %p6138_p2 = scmp.ne.s32.totalorder %s9016_s25, %s6137_s13  ;;  %s6141_s9 = sshll.u32 %s6226_s12, 4  ;;  %s6142_s9 = int_to_ptr.vmem [resolvable:$false] %s6141_s9 }
  0x91   : > { %v290_v14 = vld [vmem:[%s6429_s11 + $0x48] sm:$0xff]  ;;  %v291_v15 = vld [vmem:[%s6429_s11 + $0x50] sm:$0xff]  ;;  %v292_v16 = vld [vmem:[%s6429_s11 + $0x58] sm:$0xff]  ;;  %s6143_s8 = scalar_lea.vmem %s6142_s9, 38400  ;;  %p6144_p8 = scmp.lt.s32.totalorder %s9016_s25, %s6142_s9 }
  0x92   : > { %v293_v17 = vld [vmem:[%s6429_s11 + $0x60] sm:$0xff]  ;;  %v294_v18 = vld [vmem:[%s6429_s11 + $0x68] sm:$0xff]  ;;  %v295_v19 = vld [vmem:[%s6429_s11 + $0x70] sm:$0xff]  ;;  %p6139_p4 = pnand %p6138_p2, %p9448_p3  ;;  %p6145_p11 = scmp.lt.s32.totalorder %s6143_s8, %s6137_s13 }
  0x93   : > { %5607 = vmatmul.mubr.msk.f32.gmra.mrb[2].mxu0 %vm315_vm1, %v282_v6  ;;  %v296_v20 = vld [vmem:[%s6429_s11 + $0x78] sm:$0xff]  ;;  %v297_v21 = vld [vmem:[%s6429_s11 + $0x80] sm:$0xff]  ;;  %v298_v22 = vld [vmem:[%s6429_s11 + $0x88] sm:$0xff] }
  0x94   : > { %5609 = vmatprep.mubr.msk.f32.mxu0 %vm6222_vm0, %v9072_v1  ;;  %v299_v23 = vld [vmem:[%s6429_s11 + $0x90] sm:$0xff]  ;;  %v300_v24 = vld [vmem:[%s6429_s11 + $0x98] sm:$0xff]  ;;  %v301_v25 = vld [vmem:[%s6429_s11 + $0xa0] sm:$0xff]  ;;  %p6140_p7 = pneg %p6139_p4  ;;  %p6146_p13 = por %p6145_p11, %p6144_p8 }
  0x95   : > { %v302_v26 = vld [vmem:[%s6429_s11 + $0xa8] sm:$0xff]  ;;  %v303_v27 = vld [vmem:[%s6429_s11 + $0xb0] sm:$0xff]  ;;  %v304_v28 = vld [vmem:[%s6429_s11 + $0xb8] sm:$0xff] }
  0x96   : > { %v305_v29 = vld [vmem:[%s6429_s11 + $0xc0] sm:$0xff]  ;;  %p6147_p1 = pnand %p6146_p13, %p6140_p7 }
  0x97   : > { %5610 = vmatmul.mubr.msk.f32.gmra.mrb[4].mxu0 %vm315_vm1, %v283_v7 }
  0x98   : > { %5612 = vmatprep.mubr.msk.f32.mxu0 %vm6222_vm0, %v9072_v1 }
  0x9b   : > { %5613 = vmatmul.mubr.msk.f32.gmra.mrb[6].mxu0 %vm315_vm1, %v284_v8 }
  0x9c   : > { %5615 = vmatprep.mubr.msk.f32.mxu0 %vm6222_vm0, %v9072_v1 }
  0x9f   : > { %5616 = vmatmul.mubr.msk.f32.gmra.mrb[8].mxu0 %vm315_vm1, %v285_v9 }
  0xa0   : > { %5618 = vmatprep.mubr.msk.f32.mxu0 %vm6222_vm0, %v9072_v1 }
  0xa3   : > { %5619 = vmatmul.mubr.msk.f32.gmra.mrb[10].mxu0 %vm315_vm1, %v286_v10 }
  0xa4   : > { %5621 = vmatprep.mubr.msk.f32.mxu0 %vm6222_vm0, %v9072_v1 }
  0xa7   : > { %5622 = vmatmul.mubr.msk.f32.gmra.mrb[12].mxu0 %vm315_vm1, %v287_v11 }
  0xa8   : > { %5624 = vmatprep.mubr.msk.f32.mxu0 %vm6222_vm0, %v9072_v1 }
  0xab   : > { %5625 = vmatmul.mubr.msk.f32.gmra.mrb[14].mxu0 %vm315_vm1, %v288_v12 }
  0xac   : > { %5627 = vmatprep.mubr.msk.f32.mxu0 %vm6222_vm0, %v9072_v1 }
  0xaf   : > { %5628 = vmatmul.mubr.msk.f32.gmra.mrb[16].mxu0 %vm315_vm1, %v289_v13 }
  0xb0   : > { %5630 = vmatprep.mubr.msk.f32.mxu0 %vm6222_vm0, %v9072_v1 }
  0xb3   : > { %5631 = vmatmul.mubr.msk.f32.gmra.mrb[18].mxu0 %vm315_vm1, %v290_v14 }
  0xb4   : > { %5633 = vmatprep.mubr.msk.f32.mxu0 %vm6222_vm0, %v9072_v1 }
  0xb7   : > { %5634 = vmatmul.mubr.msk.f32.gmra.mrb[20].mxu0 %vm315_vm1, %v291_v15 }
  0xb8   : > { %5636 = vmatprep.mubr.msk.f32.mxu0 %vm6222_vm0, %v9072_v1 }
  0xbb   : > { %5637 = vmatmul.mubr.msk.f32.gmra.mrb[22].mxu0 %vm315_vm1, %v292_v16 }
  0xbc   : > { %5639 = vmatprep.mubr.msk.f32.mxu0 %vm6222_vm0, %v9072_v1 }
  0xbf   : > { %5640 = vmatmul.mubr.msk.f32.gmra.mrb[24].mxu0 %vm315_vm1, %v293_v17 }
  0xc0   : > { %5642 = vmatprep.mubr.msk.f32.mxu0 %vm6222_vm0, %v9072_v1 }
  0xc3   : > { %5643 = vmatmul.mubr.msk.f32.gmra.mrb[26].mxu0 %vm315_vm1, %v294_v18 }
  0xc4   : > { %5645 = vmatprep.mubr.msk.f32.mxu0 %vm6222_vm0, %v9072_v1 }
  0xc7   : > { %5646 = vmatmul.mubr.msk.f32.gmra.mrb[28].mxu0 %vm315_vm1, %v295_v19 }
  0xc8   : > { %5648 = vmatprep.mubr.msk.f32.mxu0 %vm6222_vm0, %v9072_v1 }
  0xcb   : > { %5649 = vmatmul.mubr.msk.f32.gmra.mrb[30].mxu0 %vm315_vm1, %v296_v20 }
  0xcc   : > { %5651 = vmatprep.mubr.msk.f32.mxu0 %vm6222_vm0, %v9072_v1 }
  0xcf   : > { %5652 = vmatmul.mubr.msk.f32.gmra.mrb[32].mxu0 %vm315_vm1, %v297_v21 }
  0xd0   : > { %5654 = vmatprep.mubr.msk.f32.mxu0 %vm6222_vm0, %v9072_v1 }
  0xd3   : > { %5655 = vmatmul.mubr.msk.f32.gmra.mrb[34].mxu0 %vm315_vm1, %v298_v22 }
  0xd4   : > { %5657 = vmatprep.mubr.msk.f32.mxu0 %vm6222_vm0, %v9072_v1 }
  0xd7   : > { %5658 = vmatmul.mubr.msk.f32.gmra.mrb[36].mxu0 %vm315_vm1, %v299_v23 }
  0xd8   : > { %5660 = vmatprep.mubr.msk.f32.mxu0 %vm6222_vm0, %v9072_v1 }
  0xdb   : > { %5661 = vmatmul.mubr.msk.f32.gmra.mrb[38].mxu0 %vm315_vm1, %v300_v24 }
  0xdc   : > { %5663 = vmatprep.mubr.msk.f32.mxu0 %vm6222_vm0, %v9072_v1 }
  0xdf   : > { %5664 = vmatmul.mubr.msk.f32.gmra.mrb[40].mxu0 %vm315_vm1, %v301_v25 }
  0xe0   : > { %5666 = vmatprep.mubr.msk.f32.mxu0 %vm6222_vm0, %v9072_v1 }
  0xe3   : > { %5667 = vmatmul.mubr.msk.f32.gmra.mrb[42].mxu0 %vm315_vm1, %v302_v26 }
  0xe4   : > { %5669 = vmatprep.mubr.msk.f32.mxu0 %vm6222_vm0, %v9072_v1 }
  0xe7   : > { %5670 = vmatmul.mubr.msk.f32.gmra.mrb[44].mxu0 %vm315_vm1, %v303_v27 }
  0xe8   : > { %5672 = vmatprep.mubr.msk.f32.mxu0 %vm6222_vm0, %v9072_v1 }
  0xeb   : > { %5673 = vmatmul.mubr.msk.f32.gmra.mrb[46].mxu0 %vm315_vm1, %v304_v28 }
  0xec   : > { %5675 = vmatprep.mubr.msk.f32.mxu0 %vm6222_vm0, %v9072_v1 }
  0xef   : > { %5676 = vmatmul.mubr.msk.f32.gmra.mrb[48].mxu0 %vm315_vm1, %v305_v29 }
  0xf0   : > { %2945 = vmatprep.mubr.f32.mxu0 %v9072_v1 }
 0x162   : > { %v457_v31 = vpop.f32.mrb[0].mxu0 }
 0x163   : > { %v6533_v32 = vadd.f32 %v6530_v30, %v457_v31  ;;  %v5605_v33 = vpop.f32.mrb[1].mxu0 }
 0x165   : > { %v581_v34 = vmul.f32 %v6533_v32, %v6533_v32 }
 0x166   : > { %v462_v35 = vpop.f32.mrb[2].mxu0 }
 0x167   : > { %v6538_v36 = vadd.f32 %v6530_v30, %v462_v35  ;;  %v5608_v37 = vpop.f32.mrb[3].mxu0  ;;  %v607_v38 = vsel %vm606_vm2, %v581_v34, 0.0 }
 0x168   : > { %608 = vadd.xlane.f32.xlu0 %v607_v38 }
 0x169   : > { %v582_v39 = vmul.f32 %v6538_v36, %v6538_v36 }
 0x16a   : > { %v467_v40 = vpop.f32.mrb[4].mxu0 }
 0x16b   : > { %v5611_v41 = vpop.f32.mrb[5].mxu0  ;;  %v610_v42 = vsel %vm606_vm2, %v582_v39, 0.0  ;;  %v6556_v57 = vadd.f32 %v6530_v30, %v467_v40 }
 0x16c   : > { %611 = vadd.xlane.f32.xlu0 %v610_v42 }
 0x16d   : > { %v583_v4 = vmul.f32 %v6556_v57, %v6556_v57 }
 0x16e   : > { %v472_v43 = vpop.f32.mrb[6].mxu0 }
 0x16f   : > { %v6545_v44 = vadd.f32 %v6530_v30, %v472_v43  ;;  %v5614_v45 = vpop.f32.mrb[7].mxu0  ;;  %v613_v9 = vsel %vm606_vm2, %v583_v4, 0.0 }
 0x171   : > { %v584_v46 = vmul.f32 %v6545_v44, %v6545_v44 }
 0x172   : > { %v477_v47 = vpop.f32.mrb[8].mxu0 }
 0x173   : > { %v5617_v48 = vpop.f32.mrb[9].mxu0  ;;  %v616_v49 = vsel %vm606_vm2, %v584_v46, 0.0  ;;  %v6592_v20 = vadd.f32 %v6530_v30, %v477_v47 }
 0x174   : > { %617 = vadd.xlane.f32.xlu1 %v616_v49 }
 0x175   : > { %v585_v29 = vmul.f32 %v6592_v20, %v6592_v20 }
 0x176   : > { %v482_v50 = vpop.f32.mrb[10].mxu0 }
 0x177   : > { %v5620_v51 = vpop.f32.mrb[11].mxu0  ;;  %v6565_v63 = vadd.f32 %v6530_v30, %v482_v50  ;;  %v619_v35 = vsel %vm606_vm2, %v585_v29, 0.0 }
 0x179   : > { %v586_v11 = vmul.f32 %v6565_v63, %v6565_v63 }
 0x17a   : > { %v487_v52 = vpop.f32.mrb[12].mxu0 }
 0x17b   : > { %v6551_v53 = vadd.f32 %v6530_v30, %v487_v52  ;;  %v5623_v54 = vpop.f32.mrb[13].mxu0  ;;  %v622_v16 = vsel %vm606_vm2, %v586_v11, 0.0 }
 0x17d   : > { %v587_v55 = vmul.f32 %v6551_v53, %v6551_v53 }
 0x17e   : > { %v492_v56 = vpop.f32.mrb[14].mxu0 }
 0x17f   : > { %v6559_v58 = vadd.f32 %v6530_v30, %v492_v56  ;;  %v5626_v59 = vpop.f32.mrb[15].mxu0  ;;  %v625_v60 = vsel %vm606_vm2, %v587_v55, 0.0 }
 0x180   : > { %626 = vadd.xlane.f32.xlu0 %v625_v60 }
 0x181   : > { %v588_v61 = vmul.f32 %v6559_v58, %v6559_v58 }
 0x182   : > { %v497_v62 = vpop.f32.mrb[16].mxu0 }
 0x183   : > { %v6568_v0 = vadd.f32 %v6530_v30, %v497_v62  ;;  %v5629_v2 = vpop.f32.mrb[17].mxu0  ;;  %v628_v3 = vsel %vm606_vm2, %v588_v61, 0.0 }
 0x184   : > { %629 = vadd.xlane.f32.xlu0 %v628_v3 }
 0x185   : > { %v589_v5 = vmul.f32 %v6568_v0, %v6568_v0 }
 0x186   : > { %v502_v6 = vpop.f32.mrb[18].mxu0 }
 0x187   : > { %v6576_v7 = vadd.f32 %v6530_v30, %v502_v6  ;;  %v5632_v8 = vpop.f32.mrb[19].mxu0  ;;  %v631_v10 = vsel %vm606_vm2, %v589_v5, 0.0 }
 0x188   : > { %614 = vadd.xlane.f32.xlu0 %v613_v9  ;;  %632 = vadd.xlane.f32.xlu1 %v631_v10 }
 0x189   : > { %v590_v12 = vmul.f32 %v6576_v7, %v6576_v7 }
 0x18a   : > { %v507_v13 = vpop.f32.mrb[20].mxu0 }
 0x18b   : > { %v6585_v14 = vadd.f32 %v6530_v30, %v507_v13  ;;  %v5635_v15 = vpop.f32.mrb[21].mxu0  ;;  %v634_v17 = vsel %vm606_vm2, %v590_v12, 0.0 }
 0x18c   : > { %623 = vadd.xlane.f32.xlu0 %v622_v16  ;;  %635 = vadd.xlane.f32.xlu1 %v634_v17 }
 0x18d   : > { %v591_v18 = vmul.f32 %v6585_v14, %v6585_v14 }
 0x18e   : > { %v512_v19 = vpop.f32.mrb[22].mxu0 }
 0x18f   : > { %v6595_v21 = vadd.f32 %v6530_v30, %v512_v19  ;;  %v5638_v22 = vpop.f32.mrb[23].mxu0  ;;  %v637_v23 = vsel %vm606_vm2, %v591_v18, 0.0 }
 0x190   : > { %638 = vadd.xlane.f32.xlu1 %v637_v23 }
 0x191   : > { %v592_v24 = vmul.f32 %v6595_v21, %v6595_v21 }
 0x192   : > { %v517_v25 = vpop.f32.mrb[24].mxu0 }
 0x193   : > { %v6601_v26 = vadd.f32 %v6530_v30, %v517_v25  ;;  %v640_v27 = vsel %vm606_vm2, %v592_v24, 0.0  ;;  %v5641_v28 = vpop.f32.mrb[25].mxu0 }
 0x194   : > { %641 = vadd.xlane.f32.xlu1 %v640_v27 }
 0x195   : > { %v593_v31 = vmul.f32 %v6601_v26, %v6601_v26 }
 0x196   : > { %v522_v33 = vpop.f32.mrb[26].mxu0 }
 0x197   : > { %v6609_v34 = vadd.f32 %v6530_v30, %v522_v33  ;;  %v643_v37 = vsel %vm606_vm2, %v593_v31, 0.0  ;;  %v5644_v38 = vpop.f32.mrb[27].mxu0 }
 0x198   : > { %620 = vadd.xlane.f32.xlu1 %v619_v35  ;;  %644 = vadd.xlane.f32.xlu0 %v643_v37 }
 0x199   : > { %v594_v39 = vmul.f32 %v6609_v34, %v6609_v34 }
 0x19a   : > { %v527_v40 = vpop.f32.mrb[28].mxu0 }
 0x19b   : > { %v6616_v41 = vadd.f32 %v6530_v30, %v527_v40  ;;  %v646_v42 = vsel %vm606_vm2, %v594_v39, 0.0  ;;  %v5647_v43 = vpop.f32.mrb[29].mxu0 }
 0x19c   : > { %647 = vadd.xlane.f32.xlu1 %v646_v42 }
 0x19d   : > { %v595_v45 = vmul.f32 %v6616_v41, %v6616_v41 }
 0x19e   : > { %v532_v46 = vpop.f32.mrb[30].mxu0 }
 0x19f   : > { %v6622_v47 = vadd.f32 %v6530_v30, %v532_v46  ;;  %v649_v48 = vsel %vm606_vm2, %v595_v45, 0.0  ;;  %v5650_v49 = vpop.f32.mrb[31].mxu0 }
 0x1a0   : > { %650 = vadd.xlane.f32.xlu0 %v649_v48 }
 0x1a1   : > { %v596_v50 = vmul.f32 %v6622_v47, %v6622_v47 }
 0x1a2   : > { %v537_v51 = vpop.f32.mrb[32].mxu0 }
 0x1a3   : > { %v6628_v52 = vadd.f32 %v6530_v30, %v537_v51  ;;  %v652_v54 = vsel %vm606_vm2, %v596_v50, 0.0  ;;  %v5653_v55 = vpop.f32.mrb[33].mxu0 }
 0x1a4   : > { %653 = vadd.xlane.f32.xlu1 %v652_v54  ;;  %v6224_v55 = vmov 1983009808  }
 0x1a5   : > { %v597_v56 = vmul.f32 %v6628_v52, %v6628_v52 }
 0x1a6   : > { %v542_v59 = vpop.f32.mrb[34].mxu0 }
 0x1a7   : > { %v6634_v60 = vadd.f32 %v6530_v30, %v542_v59  ;;  %v655_v61 = vsel %vm606_vm2, %v597_v56, 0.0  ;;  %v5656_v62 = vpop.f32.mrb[35].mxu0  ;;  %v834_v56 = vunpack.c.l.s4 %v6224_v55  ;;  %v836_v59 = vlaneseq }
 0x1a8   : > { %656 = vadd.xlane.f32.xlu0 %v655_v61 }
 0x1a9   : > { %v598_v2 = vmul.f32 %v6634_v60, %v6634_v60  ;;  %v835_v61 = vunpack.c.0.s8 %v834_v56 }
 0x1aa   : > { %v547_v3 = vpop.f32.mrb[36].mxu0 }
 0x1ab   : > { %v6640_v4 = vadd.f32 %v6530_v30, %v547_v3  ;;  %v658_v5 = vsel %vm606_vm2, %v598_v2, 0.0  ;;  %v5659_v6 = vpop.f32.mrb[37].mxu0 }
 0x1ac   : > { %659 = vadd.xlane.f32.xlu1 %v658_v5 }
 0x1ad   : > { %v599_v8 = vmul.f32 %v6640_v4, %v6640_v4 }
 0x1ae   : > { %v552_v9 = vpop.f32.mrb[38].mxu0 }
 0x1af   : > { %v6646_v10 = vadd.f32 %v6530_v30, %v552_v9  ;;  %v661_v11 = vsel %vm606_vm2, %v599_v8, 0.0  ;;  %v5662_v12 = vpop.f32.mrb[39].mxu0 }
 0x1b0   : > { %662 = vadd.xlane.f32.xlu0 %v661_v11 }
 0x1b1   : > { %v600_v13 = vmul.f32 %v6646_v10, %v6646_v10 }
 0x1b2   : > { %v557_v15 = vpop.f32.mrb[40].mxu0 }
 0x1b3   : > { %v6652_v16 = vadd.f32 %v6530_v30, %v557_v15  ;;  %v664_v17 = vsel %vm606_vm2, %v600_v13, 0.0  ;;  %v5665_v18 = vpop.f32.mrb[41].mxu0 }
 0x1b4   : > { %665 = vadd.xlane.f32.xlu1 %v664_v17 }
 0x1b5   : > { %v601_v19 = vmul.f32 %v6652_v16, %v6652_v16 }
 0x1b6   : > { %v562_v22 = vpop.f32.mrb[42].mxu0 }
 0x1b7   : > { %v6658_v23 = vadd.f32 %v6530_v30, %v562_v22  ;;  %v667_v24 = vsel %vm606_vm2, %v601_v19, 0.0  ;;  %v5668_v25 = vpop.f32.mrb[43].mxu0 }
 0x1b8   : > { %668 = vadd.xlane.f32.xlu0 %v667_v24 }
 0x1b9   : > { %v602_v27 = vmul.f32 %v6658_v23, %v6658_v23 }
 0x1ba   : > { %v567_v28 = vpop.f32.mrb[44].mxu0 }
 0x1bb   : > { %v6664_v29 = vadd.f32 %v6530_v30, %v567_v28  ;;  %v670_v31 = vsel %vm606_vm2, %v602_v27, 0.0  ;;  %v5671_v33 = vpop.f32.mrb[45].mxu0 }
 0x1bc   : > { %671 = vadd.xlane.f32.xlu1 %v670_v31 }
 0x1bd   : > { %v603_v35 = vmul.f32 %v6664_v29, %v6664_v29 }
 0x1be   : > { %v572_v37 = vpop.f32.mrb[46].mxu0 }
 0x1bf   : > { %v6670_v38 = vadd.f32 %v6530_v30, %v572_v37  ;;  %v673_v39 = vsel %vm606_vm2, %v603_v35, 0.0  ;;  %v5674_v40 = vpop.f32.mrb[47].mxu0 }
 0x1c0   : > { %674 = vadd.xlane.f32.xlu0 %v673_v39 }
 0x1c1   : > { %v604_v42 = vmul.f32 %v6670_v38, %v6670_v38 }
 0x1c2   : > { %v577_v43 = vpop.f32.mrb[48].mxu0 }
 0x1c3   : > { %v6676_v45 = vadd.f32 %v6530_v30, %v577_v43  ;;  %v676_v46 = vsel %vm606_vm2, %v604_v42, 0.0  ;;  %v5677_v48 = vpop.f32.mrb[49].mxu0  ;;  %v6683_v30 = vshrl.u32 %v836_v59, 7 }
 0x1c4   : > { %677 = vadd.xlane.f32.xlu1 %v676_v46 }
 0x1c5   : > { %v605_v49 = vmul.f32 %v6676_v45, %v6676_v45  ;;  %v6686_v5 = vsub.s32 %v835_v61, %v6683_v30 }
 0x1c7   : > { %v679_v50 = vsel %vm606_vm2, %v605_v49, 0.0 }
 0x1c8   : > { %680 = vadd.xlane.f32.xlu0 %v679_v50 }
 0x1f5   : > { %v609_v51 = vpop.xlane.xlu0 %608 }
 0x1f6   : > { %5963 = vrsqrt.f32 %v609_v51  ;;  %vm682_vm3 = vcmp.gt.f32.partialorder %v609_v51, 1e-24 }
 0x1f9   : > { %v612_v54 = vpop.xlane.xlu0 %611 }
 0x1fa   : > { %5965 = vrsqrt.f32 %v612_v54  ;;  %vm683_vm4 = vcmp.gt.f32.partialorder %v612_v54, 1e-24 }
 0x200   : > { %v5964_v62 = vpop.eup %5963 }
 0x201   : > { %v732_v2 = vsel %vm682_vm3, %v5964_v62, 1e+12  ;;  %v618_v3 = vpop.xlane.xlu1 %617 }
 0x202   : > { %v757_v6 = vmul.f32 %v732_v2, %v6533_v32  ;;  %5967 = vrsqrt.f32 %v618_v3  ;;  %vm685_vm5 = vcmp.gt.f32.partialorder %v618_v3, 1e-24 }
 0x204   : > { %v5966_v8 = vpop.eup %5965  ;;  %v782_v9 = vmax.f32 %v757_v6, 0.0 }
 0x205   : > { %v733_v11 = vsel %vm683_vm4, %v5966_v8, 1e+12 }
 0x206   : > { %v832_v12 = vcombine.high %v782_v9, %v782_v9  ;;  %v839_v13 = vrot.slane %v782_v9, %v6686_v5  ;;  %v758_v15 = vmul.f32 %v733_v11, %v6538_v36 }
 0x208   : > { %v783_v17 = vmax.f32 %v758_v15, 0.0  ;;  %v846_v18 = vrot.slane %v832_v12, %v6686_v5  ;;  %v847_v19 = vcombine.high %v839_v13, %v839_v13 }
 0x20a   : > { %v849_v22 = vcombine.high %v783_v17, %v783_v17  ;;  %v856_v24 = vrot.slane %v783_v17, %v6686_v5  ;;  %v848_v25 = vcombine.high %v846_v18, %v846_v18  ;;  %v1257_v27 = vcombine.low %v839_v13, %v847_v19 }
 0x20c   : > { %v5968_v32 = vpop.eup %5967  ;;  %v863_v28 = vrot.slane %v849_v22, %v6686_v5  ;;  %v864_v31 = vcombine.high %v856_v24, %v856_v24  ;;  %v1258_v33 = vcombine.low %v846_v18, %v848_v25  ;;  %v1265_v36 = vrot.slane %v1257_v27, %v6686_v5 }
 0x20d   : > { %v735_v35 = vsel %vm685_vm5, %v5968_v32, 1e+12  ;;  %v627_v37 = vpop.xlane.xlu0 %626 }
 0x20e   : > { %v760_v39 = vmul.f32 %v735_v35, %v6545_v44  ;;  %5969 = vrsqrt.f32 %v627_v37  ;;  %v1272_v40 = vrot.slane %v1258_v33, %v6686_v5  ;;  %v865_v42 = vcombine.high %v863_v28, %v863_v28 }
 0x20f   : > { %v1274_v43 = vcombine.low %v856_v24, %v864_v31  ;;  %vm688_vm6 = vcmp.gt.f32.partialorder %v627_v37, 1e-24 }
 0x210   : > { %v785_v46 = vmax.f32 %v760_v39, 0.0  ;;  %v1273_v48 = vcombine.low %v1265_v36, %v1272_v40  ;;  %v1275_v50 = vcombine.low %v863_v28, %v865_v42 }
 0x211   : > { %v630_v49 = vpop.xlane.xlu0 %629  ;;  %v1282_v54 = vrot.slane %v1274_v43, %v6686_v5 }
 0x212   : > { %v883_v51 = vcombine.high %v785_v46, %v785_v46  ;;  %5971 = vrsqrt.f32 %v630_v49  ;;  %1721 = vxpose.xlu0.b32.start [1/7] (short) (narrow) %v1273_v48, 56  ;;  %v1289_v55 = vrot.slane %v1275_v50, %v6686_v5  ;;  %v890_v56 = vrot.slane %v785_v46, %v6686_v5 }
 0x213   : > { %vm689_vm7 = vcmp.gt.f32.partialorder %v630_v49, 1e-24 }
 0x214   : > { %v897_v44 = vrot.slane %v883_v51, %v6686_v5  ;;  %v1290_v2 = vcombine.low %v1282_v54, %v1289_v55  ;;  %v898_v8 = vcombine.high %v890_v56, %v890_v56 }
 0x215   : > { %v615_v61 = vpop.xlane.xlu0 %614  ;;  %v633_v62 = vpop.xlane.xlu1 %632 }
 0x216   : > { %5973 = vrsqrt.f32 %v615_v61  ;;  %1722 = vxpose.xlu0.b32.cont [2/7] (short) (narrow) %v1290_v2, 56  ;;  %v899_v3 = vcombine.high %v897_v44, %v897_v44  ;;  %v1308_v24 = vcombine.low %v890_v56, %v898_v8  ;;  %vm684_vm8 = vcmp.gt.f32.partialorder %v615_v61, 1e-24 }
 0x217   : > { %5975 = vrsqrt.f32 %v633_v62  ;;  %vm690_vm9 = vcmp.gt.f32.partialorder %v633_v62, 1e-24 }
 0x218   : > { %v5970_v6 = vpop.eup %5969  ;;  %v1309_v15 = vcombine.low %v897_v44, %v899_v3  ;;  %v1316_v36 = vrot.slane %v1308_v24, %v6686_v5 }
 0x219   : > { %v738_v9 = vsel %vm688_vm6, %v5970_v6, 1e+12  ;;  %v624_v11 = vpop.xlane.xlu0 %623  ;;  %v636_v12 = vpop.xlane.xlu1 %635 }
 0x21a   : > { %v763_v13 = vmul.f32 %v738_v9, %v6551_v53  ;;  %5977 = vrsqrt.f32 %v624_v11  ;;  %v1323_v28 = vrot.slane %v1309_v15, %v6686_v5  ;;  %vm687_vm10 = vcmp.gt.f32.partialorder %v624_v11, 1e-24 }
 0x21b   : > { %5979 = vrsqrt.f32 %v636_v12  ;;  %vm691_vm11 = vcmp.gt.f32.partialorder %v636_v12, 1e-24 }
 0x21c   : > { %v5972_v17 = vpop.eup %5971  ;;  %v788_v18 = vmax.f32 %v763_v13, 0.0  ;;  %v6716_v49 = vcombine.low %v1316_v36, %v1323_v28 }
 0x21d   : > { %v739_v19 = vsel %vm689_vm7, %v5972_v17, 1e+12  ;;  %v639_v22 = vpop.xlane.xlu1 %638 }
 0x21e   : > { %v934_v25 = vcombine.high %v788_v18, %v788_v18  ;;  %v764_v27 = vmul.f32 %v739_v19, %v6559_v58  ;;  %v6704_v32 = vrot.slane %v788_v18, %v6686_v5  ;;  %5981 = vrsqrt.f32 %v639_v22 }
 0x21f   : > { %vm692_vm12 = vcmp.gt.f32.partialorder %v639_v22, 1e-24 }
 0x220   : > { %v5974_v31 = vpop.eup %5973  ;;  %v789_v53 = vmax.f32 %v764_v27, 0.0  ;;  %v948_v33 = vrot.slane %v934_v25, %v6686_v5  ;;  %v949_v48 = vcombine.high %v6704_v32, %v6704_v32  ;;  %v1365_v55 = vrot.slane %v6704_v32, %v6686_v5 }
 0x221   : > { %v5976_v35 = vpop.eup %5975  ;;  %v734_v37 = vsel %vm684_vm8, %v5974_v31, 1e+12  ;;  %v642_v39 = vpop.xlane.xlu1 %641 }
 0x222   : > { %v951_v58 = vcombine.high %v789_v53, %v789_v53  ;;  %v6710_v40 = vrot.slane %v789_v53, %v6686_v5  ;;  %v759_v42 = vmul.f32 %v734_v37, %v6556_v57  ;;  %v740_v43 = vsel %vm690_vm9, %v5976_v35, 1e+12 }
 0x223   : > { %v765_v46 = vmul.f32 %v740_v43, %v6568_v0  ;;  %5983 = vrsqrt.f32 %v642_v39  ;;  %v950_v54 = vcombine.high %v948_v33, %v948_v33  ;;  %vm693_vm13 = vcmp.gt.f32.partialorder %v642_v39, 1e-24 }
 0x224   : > { %v5978_v50 = vpop.eup %5977  ;;  %v784_v51 = vmax.f32 %v759_v42, 0.0  ;;  %v965_v56 = vrot.slane %v951_v58, %v6686_v5  ;;  %v966_v57 = vcombine.high %v6710_v40, %v6710_v40  ;;  %v1366_v11 = vcombine.low %v949_v48, %v948_v33 }
 0x225   : > { %v5980_v44 = vpop.eup %5979  ;;  %v790_v0 = vmax.f32 %v765_v46, 0.0  ;;  %v737_v61 = vsel %vm687_vm10, %v5978_v50, 1e+12  ;;  %v6724_v62 = vpop.xlane.xlu1 %620  ;;  %v1367_v24 = vcombine.low %v950_v54, %v6710_v40 }
 0x226   : > { %v866_v2 = vcombine.high %v784_v51, %v784_v51  ;;  %v6727_v3 = vrot.slane %v784_v51, %v6686_v5  ;;  %v762_v6 = vmul.f32 %v737_v61, %v6565_v63  ;;  %v741_v8 = vsel %vm691_vm11, %v5980_v44, 1e+12  ;;  %v6733_v17 = vpop.xlane.xlu0 %644 }
 0x227   : > { %v968_v9 = vcombine.high %v790_v0, %v790_v0  ;;  %v975_v13 = vrot.slane %v790_v0, %v6686_v5  ;;  %v766_v15 = vmul.f32 %v741_v8, %v6576_v7  ;;  %5985 = vrsqrt.f32 %v6724_v62 }
 0x228   : > { %v6736_v18 = vrot.slane %v866_v2, %v6686_v5  ;;  %v787_v19 = vmax.f32 %v762_v6, 0.0  ;;  %v5982_v25 = vpop.eup %5981  ;;  %v881_v63 = vcombine.high %v6727_v3, %v6727_v3  ;;  %vm686_vm14 = vcmp.gt.f32.partialorder %v6724_v62, 1e-24 }
 0x229   : > { %v982_v12 = vrot.slane %v968_v9, %v6686_v5  ;;  %v983_v27 = vcombine.high %v975_v13, %v975_v13  ;;  %v791_v28 = vmax.f32 %v766_v15, 0.0  ;;  %v6743_v7 = vpop.xlane.xlu1 %647  ;;  %v742_v33 = vsel %vm692_vm12, %v5982_v25, 1e+12 }
 0x22a   : > { %v917_v31 = vcombine.high %v787_v19, %v787_v19  ;;  %v6746_v53 = vrot.slane %v787_v19, %v6686_v5  ;;  %5987 = vrsqrt.f32 %v6733_v17  ;;  %v767_v36 = vmul.f32 %v742_v33, %v6585_v14 }
 0x22b   : > { %v985_v35 = vcombine.high %v791_v28, %v791_v28  ;;  %v6752_v37 = vrot.slane %v791_v28, %v6686_v5  ;;  %vm694_vm15 = vcmp.gt.f32.partialorder %v6733_v17, 1e-24  ;;  %vm695_vm0 = vcmp.gt.f32.partialorder %v6743_v7, 1e-24 }
 0x22c   : > { %v6757_v58 = vrot.slane %v917_v31, %v6686_v5  ;;  %v932_v40 = vcombine.high %v6746_v53, %v6746_v53  ;;  %5989 = vrsqrt.f32 %v6743_v7  ;;  %v792_v43 = vmax.f32 %v767_v36, 0.0 }
 0x22d   : > { %v5984_v22 = vpop.eup %5983  ;;  %v6764_v42 = vrot.slane %v985_v35, %v6686_v5  ;;  %v1374_v46 = vrot.slane %v1366_v11, %v6686_v5  ;;  %v1381_v14 = vrot.slane %v1367_v24, %v6686_v5  ;;  %v651_v48 = vpop.xlane.xlu0 %650  ;;  %v1000_v50 = vcombine.high %v6752_v37, %v6752_v37 }
 0x22e   : > { %v743_v51 = vsel %vm693_vm13, %v5984_v22, 1e+12  ;;  %5991 = vrsqrt.f32 %v651_v48  ;;  %v967_v54 = vcombine.high %v965_v56, %v965_v56  ;;  %v1002_v44 = vcombine.high %v792_v43, %v792_v43 }
 0x22f   : > { %v6772_v0 = vrot.slane %v792_v43, %v6686_v5  ;;  %v768_v61 = vmul.f32 %v743_v51, %v6595_v21  ;;  %v1382_v2 = vcombine.low %v1374_v46, %v1381_v14  ;;  %vm696_vm1 = vcmp.gt.f32.partialorder %v651_v48, 1e-24 }
 0x230   : > { %v1383_v6 = vcombine.low %v966_v57, %v965_v56  ;;  %v1384_v8 = vcombine.low %v967_v54, %v975_v13  ;;  %v984_v9 = vcombine.high %v982_v12, %v982_v12  ;;  %v6776_v15 = vrot.slane %v1002_v44, %v6686_v5 }
 0x231   : > { %v1017_v39 = vcombine.high %v6772_v0, %v6772_v0  ;;  %v793_v11 = vmax.f32 %v768_v61, 0.0  ;;  %1753 = vxpose.xlu1.b32.start [1/7] (short) (narrow) %v1382_v2, 56  ;;  %v654_v19 = vpop.xlane.xlu1 %653  ;;  %v1400_v24 = vcombine.low %v983_v27, %v982_v12  ;;  %v5986_v25 = vpop.eup %5985  ;;  %v882_v56 = vcombine.high %v6736_v18, %v6736_v18 }
 0x232   : > { %v1391_v28 = vrot.slane %v1383_v6, %v6686_v5  ;;  %v1398_v21 = vrot.slane %v1384_v8, %v6686_v5  ;;  %5993 = vrsqrt.f32 %v654_v19  ;;  %v736_v31 = vsel %vm686_vm14, %v5986_v25, 1e+12 }
 0x233   : > { %v1019_v57 = vcombine.high %v793_v11, %v793_v11  ;;  %v6785_v13 = vrot.slane %v793_v11, %v6686_v5  ;;  %v1401_v33 = vcombine.low %v984_v9, %v6752_v37  ;;  %v761_v12 = vmul.f32 %v736_v31, %v6592_v20 }
 0x234   : > { %v5988_v35 = vpop.eup %5987  ;;  %v1399_v27 = vcombine.low %v1391_v28, %v1398_v21  ;;  %vm697_vm3 = vcmp.gt.f32.partialorder %v654_v19, 1e-24  ;;  %v1291_v36 = vcombine.low %v6727_v3, %v881_v63  ;;  %v1408_v46 = vrot.slane %v1400_v24, %v6686_v5 }
 0x235   : > { %v6793_v22 = vrot.slane %v1019_v57, %v6686_v5  ;;  %v744_v43 = vsel %vm694_vm15, %v5988_v35, 1e+12  ;;  %v1415_v62 = vrot.slane %v1401_v33, %v6686_v5  ;;  %v6799_v14 = vpop.xlane.xlu0 %656  ;;  %v1034_v20 = vcombine.high %v6785_v13, %v6785_v13 }
 0x236   : > { %v5990_v37 = vpop.eup %5989  ;;  %v786_v51 = vmax.f32 %v761_v12, 0.0  ;;  %v769_v54 = vmul.f32 %v744_v43, %v6601_v26  ;;  %1754 = vxpose.xlu1.b32.cont [2/7] (short) (narrow) %v1399_v27, 56  ;;  %v1292_v3 = vcombine.low %v6736_v18, %v882_v56  ;;  %v1299_v44 = vrot.slane %v1291_v36, %v6686_v5 }
 0x237   : > { %v745_v17 = vsel %vm695_vm0, %v5990_v37, 1e+12  ;;  %v1416_v63 = vcombine.low %v1408_v46, %v1415_v62  ;;  %5995 = vrsqrt.f32 %v6799_v14  ;;  %v1001_v7 = vcombine.high %v6764_v42, %v6764_v42 }
 0x238   : > { %v5992_v61 = vpop.eup %5991  ;;  %v900_v2 = vcombine.high %v786_v51, %v786_v51  ;;  %v6810_v6 = vrot.slane %v786_v51, %v6686_v5  ;;  %v6812_v8 = vmax.f32 %v769_v54, 0.0  ;;  %v770_v26 = vmul.f32 %v745_v17, %v6609_v34 }
 0x239   : > { %v746_v9 = vsel %vm696_vm1, %v5992_v61, 1e+12  ;;  %v1306_v18 = vrot.slane %v1292_v3, %v6686_v5  ;;  %v1417_v11 = vcombine.low %v1000_v50, %v6764_v42  ;;  %v6820_v24 = vpop.xlane.xlu1 %659  ;;  %vm698_vm4 = vcmp.gt.f32.partialorder %v6799_v14, 1e-24 }
 0x23a   : > { %v6823_v25 = vrot.slane %v900_v2, %v6686_v5  ;;  %v915_v28 = vcombine.high %v6810_v6, %v6810_v6  ;;  %v1036_v34 = vcombine.high %v6812_v8, %v6812_v8  ;;  %1755 = vxpose.xlu1.b32.cont [3/7] (short) (narrow) %v1416_v63, 56  ;;  %v795_v48 = vmax.f32 %v770_v26, 0.0 }
 0x23b   : > { %v771_v21 = vmul.f32 %v746_v9, %v6616_v41  ;;  %v1307_v56 = vcombine.low %v1299_v44, %v1306_v18  ;;  %v1418_v42 = vcombine.low %v1001_v7, %v6772_v0  ;;  %v1043_v57 = vrot.slane %v6812_v8, %v6686_v5 }
 0x23c   : > { %v5994_v50 = vpop.eup %5993  ;;  %v1425_v31 = vrot.slane %v1417_v11, %v6686_v5  ;;  %5997 = vrsqrt.f32 %v6820_v24  ;;  %v1018_v33 = vcombine.high %v6776_v15, %v6776_v15  ;;  %v1053_v35 = vcombine.high %v795_v48, %v795_v48 }
 0x23d   : > { %v796_v12 = vmax.f32 %v771_v21, 0.0  ;;  %v747_v27 = vsel %vm697_vm3, %v5994_v50, 1e+12  ;;  %1723 = vxpose.xlu0.b32.cont [3/7] (short) (narrow) %v1307_v56, 56  ;;  %vm699_vm5 = vcmp.gt.f32.partialorder %v6820_v24, 1e-24  ;;  %v1432_v36 = vrot.slane %v1418_v42, %v6686_v5  ;;  %v6847_v62 = vpop.xlane.xlu0 %662 }
 0x23e   : > { %v772_v41 = vmul.f32 %v747_v27, %v6622_v47  ;;  %v1434_v43 = vcombine.low %v1017_v39, %v6776_v15  ;;  %v1435_v46 = vcombine.low %v1018_v33, %v6785_v13  ;;  %v6850_v37 = vrot.slane %v795_v48, %v6686_v5 }
 0x23f   : > { %v6853_v19 = vrot.slane %v1053_v35, %v6686_v5  ;;  %v1070_v51 = vcombine.high %v796_v12, %v796_v12  ;;  %v6856_v47 = vrot.slane %v796_v12, %v6686_v5  ;;  %v1433_v3 = vcombine.low %v1425_v31, %v1432_v36 }
 0x240   : > { %v797_v54 = vmax.f32 %v772_v41, 0.0  ;;  %v1442_v17 = vrot.slane %v1434_v43, %v6686_v5  ;;  %v1449_v0 = vrot.slane %v1435_v46, %v6686_v5  ;;  %vm700_vm6 = vcmp.gt.f32.partialorder %v6847_v62, 1e-24 }
 0x241   : > { %v5996_v15 = vpop.eup %5995  ;;  %v6861_v39 = vrot.slane %v1070_v51, %v6686_v5  ;;  %1724 = vxpose.xlu0.b32.cont [4/7] (short) (narrow) %v6716_v49, 56  ;;  %5999 = vrsqrt.f32 %v6847_v62  ;;  %v1035_v63 = vcombine.high %v6793_v22, %v6793_v22  ;;  %v6868_v44 = vpop.xlane.xlu1 %665  ;;  %1756 = vxpose.xlu1.b32.cont [4/7] (short) (narrow) %v1433_v3, 56  ;;  %v1085_v49 = vcombine.high %v6856_v47, %v6856_v47 }
 0x242   : > { %v1087_v61 = vcombine.high %v797_v54, %v797_v54  ;;  %v6871_v2 = vrot.slane %v797_v54, %v6686_v5  ;;  %v748_v26 = vsel %vm698_vm4, %v5996_v15, 1e+12  ;;  %v1450_v9 = vcombine.low %v1442_v17, %v1449_v0 }
 0x243   : > { %v773_v18 = vmul.f32 %v748_v26, %v6628_v52  ;;  %v1451_v7 = vcombine.low %v1034_v20, %v6793_v22  ;;  %v1452_v11 = vcombine.low %v1035_v63, %v1043_v57  ;;  %vm701_vm7 = vcmp.gt.f32.partialorder %v6868_v44, 1e-24 }
 0x244   : > { %v6883_v48 = vrot.slane %v1087_v61, %v6686_v5  ;;  %6001 = vrsqrt.f32 %v6868_v44  ;;  %v1051_v14 = vcombine.high %v1043_v57, %v1043_v57  ;;  %v916_v52 = vcombine.high %v6823_v25, %v6823_v25 }
 0x245   : > { %v798_v21 = vmax.f32 %v773_v18, 0.0  ;;  %v1459_v56 = vrot.slane %v1451_v7, %v6686_v5  ;;  %v1466_v42 = vrot.slane %v1452_v11, %v6686_v5  ;;  %v669_v50 = vpop.xlane.xlu0 %668  ;;  %v1102_v22 = vcombine.high %v6871_v2, %v6871_v2  ;;  %1757 = vxpose.xlu1.b32.cont [5/7] (short) (narrow) %v1450_v9, 56 }
 0x246   : > { %v5998_v13 = vpop.eup %5997  ;;  %v1474_v20 = vrot.slane %v1051_v14, %v6686_v5  ;;  %v1325_v31 = vcombine.low %v6810_v6, %v915_v28  ;;  %6003 = vrsqrt.f32 %v669_v50  ;;  %v1326_v41 = vcombine.low %v6823_v25, %v916_v52 }
 0x247   : > { %v1104_v57 = vcombine.high %v798_v21, %v798_v21  ;;  %v6896_v33 = vrot.slane %v798_v21, %v6686_v5  ;;  %v749_v35 = vsel %vm699_vm5, %v5998_v13, 1e+12  ;;  %v1467_v12 = vcombine.low %v1459_v56, %v1466_v42 }
 0x248   : > { %v774_v27 = vmul.f32 %v749_v35, %v6634_v60  ;;  %vm702_vm8 = vcmp.gt.f32.partialorder %v669_v50, 1e-24  ;;  %v933_v36 = vcombine.high %v6757_v58, %v6757_v58  ;;  %v1333_v6 = vrot.slane %v1325_v31, %v6686_v5 }
 0x249   : > { %v6905_v43 = vrot.slane %v1104_v57, %v6686_v5  ;;  %v1342_v24 = vcombine.low %v6746_v53, %v932_v40  ;;  %v6912_v28 = vpop.xlane.xlu1 %671  ;;  %v1050_v60 = vrot.slane %v1036_v34, %v6686_v5  ;;  %v1119_v25 = vcombine.high %v6896_v33, %v6896_v33  ;;  %1758 = vxpose.xlu1.b32.cont [6/7] (short) (narrow) %v1467_v12, 56 }
 0x24a   : > { %v799_v46 = vmax.f32 %v774_v27, 0.0  ;;  %v1340_v51 = vrot.slane %v1326_v41, %v6686_v5  ;;  %v1343_v54 = vcombine.low %v6757_v58, %v933_v36  ;;  %6005 = vrsqrt.f32 %v6912_v28 }
 0x24b   : > { %v6000_v3 = vpop.eup %5999  ;;  %v1350_v17 = vrot.slane %v1342_v24, %v6686_v5  ;;  %v1052_v53 = vcombine.high %v1050_v60, %v1050_v60  ;;  %v1068_v40 = vcombine.high %v6850_v37, %v6850_v37  ;;  %vm703_vm9 = vcmp.gt.f32.partialorder %v6912_v28, 1e-24 }
 0x24c   : > { %v1121_v8 = vcombine.high %v799_v46, %v799_v46  ;;  %v6927_v34 = vrot.slane %v799_v46, %v6686_v5  ;;  %v750_v0 = vsel %vm700_vm6, %v6000_v3, 1e+12  ;;  %v1341_v15 = vcombine.low %v1333_v6, %v1340_v51 }
 0x24d   : > { %v775_v63 = vmul.f32 %v750_v0, %v6640_v4  ;;  %v1357_v58 = vrot.slane %v1343_v54, %v6686_v5  ;;  %v675_v61 = vpop.xlane.xlu0 %674  ;;  %v1475_v26 = vcombine.low %v1050_v60, %v1052_v53  ;;  %v1476_v9 = vcombine.low %v6850_v37, %v1068_v40  ;;  %1759 = vxpose.xlu1.b32.end [7/7] (short) (narrow) %v1474_v20, 56 }
 0x24e   : > { %v6002_v18 = vpop.eup %6001  ;;  %v6935_v7 = vrot.slane %v1121_v8, %v6686_v5  ;;  %v1136_v11 = vcombine.high %v6927_v34, %v6927_v34  ;;  %1725 = vxpose.xlu0.b32.cont [5/7] (short) (narrow) %v1341_v15, 56  ;;  %6007 = vrsqrt.f32 %v675_v61  ;;  %v1069_v52 = vcombine.high %v6853_v19, %v6853_v19 }
 0x24f   : > { %v800_v62 = vmax.f32 %v775_v63, 0.0  ;;  %v751_v4 = vsel %vm701_vm7, %v6002_v18, 1e+12  ;;  %v1358_v14 = vcombine.low %v1350_v17, %v1357_v58  ;;  %v1483_v21 = vrot.slane %v1475_v26, %v6686_v5 }
 0x250   : > { %v6004_v37 = vpop.eup %6003  ;;  %v776_v56 = vmul.f32 %v751_v4, %v6646_v10  ;;  %v1490_v42 = vrot.slane %v1476_v9, %v6686_v5  ;;  %v1493_v13 = vcombine.low %v6856_v47, %v1085_v49  ;;  %v1086_v10 = vcombine.high %v6861_v39, %v6861_v39 }
 0x251   : > { %v1138_v20 = vcombine.high %v800_v62, %v800_v62  ;;  %v6952_v44 = vrot.slane %v800_v62, %v6686_v5  ;;  %v752_v31 = vsel %vm702_vm8, %v6004_v37, 1e+12  ;;  %v678_v57 = vpop.xlane.xlu1 %677  ;;  %vm704_vm10 = vcmp.gt.f32.partialorder %v675_v61, 1e-24 }
 0x252   : > { %v801_v35 = vmax.f32 %v776_v56, 0.0  ;;  %v777_v12 = vmul.f32 %v752_v31, %v6652_v16  ;;  %1726 = vxpose.xlu0.b32.cont [6/7] (short) (narrow) %v1358_v14, 56  ;;  %v1491_v27 = vcombine.low %v1483_v21, %v1490_v42  ;;  %vm705_vm11 = vcmp.gt.f32.partialorder %v678_v57, 1e-24 }
 0x253   : > { %v6959_v41 = vrot.slane %v1138_v20, %v6686_v5  ;;  %6009 = vrsqrt.f32 %v678_v57  ;;  %v1492_v47 = vcombine.low %v6853_v19, %v1069_v52  ;;  %v1153_v49 = vcombine.high %v6952_v44, %v6952_v44 }
 0x254   : > { %v1155_v50 = vcombine.high %v801_v35, %v801_v35  ;;  %v802_v36 = vmax.f32 %v777_v12, 0.0  ;;  %v1507_v6 = vrot.slane %v1493_v13, %v6686_v5  ;;  %v6006_v24 = vpop.eup %6005  ;;  %v1509_v46 = vcombine.low %v6861_v39, %v1086_v10 }
 0x255   : > { %v1500_v16 = vrot.slane %v1492_v47, %v6686_v5  ;;  %v681_v60 = vpop.xlane.xlu0 %680  ;;  %v1510_v51 = vcombine.low %v6871_v2, %v1102_v22  ;;  %v1103_v19 = vcombine.high %v6883_v48, %v6883_v48  ;;  %v1162_v54 = vrot.slane %v801_v35, %v6686_v5 }
 0x256   : > { %v1172_v3 = vcombine.high %v802_v36, %v802_v36  ;;  %v1179_v17 = vrot.slane %v802_v36, %v6686_v5  ;;  %v753_v53 = vsel %vm703_vm9, %v6006_v24, 1e+12  ;;  %1727 = vxpose.xlu0.b32.end [7/7] (short) (narrow) %v1365_v55, 56  ;;  %vm706_vm12 = vcmp.gt.f32.partialorder %v681_v60, 1e-24 }
 0x257   : > { %v778_v39 = vmul.f32 %v753_v53, %v6658_v23  ;;  %v1508_v40 = vcombine.low %v1500_v16, %v1507_v6  ;;  %6011 = vrsqrt.f32 %v681_v60  ;;  %v1517_v8 = vrot.slane %v1509_v46, %v6686_v5 }
 0x258   : > { %v6008_v2 = vpop.eup %6007  ;;  %v6982_v22 = vrot.slane %v1172_v3, %v6686_v5  ;;  %v1524_v0 = vrot.slane %v1510_v51, %v6686_v5  ;;  %v1526_v28 = vcombine.low %v6883_v48, %v1103_v19  ;;  %v1527_v23 = vcombine.low %v6896_v33, %v1119_v25 }
 0x259   : > { %v803_v15 = vmax.f32 %v778_v39, 0.0  ;;  %v754_v63 = vsel %vm704_vm10, %v6008_v2, 1e+12  ;;  %v1154_v32 = vcombine.high %v6959_v41, %v6959_v41  ;;  %v1187_v55 = vcombine.high %v1179_v17, %v1179_v17 }
 0x25a   : > { %v779_v58 = vmul.f32 %v754_v63, %v6664_v29  ;;  %1785 = vxpose.xlu0.b32.start [1/7] (short) (narrow) %v1491_v27, 56  ;;  %v1525_v26 = vcombine.low %v1517_v8, %v1524_v0  ;;  %v1169_v9 = vrot.slane %v1155_v50, %v6686_v5  ;;  %v1541_v61 = vrot.slane %v1527_v23, %v6686_v5 }
 0x25b   : > { %v1189_v18 = vcombine.high %v803_v15, %v803_v15  ;;  %v1196_v48 = vrot.slane %v803_v15, %v6686_v5  ;;  %v1170_v62 = vcombine.high %v1162_v54, %v1162_v54  ;;  %v1584_v21 = vcombine.low %v1154_v32, %v1162_v54 }
 0x25c   : > { %v804_v4 = vmax.f32 %v779_v58, 0.0  ;;  %v1171_v14 = vcombine.high %v1169_v9, %v1169_v9  ;;  %v1120_v33 = vcombine.high %v6905_v43, %v6905_v43  ;;  %v1534_v56 = vrot.slane %v1526_v28, %v6686_v5 }
 0x25d   : > { %v6010_v25 = vpop.eup %6009  ;;  %v1203_v37 = vrot.slane %v1189_v18, %v6686_v5  ;;  %v1204_v29 = vcombine.high %v1196_v48, %v1196_v48  ;;  %v1585_v42 = vcombine.low %v1170_v62, %v1169_v9  ;;  %v1592_v31 = vrot.slane %v1584_v21, %v6686_v5  ;;  %v2320_v62 = vld [vmem:[#allocation7 + $0x38] sm:$0xff] }
 0x25e   : > { %v1206_v52 = vcombine.high %v804_v4, %v804_v4  ;;  %v1213_v13 = vrot.slane %v804_v4, %v6686_v5  ;;  %v755_v20 = vsel %vm705_vm11, %v6010_v25, 1e+12  ;;  %1786 = vxpose.xlu0.b32.cont [2/7] (short) (narrow) %v1508_v40, 56  ;;  %v1543_v12 = vcombine.low %v6905_v43, %v1120_v33  ;;  %v2313_v4 = vld [vmem:[#allocation7] sm:$0xff] }
 0x25f   : > { %v780_v10 = vmul.f32 %v755_v20, %v6670_v38  ;;  %v1599_v35 = vrot.slane %v1585_v42, %v6686_v5  ;;  %v1544_v27 = vcombine.low %v6927_v34, %v1136_v11  ;;  %v1542_v50 = vcombine.low %v1534_v56, %v1541_v61  ;;  %v2332_v56 = vld [vmem:[#allocation7 + $0x98] sm:$0xff] }
 0x260   : > { %v1220_v47 = vrot.slane %v1206_v52, %v6686_v5  ;;  %v1601_v36 = vcombine.low %v1171_v14, %v1179_v17  ;;  %v1602_v57 = vcombine.low %v1187_v55, %v6982_v22  ;;  %v1221_v24 = vcombine.high %v1213_v13, %v1213_v13  ;;  %v2319_v14 = vld [vmem:[#allocation7 + $0x30] sm:$0xff] }
 0x261   : > { %v6012_v6 = vpop.eup %6011  ;;  %v805_v16 = vmax.f32 %v780_v10, 0.0  ;;  %v1600_v46 = vcombine.low %v1592_v31, %v1599_v35  ;;  %v1558_v38 = vrot.slane %v1544_v27, %v6686_v5  ;;  %v1137_v34 = vcombine.high %v6935_v7, %v6935_v7  ;;  %v2325_v35 = vld [vmem:[#allocation7 + $0x60] sm:$0xff] }
 0x262   : > { %v756_v51 = vsel %vm706_vm12, %v6012_v6, 1e+12  ;;  %1787 = vxpose.xlu0.b32.cont [3/7] (short) (narrow) %v1525_v26, 56  ;;  %v1609_v43 = vrot.slane %v1601_v36, %v6686_v5  ;;  %v1616_v19 = vrot.slane %v1602_v57, %v6686_v5  ;;  %v1551_v17 = vrot.slane %v1543_v12, %v6686_v5  ;;  %v2314_v26 = vld [vmem:[#allocation7 + $0x8] sm:$0xff]  ;;  %v2331_v12 = vld [vmem:[#allocation7 + $0x90] sm:$0xff]  ;;  %v2344_v6 = vld [vmem:[#allocation7 + $0xf8] sm:$0xff] }
 0x263   : > { %v1223_v11 = vcombine.high %v805_v16, %v805_v16  ;;  %v1230_v54 = vrot.slane %v805_v16, %v6686_v5  ;;  %v781_v3 = vmul.f32 %v756_v51, %v6676_v45  ;;  %1817 = vxpose.xlu1.b32.start [1/7] (short) (narrow) %v1600_v46, 56  ;;  %v1560_v60 = vcombine.low %v6935_v7, %v1137_v34  ;;  %v2338_v57 = vld [vmem:[#allocation7 + $0xc8] sm:$0xff]  ;;  %v2337_v51 = vld [vmem:[#allocation7 + $0xc0] sm:$0xff] }
 0x264   : > { %v1617_v53 = vcombine.low %v1609_v43, %v1616_v19  ;;  %v1561_v39 = vcombine.low %v6952_v44, %v1153_v49  ;;  %v1188_v40 = vcombine.high %v6982_v22, %v6982_v22  ;;  %v1619_v28 = vcombine.low %v1204_v29, %v1203_v37  ;;  %v2326_v29 = vld [vmem:[#allocation7 + $0x68] sm:$0xff]  ;;  %v2343_v43 = vld [vmem:[#allocation7 + $0xf0] sm:$0xff] }
 0x265   : > { %v1237_v2 = vrot.slane %v1223_v11, %v6686_v5  ;;  %v1238_v8 = vcombine.high %v1230_v54, %v1230_v54  ;;  %v806_v0 = vmax.f32 %v781_v3, 0.0  ;;  %v1559_v45 = vcombine.low %v1551_v17, %v1558_v38  ;;  %v2350_v3 = vld [vmem:[#allocation7 + $0x128] sm:$0x3]  ;;  %v2316_v17 = vld [vmem:[#allocation7 + $0x18] sm:$0xff] }
 0x266   : > { %1788 = vxpose.xlu0.b32.cont [4/7] (short) (narrow) %v1542_v50, 56  ;;  %v1575_v15 = vrot.slane %v1561_v39, %v6686_v5  ;;  %v1618_v63 = vcombine.low %v1188_v40, %v1196_v48  ;;  %v1633_v32 = vrot.slane %v1619_v28, %v6686_v5  ;;  %v1205_v44 = vcombine.high %v1203_v37, %v1203_v37 }
 0x267   : > { %v1240_v23 = vcombine.high %v806_v0, %v806_v0  ;;  %v1247_v7 = vrot.slane %v806_v0, %v6686_v5  ;;  %1818 = vxpose.xlu1.b32.cont [2/7] (short) (narrow) %v1617_v53, 56  ;;  %v1568_v49 = vrot.slane %v1560_v60, %v6686_v5  ;;  %v1636_v55 = vcombine.low %v1221_v24, %v1220_v47  ;;  %v2322_v53 = vld [vmem:[#allocation7 + $0x48] sm:$0xff]  ;;  %v2349_v60 = vld [vmem:[#allocation7 + $0x120] sm:$0x3] }
 0x268   : > { %v1626_v22 = vrot.slane %v1618_v63, %v6686_v5  ;;  %v1222_v58 = vcombine.high %v1220_v47, %v1220_v47  ;;  %v1635_v61 = vcombine.low %v1205_v44, %v1213_v13  ;;  %v1653_v48 = vcombine.low %v1238_v8, %v1237_v2  ;;  %v2324_v8 = vld [vmem:[#allocation7 + $0x58] sm:$0xff] }
 0x269   : > { %v7037_v9 = vrot.slane %v1240_v23, %v6686_v5  ;;  %v1255_v18 = vcombine.high %v1247_v7, %v1247_v7  ;;  %v1650_v33 = vrot.slane %v1636_v55, %v6686_v5  ;;  %v1239_v37 = vcombine.high %v1237_v2, %v1237_v2  ;;  %v2318_v2 = vld [vmem:[#allocation7 + $0x28] sm:$0xff]  ;;  %v7062_v23 = vld [vmem:[#allocation7 + $0x10] sm:$0xff] }
 0x26a   : > { %1789 = vxpose.xlu0.b32.cont [5/7] (short) (narrow) %v1559_v45, 56  ;;  %v1634_v21 = vcombine.low %v1626_v22, %v1633_v32  ;;  %v1652_v25 = vcombine.low %v1222_v58, %v1230_v54  ;;  %v1576_v42 = vcombine.low %v1568_v49, %v1575_v15  ;;  %v1643_v52 = vrot.slane %v1635_v61, %v6686_v5  ;;  %v7066_v32 = vld [vmem:[#allocation7 + $0x78] sm:$0xff]  ;;  %v7071_v55 = vld [vmem:[#allocation7 + $0xa8] sm:$0xff]  ;;  %v7073_v58 = vld [vmem:[#allocation7 + $0x70] sm:$0xff] }
 0x26b   : > { %v1667_v20 = vrot.slane %v1653_v48, %v6686_v5  ;;  %v1670_v13 = vcombine.low %v1255_v18, %v7037_v9  ;;  %v5681_v31 = vpack.c.bf16 %v2320_v62, %v2314_v26  ;;  %v5683_v10 = vpack.c.bf16 %v2319_v14, %v2313_v4  ;;  %v7075_v26 = vld [vmem:[#allocation7 + $0xa0] sm:$0xff]  ;;  %v7079_v18 = vld [vmem:[#allocation7 + $0x108] sm:$0xff]  ;;  %v7082_v4 = vld [vmem:[#allocation7 + $0xd0] sm:$0xff] }
 0x26c   : > { %1819 = vxpose.xlu1.b32.cont [3/7] (short) (narrow) %v1634_v21, 56  ;;  %v1651_v27 = vcombine.low %v1643_v52, %v1650_v33  ;;  %v5685_v47 = vpack.c.bf16 %v2332_v56, %v2326_v29  ;;  %v1660_v50 = vrot.slane %v1652_v25, %v6686_v5  ;;  %v1669_v36 = vcombine.low %v1239_v37, %v1247_v7  ;;  %v7064_v7 = vld [vmem:[#allocation7 + $0x40] sm:$0xff] }
 0x26d   : > { %5861 = vmatprep.subr.bf16.mxu1 %v5681_v31  ;;  %5682 = vmatprep.subr.bf16.mxu0 %v5681_v31  ;;  %v5687_v24 = vpack.c.bf16 %v2331_v12, %v2325_v35  ;;  %v1583_v16 = vrot.slane %v6959_v41, %v6686_v5  ;;  %v1684_v38 = vrot.slane %v1670_v13, %v6686_v5  ;;  %vm2862_vm13 = vcmask 1041408   ;;  %v7084_v14 = vld [vmem:[#allocation7 + $0x100] sm:$0xff] }
 0x26e   : > { %1790 = vxpose.xlu0.b32.cont [6/7] (short) (narrow) %v1576_v42, 56  ;;  %5865 = vmatpush1.bf16.msra.mxu1 %v5683_v10  ;;  %v1668_v46 = vcombine.low %v1660_v50, %v1667_v20  ;;  %v5689_v19 = vpack.c.bf16 %v2344_v6, %v2338_v57  ;;  %v1677_v34 = vrot.slane %v1669_v36, %v6686_v5  ;;  %v2317_v56 = vld [vmem:[#allocation7 + $0x20] sm:$0xff]  ;;  %v2323_v42 = vld [vmem:[#allocation7 + $0x50] sm:$0xff]  ;;  %v7100_v6 = vld [vmem:[#allocation7 + $0x88] sm:$0xff]  ;;  %vm3692_vm1 = vcmask 588800  }
 0x26f   : > { %5684 = vmatpush1.bf16.msra.mxu0 %v5683_v10  ;;  %5862 = vmatprep.subr.bf16.mxu1 %v5685_v47  ;;  %v5691_v11 = vpack.c.bf16 %v2343_v43, %v2337_v51  ;;  %v1256_v41 = vcombine.high %v7037_v9, %v7037_v9  ;;  %v5693_v39 = vpack.c.bf16 %v2322_v53, %v2316_v17  ;;  %v7077_v9 = vld [vmem:[#allocation7 + $0xd8] sm:$0xff]  ;;  %vm4130_vm8 = vcmask 1043456  }
 0x270   : > { %1820 = vxpose.xlu1.b32.cont [4/7] (short) (narrow) %v1651_v27, 56  ;;  %5686 = vmatprep.subr.bf16.mxu0 %v5685_v47  ;;  %v1685_v54 = vcombine.low %v1677_v34, %v1684_v38  ;;  %v5705_v0 = vpack.c.bf16 %v2324_v8, %v2318_v2  ;;  %v5695_v25 = vpack.c.bf16 %v7064_v7, %v7062_v23 }
 0x271   : > { %v1692_v40 = vrot.slane %v1256_v41, %v6686_v5  ;;  %v5697_v37 = vpack.c.bf16 %v7071_v55, %v7066_v32  ;;  %v5699_v29 = vpack.c.bf16 %v7075_v26, %v7073_v58  ;;  %v5701_v31 = vpack.c.bf16 %v7079_v18, %v7077_v9  ;;  %v2329_v58 = vld [vmem:[#allocation7 + $0x80] sm:$0xff]  ;;  %v2335_v18 = vld [vmem:[#allocation7 + $0xb0] sm:$0xff] }
 0x272   : > { %1791 = vxpose.xlu0.b32.end [7/7] (short) (narrow) %v1583_v16, 56  ;;  %5866 = vmatpush1.bf16.msra.mxu1 %v5687_v24  ;;  %v5703_v27 = vpack.c.bf16 %v7084_v14, %v7082_v4  ;;  %v5707_v57 = vpack.c.bf16 %v2323_v42, %v2317_v56 }
 0x273   : > { %5688 = vmatpush1.bf16.msra.mxu0 %v5687_v24  ;;  %5863 = vmatprep.subr.bf16.mxu1 %v5689_v19  ;;  %v7102_v24 = vld [vmem:[#allocation7 + $0xb8] sm:$0xff] }
 0x274   : > { %1821 = vxpose.xlu1.b32.cont [5/7] (short) (narrow) %v1668_v46, 56  ;;  %5690 = vmatprep.subr.bf16.mxu0 %v5689_v19 }
 0x276   : > { %5867 = vmatpush1.bf16.msra.mxu1 %v5691_v11 }
 0x277   : > { %5692 = vmatpush1.bf16.msra.mxu0 %v5691_v11  ;;  %5864 = vmatprep.subr.msk.mxu1 %vm2862_vm13, %v2350_v3 }
 0x278   : > { %1822 = vxpose.xlu1.b32.cont [6/7] (short) (narrow) %v1685_v54, 56  ;;  %5401 = vmatprep.subr.msk.mxu0 %vm2862_vm13, %v2350_v3 }
 0x27a   : > { %5868 = vmatpush1.msk.msra.mxu1 %vm2862_vm13, %v2349_v60 }
 0x27b   : > { %5402 = vmatpush1.msk.msra.mxu0 %vm2862_vm13, %v2349_v60  ;;  %5706 = vmatprep.subr.bf16.mxu1 %v5705_v0  ;;  %v5709_v60 = vpack.c.bf16 %v7102_v24, %v7100_v6 }
 0x27c   : > { %1823 = vxpose.xlu1.b32.end [7/7] (short) (narrow) %v1692_v40, 56  ;;  %5694 = vmatprep.subr.bf16.mxu0 %v5693_v39 }
 0x2b5   : > { %v7055_v28 = vpop.trf.xlu1 }
 0x2b6   : > { %v1986_v45 = vcombine.high %v7055_v28, %v7055_v28 }
 0x2b8   : > { %v7060_v15 = vrot.slane %v1986_v45, %v6686_v5 }
 0x2b9   : > { %v1770_v63 = vpop.trf.xlu1 }
 0x2ba   : > { %v2002_v44 = vcombine.high %v7060_v15, %v7060_v15  ;;  %v2003_v49 = vcombine.high %v1770_v63, %v1770_v63  ;;  %v2010_v22 = vrot.slane %v1770_v63, %v6686_v5 }
 0x2bc   : > { %v2017_v61 = vrot.slane %v2003_v49, %v6686_v5  ;;  %v2018_v48 = vcombine.high %v2010_v22, %v2010_v22  ;;  %v2506_v62 = vcombine.low %v2002_v44, %v2010_v22 }
 0x2bd   : > { %v1771_v33 = vpop.trf.xlu1 }
 0x2be   : > { %v1737_v21 = vpop.trf.xlu0  ;;  %v2507_v13 = vcombine.low %v2018_v48, %v2017_v61  ;;  %v2019_v10 = vcombine.high %v2017_v61, %v2017_v61  ;;  %v2020_v35 = vcombine.high %v1771_v33, %v1771_v33  ;;  %v2027_v12 = vrot.slane %v1771_v33, %v6686_v5 }
 0x2bf   : > { %v1877_v52 = vcombine.high %v1737_v21, %v1737_v21  ;;  %v1884_v20 = vrot.slane %v1737_v21, %v6686_v5  ;;  %v2514_v36 = vrot.slane %v2506_v62, %v6686_v5 }
 0x2c0   : > { %v2521_v16 = vrot.slane %v2507_v13, %v6686_v5  ;;  %v2034_v38 = vrot.slane %v2020_v35, %v6686_v5  ;;  %v2035_v51 = vcombine.high %v2027_v12, %v2027_v12  ;;  %v2523_v43 = vcombine.low %v2019_v10, %v2027_v12 }
 0x2c1   : > { %v1891_v47 = vrot.slane %v1877_v52, %v6686_v5  ;;  %v1892_v50 = vcombine.high %v1884_v20, %v1884_v20  ;;  %v1772_v19 = vpop.trf.xlu1 }
 0x2c2   : > { %v1738_v46 = vpop.trf.xlu0  ;;  %v2524_v3 = vcombine.low %v2035_v51, %v2034_v38  ;;  %v2036_v17 = vcombine.high %v2034_v38, %v2034_v38  ;;  %v2037_v53 = vcombine.high %v1772_v19, %v1772_v19  ;;  %v2531_v8 = vrot.slane %v2523_v43, %v6686_v5 }
 0x2c3   : > { %v1893_v34 = vcombine.high %v1891_v47, %v1891_v47  ;;  %v2387_v11 = vcombine.low %v1884_v20, %v1892_v50  ;;  %v1894_v54 = vcombine.high %v1738_v46, %v1738_v46  ;;  %v1901_v41 = vrot.slane %v1738_v46, %v6686_v5 }
 0x2c4   : > { %v2044_v63 = vrot.slane %v1772_v19, %v6686_v5  ;;  %v2051_v44 = vrot.slane %v2037_v53, %v6686_v5  ;;  %v7114_v49 = vcombine.low %v2514_v36, %v2521_v16  ;;  %v2538_v33 = vrot.slane %v2524_v3, %v6686_v5 }
 0x2c5   : > { %v2388_v39 = vcombine.low %v1891_v47, %v1893_v34  ;;  %v1908_v40 = vrot.slane %v1894_v54, %v6686_v5  ;;  %v1909_v2 = vcombine.high %v1901_v41, %v1901_v41  ;;  %v2395_v0 = vrot.slane %v2387_v11, %v6686_v5  ;;  %v1773_v21 = vpop.trf.xlu1 }
 0x2c6   : > { %v1739_v45 = vpop.trf.xlu0  ;;  %v2052_v42 = vcombine.high %v2044_v63, %v2044_v63  ;;  %v7119_v52 = vcombine.low %v2036_v17, %v2044_v63  ;;  %5410 = vmatmul.mubr.msk.f32.vlgmr.msra.gmra.mrb[0].mxu1 %vm606_vm2, %v7114_v49  ;;  %v2053_v35 = vcombine.high %v2051_v44, %v2051_v44  ;;  %v2054_v16 = vcombine.high %v1773_v21, %v1773_v21 }
 0x2c7   : > { %v2402_v22 = vrot.slane %v2388_v39, %v6686_v5  ;;  %v1910_v61 = vcombine.high %v1908_v40, %v1908_v40  ;;  %v2404_v48 = vcombine.low %v1901_v41, %v1909_v2  ;;  %v1911_v62 = vcombine.high %v1739_v45, %v1739_v45  ;;  %2993 = vmatprep.mubr.f32.mxu1 %v9072_v1 }
 0x2c8   : > { %v1918_v56 = vrot.slane %v1739_v45, %v6686_v5  ;;  %v2541_v50 = vcombine.low %v2052_v42, %v2051_v44  ;;  %5708 = vmatpush1.bf16.msra.mxu1 %v5707_v57  ;;  %v2548_v38 = vrot.slane %v7119_v52, %v6686_v5  ;;  %v2061_v11 = vrot.slane %v1773_v21, %v6686_v5 }
 0x2c9   : > { %v7123_v20 = vcombine.low %v2395_v0, %v2402_v22  ;;  %v2405_v13 = vcombine.low %v1908_v40, %v1910_v61  ;;  %v1925_v10 = vrot.slane %v1911_v62, %v6686_v5  ;;  %v2412_v12 = vrot.slane %v2404_v48, %v6686_v5  ;;  %v1774_v53 = vpop.trf.xlu1  ;;  %5710 = vmatprep.subr.bf16.mxu1 %v5709_v60 }
 0x2ca   : > { %v1926_v47 = vcombine.high %v1918_v56, %v1918_v56  ;;  %v1740_v36 = vpop.trf.xlu0  ;;  %v2068_v54 = vrot.slane %v2054_v16, %v6686_v5  ;;  %v7138_v17 = vcombine.low %v2531_v8, %v2538_v33  ;;  %v2555_v40 = vrot.slane %v2541_v50, %v6686_v5 }
 0x2cb   : > { %v1927_v46 = vcombine.high %v1925_v10, %v1925_v10  ;;  %v1928_v51 = vcombine.high %v1740_v36, %v1740_v36  ;;  %v1935_v43 = vrot.slane %v1740_v36, %v6686_v5  ;;  %5403 = vmatmul.mubr.msk.f32.vlgmr.msra.gmra.mrb[50].mxu0 %vm606_vm2, %v7123_v20  ;;  %v2419_v19 = vrot.slane %v2405_v13, %v6686_v5 }
 0x2cc   : > { %v2421_v34 = vcombine.low %v1918_v56, %v1926_v47  ;;  %2951 = vmatprep.mubr.f32.mxu0 %v9072_v1  ;;  %5696 = vmatpush1.bf16.msra.mxu0 %v5695_v25  ;;  %v2069_v2 = vcombine.high %v2061_v11, %v2061_v11  ;;  %v2557_v0 = vcombine.low %v2053_v35, %v2061_v11  ;;  %v2348_v47 = vld [vmem:[#allocation7 + $0x118] sm:$0xff] }
 0x2cd   : > { %v2422_v57 = vcombine.low %v1925_v10, %v1927_v46  ;;  %v1942_v41 = vrot.slane %v1928_v51, %v6686_v5  ;;  %v1943_v3 = vcombine.high %v1935_v43, %v1935_v43  ;;  %5698 = vmatprep.subr.bf16.mxu0 %v5697_v37  ;;  %5411 = vmatmul.mubr.msk.f32.gmra.mrb[2].mxu1 %vm606_vm2, %v7138_v17  ;;  %v2352_v11 = vld [vmem:[#allocation7 + $0x138] sm:$0x3] }
 0x2ce   : > { %v2429_v39 = vrot.slane %v2421_v34, %v6686_v5  ;;  %v1741_v45 = vpop.trf.xlu0  ;;  %v2070_v23 = vcombine.high %v2068_v54, %v2068_v54  ;;  %v2558_v25 = vcombine.low %v2069_v2, %v2068_v54  ;;  %v2071_v61 = vcombine.high %v1774_v53, %v1774_v53  ;;  %2999 = vmatprep.mubr.f32.mxu1 %v9072_v1  ;;  %v1775_v34 = vpop.trf.xlu1 }
 0x2cf   : > { %v2436_v63 = vrot.slane %v2422_v57, %v6686_v5  ;;  %v1944_v8 = vcombine.high %v1942_v41, %v1942_v41  ;;  %v1945_v44 = vcombine.high %v1741_v45, %v1741_v45  ;;  %v2438_v7 = vcombine.low %v1935_v43, %v1943_v3 }
 0x2d0   : > { %v1952_v22 = vrot.slane %v1741_v45, %v6686_v5  ;;  %v2565_v62 = vrot.slane %v2557_v0, %v6686_v5  ;;  %v2078_v55 = vrot.slane %v1774_v53, %v6686_v5  ;;  %5700 = vmatpush1.bf16.msra.mxu0 %v5699_v29  ;;  %v2572_v37 = vrot.slane %v2558_v25, %v6686_v5 }
 0x2d1   : > { %v2439_v48 = vcombine.low %v1942_v41, %v1944_v8  ;;  %v1959_v32 = vrot.slane %v1945_v44, %v6686_v5  ;;  %v7161_v33 = vrot.slane %v2071_v61, %v6686_v5  ;;  %v7163_v56 = vcombine.low %v2412_v12, %v2419_v19  ;;  %5702 = vmatprep.subr.bf16.mxu0 %v5701_v31  ;;  %v2342_v31 = vld [vmem:[#allocation7 + $0xe8] sm:$0xff] }
 0x2d2   : > { %v1960_v21 = vcombine.high %v1952_v22, %v1952_v22  ;;  %v1742_v42 = vpop.trf.xlu0  ;;  %v2086_v10 = vcombine.high %v2078_v55, %v2078_v55  ;;  %v2574_v35 = vcombine.low %v2070_v23, %v2078_v55  ;;  %v7174_v29 = vcombine.low %v2548_v38, %v2555_v40  ;;  %v2341_v40 = vld [vmem:[#allocation7 + $0xe0] sm:$0xff] }
 0x2d3   : > { %v2453_v52 = vrot.slane %v2439_v48, %v6686_v5  ;;  %v1961_v13 = vcombine.high %v1959_v32, %v1959_v32  ;;  %5404 = vmatmul.mubr.msk.f32.gmra.mrb[52].mxu0 %vm606_vm2, %v7163_v56  ;;  %v1962_v12 = vcombine.high %v1742_v42, %v1742_v42  ;;  %v1969_v9 = vrot.slane %v1742_v42, %v6686_v5 }
 0x2d4   : > { %v2455_v26 = vcombine.low %v1952_v22, %v1960_v21  ;;  %v2446_v50 = vrot.slane %v2438_v7, %v6686_v5  ;;  %v2575_v16 = vcombine.low %v2086_v10, %v7161_v33  ;;  %2957 = vmatprep.mubr.f32.mxu0 %v9072_v1  ;;  %v7180_v6 = vcombine.low %v2429_v39, %v2436_v63  ;;  %v2351_v7 = vld [vmem:[#allocation7 + $0x130] sm:$0x3]  ;;  %v2354_v10 = vld [vmem:[#allocation7 + $0x148] sm:$0x3] }
 0x2d5   : > { %v2456_v36 = vcombine.low %v1959_v32, %v1961_v13  ;;  %v2582_v24 = vrot.slane %v2574_v35, %v6686_v5  ;;  %5412 = vmatmul.mubr.msk.f32.gmra.mrb[4].mxu1 %vm606_vm2, %v7174_v29  ;;  %v1976_v60 = vrot.slane %v1962_v12, %v6686_v5  ;;  %v1977_v46 = vcombine.high %v1969_v9, %v1969_v9 }
 0x2d6   : > { %v7186_v38 = vcombine.low %v2565_v62, %v2572_v37  ;;  %v1743_v51 = vpop.trf.xlu0  ;;  %v1993_v43 = vrot.slane %v7055_v28, %v6686_v5  ;;  %v2589_v19 = vrot.slane %v2575_v16, %v6686_v5  ;;  %3005 = vmatprep.mubr.f32.mxu1 %v9072_v1  ;;  %v5711_v54 = vpack.c.bf16 %v2335_v18, %v2329_v58  ;;  %v2347_v28 = vld [vmem:[#allocation7 + $0x110] sm:$0xff]  ;;  %v2353_v18 = vld [vmem:[#allocation7 + $0x140] sm:$0x3] }
 0x2d7   : > { %v5713_v57 = vpack.c.bf16 %v2348_v47, %v2342_v31  ;;  %v2463_v41 = vrot.slane %v2455_v26, %v6686_v5  ;;  %v2470_v3 = vrot.slane %v2456_v36, %v6686_v5  ;;  %v1978_v53 = vcombine.high %v1976_v60, %v1976_v60  ;;  %5405 = vmatmul.mubr.msk.f32.gmra.mrb[54].mxu0 %vm606_vm2, %v7180_v6 }
 0x2d8   : > { %v7196_v39 = vcombine.low %v2446_v50, %v2453_v52  ;;  %v2472_v2 = vcombine.low %v1969_v9, %v1977_v46  ;;  %2963 = vmatprep.mubr.f32.mxu0 %v9072_v1  ;;  %v1985_v0 = vrot.slane %v1743_v51, %v6686_v5  ;;  %v2087_v45 = vcombine.high %v7161_v33, %v7161_v33 }
 0x2d9   : > { %5704 = vmatpush1.bf16.msra.mxu0 %v5703_v27  ;;  %v2473_v63 = vcombine.low %v1976_v60, %v1978_v53  ;;  %5413 = vmatmul.mubr.msk.f32.gmra.mrb[6].mxu1 %vm606_vm2, %v7186_v38  ;;  %v7207_v8 = vcombine.low %v2582_v24, %v2589_v19  ;;  %v2094_v44 = vrot.slane %v1775_v34, %v6686_v5 }
 0x2da   : > { %v1801_v23 = vpop.trf.xlu0  ;;  %5428 = vmatprep.subr.msk.mxu0 %vm2862_vm13, %v2352_v11  ;;  %3011 = vmatprep.mubr.f32.mxu1 %v9072_v1  ;;  %v5715_v4 = vpack.c.bf16 %v2347_v28, %v2341_v40  ;;  %v2001_v14 = vcombine.high %v1993_v43, %v1993_v43  ;;  %v7216_v61 = vcombine.low %v2463_v41, %v2470_v3 }
 0x2db   : > { %v2095_v25 = vcombine.high %v1801_v23, %v1801_v23  ;;  %v2102_v22 = vrot.slane %v1801_v23, %v6686_v5  ;;  %5712 = vmatpush1.bf16.msra.mxu1 %v5711_v54  ;;  %v2487_v27 = vrot.slane %v2473_v63, %v6686_v5  ;;  %5406 = vmatmul.mubr.msk.f32.gmra.mrb[56].mxu0 %vm606_vm2, %v7196_v39 }
 0x2dc   : > { %5714 = vmatprep.subr.bf16.mxu1 %v5713_v57  ;;  %2969 = vmatprep.mubr.f32.mxu0 %v9072_v1  ;;  %v2480_v32 = vrot.slane %v2472_v2, %v6686_v5  ;;  %v2489_v55 = vcombine.low %v1985_v0, %v1993_v43  ;;  %v2591_v37 = vcombine.low %v2087_v45, %v2094_v44 }
 0x2dd   : > { %v2109_v48 = vrot.slane %v2095_v25, %v6686_v5  ;;  %v2110_v62 = vcombine.high %v2102_v22, %v2102_v22  ;;  %5429 = vmatpush1.msk.msra.mxu0 %vm2862_vm13, %v2351_v7  ;;  %5414 = vmatmul.mubr.msk.f32.gmra.mrb[8].mxu1 %vm606_vm2, %v7207_v8  ;;  %v2490_v35 = vcombine.low %v2001_v14, %v7060_v15 }
 0x2de   : > { %v1802_v21 = vpop.trf.xlu0  ;;  %3017 = vmatprep.mubr.f32.mxu1 %v9072_v1  ;;  %v7229_v58 = vcombine.low %v2480_v32, %v2487_v27  ;;  %v2497_v31 = vrot.slane %v2489_v55, %v6686_v5  ;;  %v2599_v47 = vrot.slane %v2591_v37, %v6686_v5 }
 0x2df   : > { %v2111_v33 = vcombine.high %v2109_v48, %v2109_v48  ;;  %v2592_v42 = vcombine.low %v2102_v22, %v2110_v62  ;;  %v2112_v52 = vcombine.high %v1802_v21, %v1802_v21  ;;  %v2119_v13 = vrot.slane %v1802_v21, %v6686_v5  ;;  %5407 = vmatmul.mubr.msk.f32.gmra.mrb[58].mxu0 %vm606_vm2, %v7216_v61 }
 0x2e0   : > { %5716 = vmatpush1.bf16.msra.mxu1 %v5715_v4  ;;  %2975 = vmatprep.mubr.f32.mxu0 %v9072_v1  ;;  %v2504_v60 = vrot.slane %v2490_v35, %v6686_v5 }
 0x2e1   : > { %v2606_v26 = vrot.slane %v2592_v42, %v6686_v5  ;;  %v2126_v12 = vrot.slane %v2112_v52, %v6686_v5  ;;  %v2127_v9 = vcombine.high %v2119_v13, %v2119_v13  ;;  %v2608_v50 = vcombine.low %v2109_v48, %v2111_v33  ;;  %5455 = vmatprep.subr.msk.mxu1 %vm2862_vm13, %v2354_v10 }
 0x2e2   : > { %v1803_v15 = vpop.trf.xlu0  ;;  %v7247_v11 = vcombine.low %v2497_v31, %v2504_v60 }
 0x2e3   : > { %v2128_v36 = vcombine.high %v2126_v12, %v2126_v12  ;;  %v2609_v16 = vcombine.low %v2119_v13, %v2127_v9  ;;  %v2129_v24 = vcombine.high %v1803_v15, %v1803_v15  ;;  %5408 = vmatmul.mubr.msk.f32.gmra.mrb[60].mxu0 %vm606_vm2, %v7229_v58  ;;  %v2136_v46 = vrot.slane %v1803_v15, %v6686_v5 }
 0x2e4   : > { %v7241_v51 = vcombine.low %v2599_v47, %v2606_v26  ;;  %v1833_v43 = vpop.trf.xlu1  ;;  %5456 = vmatpush1.msk.msra.mxu1 %vm2862_vm13, %v2353_v18  ;;  %2981 = vmatprep.mubr.f32.mxu0 %v9072_v1  ;;  %v2616_v54 = vrot.slane %v2608_v50, %v6686_v5  ;;  %vm4054_vm13 = vcmask 31744  }
 0x2e5   : > { %v2623_v19 = vrot.slane %v2609_v16, %v6686_v5  ;;  %v2143_v34 = vrot.slane %v2129_v24, %v6686_v5  ;;  %v2625_v57 = vcombine.low %v2126_v12, %v2128_v36  ;;  %v2144_v41 = vcombine.high %v2136_v46, %v2136_v46 }
 0x2e6   : > { %5415 = vmatmul.mubr.msk.f32.gmra.mrb[10].mxu1 %vm606_vm2, %v7241_v51  ;;  %v1804_v3 = vpop.trf.xlu0  ;;  %v2204_v32 = vcombine.high %v1833_v43, %v1833_v43  ;;  %v2211_v36 = vrot.slane %v1833_v43, %v6686_v5 }
 0x2e7   : > { %v2145_v53 = vcombine.high %v2143_v34, %v2143_v34  ;;  %v2146_v40 = vcombine.high %v1804_v3, %v1804_v3  ;;  %v2153_v28 = vrot.slane %v1804_v3, %v6686_v5  ;;  %3023 = vmatprep.mubr.f32.mxu1 %v9072_v1  ;;  %v2626_v2 = vcombine.low %v2136_v46, %v2144_v41 }
 0x2e8   : > { %5409 = vmatmul.mubr.msk.f32.gmra.mrb[62].mxu0 %vm606_vm2, %v7247_v11  ;;  %v7256_v0 = vcombine.low %v2616_v54, %v2623_v19  ;;  %v1834_v45 = vpop.trf.xlu1  ;;  %v2633_v23 = vrot.slane %v2625_v57, %v6686_v5  ;;  %v2218_v31 = vrot.slane %v2204_v32, %v6686_v5  ;;  %v2219_v43 = vcombine.high %v2211_v36, %v2211_v36 }
 0x2e9   : > { %3160 = vmatprep.mubr.f32.mxu0 %v9072_v1  ;;  %v2160_v63 = vrot.slane %v2146_v40, %v6686_v5  ;;  %v2161_v44 = vcombine.high %v2153_v28, %v2153_v28  ;;  %v2640_v7 = vrot.slane %v2626_v2, %v6686_v5  ;;  %v2642_v25 = vcombine.low %v2143_v34, %v2145_v53 }
 0x2ea   : > { %5416 = vmatmul.mubr.msk.f32.gmra.mrb[12].mxu1 %vm606_vm2, %v7256_v0  ;;  %v1805_v22 = vpop.trf.xlu0  ;;  %v2221_v10 = vcombine.high %v1834_v45, %v1834_v45  ;;  %v2220_v53 = vcombine.high %v2218_v31, %v2218_v31  ;;  %v2228_v40 = vrot.slane %v1834_v45, %v6686_v5 }
 0x2eb   : > { %v2162_v4 = vcombine.high %v2160_v63, %v2160_v63  ;;  %v2643_v14 = vcombine.low %v2153_v28, %v2161_v44  ;;  %v2163_v27 = vcombine.high %v1805_v22, %v1805_v22  ;;  %3029 = vmatprep.mubr.f32.mxu1 %v9072_v1  ;;  %v2170_v48 = vrot.slane %v1805_v22, %v6686_v5 }
 0x2ec   : > { %5430 = vmatmul.mubr.msk.f32.vlgmr.msra.gmra.mrb[64].mxu0 %vm606_vm2, %v7123_v20  ;;  %v7268_v62 = vcombine.low %v2633_v23, %v2640_v7  ;;  %v1835_v55 = vpop.trf.xlu1  ;;  %v2650_v33 = vrot.slane %v2642_v25, %v6686_v5  ;;  %v2235_v19 = vrot.slane %v2221_v10, %v6686_v5  ;;  %v2236_v23 = vcombine.high %v2228_v40, %v2228_v40 }
 0x2ed   : > { %v2657_v37 = vrot.slane %v2643_v14, %v6686_v5  ;;  %3166 = vmatprep.mubr.f32.mxu0 %v9072_v1  ;;  %v2177_v21 = vrot.slane %v2163_v27, %v6686_v5  ;;  %v2659_v42 = vcombine.low %v2160_v63, %v2162_v4  ;;  %v2178_v52 = vcombine.high %v2170_v48, %v2170_v48 }
 0x2ee   : > { %5417 = vmatmul.mubr.msk.f32.gmra.mrb[14].mxu1 %vm606_vm2, %v7268_v62  ;;  %v1806_v13 = vpop.trf.xlu0  ;;  %v2238_v41 = vcombine.high %v1835_v55, %v1835_v55  ;;  %v2237_v7 = vcombine.high %v2235_v19, %v2235_v19  ;;  %v2245_v25 = vrot.slane %v1835_v55, %v6686_v5  ;;  %v2727_v55 = vcombine.low %v2236_v23, %v2235_v19 }
 0x2ef   : > { %v2179_v35 = vcombine.high %v2177_v21, %v2177_v21  ;;  %v2180_v26 = vcombine.high %v1806_v13, %v1806_v13  ;;  %v2187_v12 = vrot.slane %v1806_v13, %v6686_v5  ;;  %3035 = vmatprep.mubr.f32.mxu1 %v9072_v1  ;;  %v2660_v9 = vcombine.low %v2170_v48, %v2178_v52 }
 0x2f0   : > { %5431 = vmatmul.mubr.msk.f32.gmra.mrb[66].mxu0 %vm606_vm2, %v7163_v56  ;;  %v7280_v18 = vcombine.low %v2650_v33, %v2657_v37  ;;  %v1836_v16 = vpop.trf.xlu1  ;;  %v2667_v24 = vrot.slane %v2659_v42, %v6686_v5  ;;  %v2252_v45 = vrot.slane %v2238_v41, %v6686_v5  ;;  %v2710_v48 = vcombine.low %v2219_v43, %v2218_v31 }
 0x2f1   : > { %v2676_v47 = vcombine.low %v2177_v21, %v2179_v35  ;;  %3172 = vmatprep.mubr.f32.mxu0 %v9072_v1  ;;  %v2194_v50 = vrot.slane %v2180_v26, %v6686_v5  ;;  %v2195_v15 = vcombine.high %v2187_v12, %v2187_v12  ;;  %v2674_v60 = vrot.slane %v2660_v9, %v6686_v5 }
 0x2f2   : > { %5418 = vmatmul.mubr.msk.f32.gmra.mrb[16].mxu1 %vm606_vm2, %v7280_v18  ;;  %v1807_v46 = vpop.trf.xlu0  ;;  %v2255_v4 = vcombine.high %v1836_v16, %v1836_v16  ;;  %v2711_v37 = vcombine.low %v2220_v53, %v2228_v40  ;;  %v2253_v21 = vcombine.high %v2245_v25, %v2245_v25  ;;  %v2728_v33 = vcombine.low %v2237_v7, %v2245_v25 }
 0x2f3   : > { %v2196_v34 = vcombine.high %v2194_v50, %v2194_v50  ;;  %v2677_v54 = vcombine.low %v2187_v12, %v2195_v15  ;;  %v2203_v57 = vrot.slane %v1807_v46, %v6686_v5  ;;  %3041 = vmatprep.mubr.f32.mxu1 %v9072_v1  ;;  %v7295_v3 = vcombine.low %v2667_v24, %v2674_v60 }
 0x2f4   : > { %5432 = vmatmul.mubr.msk.f32.gmra.mrb[68].mxu0 %vm606_vm2, %v7180_v6  ;;  %v2684_v28 = vrot.slane %v2676_v47, %v6686_v5  ;;  %v1837_v14 = vpop.trf.xlu1  ;;  %v2254_v42 = vcombine.high %v2252_v45, %v2252_v45  ;;  %v2262_v52 = vrot.slane %v1836_v16, %v6686_v5  ;;  %v2269_v13 = vrot.slane %v2255_v4, %v6686_v5 }
 0x2f5   : > { %v2691_v2 = vrot.slane %v2677_v54, %v6686_v5  ;;  %v2693_v63 = vcombine.low %v2194_v50, %v2196_v34  ;;  %3178 = vmatprep.mubr.f32.mxu0 %v9072_v1  ;;  %v2694_v44 = vcombine.low %v2203_v57, %v2211_v36  ;;  %v2718_v10 = vrot.slane %v2710_v48, %v6686_v5 }
 0x2f6   : > { %5419 = vmatmul.mubr.msk.f32.gmra.mrb[18].mxu1 %vm606_vm2, %v7295_v3  ;;  %v2725_v26 = vrot.slane %v2711_v37, %v6686_v5  ;;  %v2272_v12 = vcombine.high %v1837_v14, %v1837_v14  ;;  %v2735_v31 = vrot.slane %v2727_v55, %v6686_v5  ;;  %v2742_v47 = vrot.slane %v2728_v33, %v6686_v5 }
 0x2f7   : > { %3047 = vmatprep.mubr.f32.mxu1 %v9072_v1  ;;  %v7305_v22 = vcombine.low %v2684_v28, %v2691_v2  ;;  %v2701_v27 = vrot.slane %v2693_v63, %v6686_v5  ;;  %v2708_v32 = vrot.slane %v2694_v44, %v6686_v5  ;;  %v2744_v50 = vcombine.low %v2253_v21, %v2252_v45 }
 0x2f8   : > { %5433 = vmatmul.mubr.msk.f32.gmra.mrb[70].mxu0 %vm606_vm2, %v7196_v39  ;;  %v1838_v9 = vpop.trf.xlu1  ;;  %v2270_v15 = vcombine.high %v2262_v52, %v2262_v52  ;;  %v2745_v36 = vcombine.low %v2254_v42, %v2262_v52  ;;  %v2271_v16 = vcombine.high %v2269_v13, %v2269_v13  ;;  %v2279_v24 = vrot.slane %v1837_v14, %v6686_v5 }
 0x2f9   : > { %3184 = vmatprep.mubr.f32.mxu0 %v9072_v1  ;;  %v7319_v35 = vcombine.low %v2701_v27, %v2708_v32  ;;  %v7333_v60 = vcombine.low %v2718_v10, %v2725_v26  ;;  %v2286_v46 = vrot.slane %v2272_v12, %v6686_v5  ;;  %v2289_v19 = vcombine.high %v1838_v9, %v1838_v9 }
 0x2fa   : > { %5420 = vmatmul.mubr.msk.f32.gmra.mrb[20].mxu1 %vm606_vm2, %v7305_v22  ;;  %v2752_v34 = vrot.slane %v2744_v50, %v6686_v5  ;;  %v2759_v54 = vrot.slane %v2745_v36, %v6686_v5  ;;  %v2761_v57 = vcombine.low %v2270_v15, %v2269_v13  ;;  %v2762_v41 = vcombine.low %v2271_v16, %v2279_v24 }
 0x2fb   : > { %3053 = vmatprep.mubr.f32.mxu1 %v9072_v1  ;;  %v7342_v43 = vcombine.low %v2735_v31, %v2742_v47  ;;  %v2287_v53 = vcombine.high %v2279_v24, %v2279_v24  ;;  %v2288_v40 = vcombine.high %v2286_v46, %v2286_v46  ;;  %v2296_v28 = vrot.slane %v1838_v9, %v6686_v5 }
 0x2fc   : > { %5434 = vmatmul.mubr.msk.f32.gmra.mrb[72].mxu0 %vm606_vm2, %v7216_v61  ;;  %v2303_v2 = vrot.slane %v2289_v19, %v6686_v5  ;;  %v1839_v63 = vpop.trf.xlu1  ;;  %v2769_v44 = vrot.slane %v2761_v57, %v6686_v5  ;;  %v2776_v23 = vrot.slane %v2762_v41, %v6686_v5  ;;  %v7354_v25 = vcombine.low %v2752_v34, %v2759_v54 }
 0x2fd   : > { %3190 = vmatprep.mubr.f32.mxu0 %v9072_v1  ;;  %v2304_v7 = vcombine.high %v2296_v28, %v2296_v28  ;;  %v2778_v45 = vcombine.low %v2287_v53, %v2286_v46  ;;  %v2779_v4 = vcombine.low %v2288_v40, %v2296_v28  ;;  %v2312_v27 = vrot.slane %v1839_v63, %v6686_v5 }
 0x2fe   : > { %5421 = vmatmul.mubr.msk.f32.gmra.mrb[22].mxu1 %vm606_vm2, %v7319_v35  ;;  %v2305_v14 = vcombine.high %v2303_v2, %v2303_v2  ;;  %v7367_v21 = vcombine.low %v2769_v44, %v2776_v23 }
 0x2ff   : > { %3059 = vmatprep.mubr.f32.mxu1 %v9072_v1  ;;  %v2795_v48 = vcombine.low %v2304_v7, %v2303_v2  ;;  %v2786_v32 = vrot.slane %v2778_v45, %v6686_v5  ;;  %v2793_v37 = vrot.slane %v2779_v4, %v6686_v5 }
 0x300   : > { %5435 = vmatmul.mubr.msk.f32.gmra.mrb[74].mxu0 %vm606_vm2, %v7229_v58  ;;  %v2796_v55 = vcombine.low %v2305_v14, %v2312_v27 }
 0x301   : > { %3196 = vmatprep.mubr.f32.mxu0 %v9072_v1  ;;  %v2803_v33 = vrot.slane %v2795_v48, %v6686_v5  ;;  %v7377_v52 = vcombine.low %v2786_v32, %v2793_v37 }
 0x302   : > { %5422 = vmatmul.mubr.msk.f32.gmra.mrb[24].mxu1 %vm606_vm2, %v7333_v60  ;;  %v2810_v42 = vrot.slane %v2796_v55, %v6686_v5  ;;  %v7505_v5 = vand.u32 127, %v836_v59 }
 0x303   : > { %3065 = vmatprep.mubr.f32.mxu1 %v9072_v1 }
 0x304   : > { %5436 = vmatmul.mubr.msk.f32.gmra.mrb[76].mxu0 %vm606_vm2, %v7247_v11  ;;  %v7383_v13 = vcombine.low %v2803_v33, %v2810_v42  ;;  %v2367_v42 = vsub.s32 2, %v6683_v30 }
 0x305   : > { %3202 = vmatprep.mubr.f32.mxu0 %v9072_v1 }
 0x306   : > { %5423 = vmatmul.mubr.msk.f32.gmra.mrb[26].mxu1 %vm606_vm2, %v7342_v43 }
 0x307   : > { %3071 = vmatprep.mubr.f32.mxu1 %v9072_v1 }
 0x308   : > { %5437 = vmatmul.mubr.msk.f32.gmra.mrb[78].mxu0 %vm606_vm2, %v7114_v49 }
 0x309   : > { %3208 = vmatprep.mubr.f32.mxu0 %v9072_v1 }
 0x30a   : > { %5424 = vmatmul.mubr.msk.f32.gmra.mrb[28].mxu1 %vm606_vm2, %v7354_v25 }
 0x30b   : > { %3077 = vmatprep.mubr.f32.mxu1 %v9072_v1 }
 0x30c   : > { %5438 = vmatmul.mubr.msk.f32.gmra.mrb[80].mxu0 %vm606_vm2, %v7138_v17 }
 0x30d   : > { %3214 = vmatprep.mubr.f32.mxu0 %v9072_v1 }
 0x30e   : > { %5425 = vmatmul.mubr.msk.f32.gmra.mrb[30].mxu1 %vm606_vm2, %v7367_v21 }
 0x30f   : > { %3083 = vmatprep.mubr.f32.mxu1 %v9072_v1 }
 0x310   : > { %5439 = vmatmul.mubr.msk.f32.gmra.mrb[82].mxu0 %vm606_vm2, %v7174_v29 }
 0x311   : > { %3220 = vmatprep.mubr.f32.mxu0 %v9072_v1 }
 0x312   : > { %5426 = vmatmul.mubr.msk.f32.gmra.mrb[32].mxu1 %vm606_vm2, %v7377_v52 }
 0x313   : > { %3089 = vmatprep.mubr.f32.mxu1 %v9072_v1 }
 0x314   : > { %5440 = vmatmul.mubr.msk.f32.gmra.mrb[84].mxu0 %vm606_vm2, %v7186_v38 }
 0x315   : > { %3226 = vmatprep.mubr.f32.mxu0 %v9072_v1 }
 0x316   : > { %5427 = vmatmul.mubr.msk.f32.gmra.mrb[34].mxu1 %vm606_vm2, %v7383_v13 }
 0x317   : > { %3375 = vmatprep.mubr.f32.mxu1 %v9072_v1 }
 0x318   : > { %5441 = vmatmul.mubr.msk.f32.gmra.mrb[86].mxu0 %vm606_vm2, %v7207_v8 }
 0x319   : > { %3232 = vmatprep.mubr.f32.mxu0 %v9072_v1 }
 0x31a   : > { %5457 = vmatmul.mubr.msk.f32.vlgmr.msra.gmra.mrb[36].mxu1 %vm606_vm2, %v7123_v20  ;;  %v3534_v20 = vadd.s32 1, %v6683_v30 }
 0x31b   : > { %3381 = vmatprep.mubr.f32.mxu1 %v9072_v1 }
 0x31c   : > { %5442 = vmatmul.mubr.msk.f32.gmra.mrb[88].mxu0 %vm606_vm2, %v7241_v51 }
 0x31d   : > { %3238 = vmatprep.mubr.f32.mxu0 %v9072_v1 }
 0x31e   : > { %5458 = vmatmul.mubr.msk.f32.gmra.mrb[38].mxu1 %vm606_vm2, %v7163_v56  ;;  %v3535_v56 = vmul.u32 50, %v3534_v20 }
 0x31f   : > { %3387 = vmatprep.mubr.f32.mxu1 %v9072_v1 }
 0x320   : > { %5443 = vmatmul.mubr.msk.f32.gmra.mrb[90].mxu0 %vm606_vm2, %v7256_v0  ;;  %vm3536_vm3 = vcmp.lt.s32.totalorder %v7505_v5, %v3535_v56 }
 0x321   : > { %3244 = vmatprep.mubr.f32.mxu0 %v9072_v1 }
 0x322   : > { %5459 = vmatmul.mubr.msk.f32.gmra.mrb[40].mxu1 %vm606_vm2, %v7180_v6 }
 0x323   : > { %3393 = vmatprep.mubr.f32.mxu1 %v9072_v1 }
 0x324   : > { %5444 = vmatmul.mubr.msk.f32.gmra.mrb[92].mxu0 %vm606_vm2, %v7268_v62 }
 0x325   : > { %3250 = vmatprep.mubr.f32.mxu0 %v9072_v1 }
 0x326   : > { %5460 = vmatmul.mubr.msk.f32.gmra.mrb[42].mxu1 %vm606_vm2, %v7196_v39 }
 0x327   : > { %3399 = vmatprep.mubr.f32.mxu1 %v9072_v1 }
 0x328   : > { %5445 = vmatmul.mubr.msk.f32.gmra.mrb[94].mxu0 %vm606_vm2, %v7280_v18 }
 0x329   : > { %3256 = vmatprep.mubr.f32.mxu0 %v9072_v1 }
 0x32a   : > { %5461 = vmatmul.mubr.msk.f32.gmra.mrb[44].mxu1 %vm606_vm2, %v7216_v61 }
 0x32b   : > { %3405 = vmatprep.mubr.f32.mxu1 %v9072_v1 }
 0x32c   : > { %5446 = vmatmul.mubr.msk.f32.gmra.mrb[96].mxu0 %vm606_vm2, %v7295_v3 }
 0x32d   : > { %3262 = vmatprep.mubr.f32.mxu0 %v9072_v1 }
 0x32e   : > { %5462 = vmatmul.mubr.msk.f32.gmra.mrb[46].mxu1 %vm606_vm2, %v7229_v58  ;;  %v7526_v58 = vld [vmem:[#allocation8] sm:$0x3f] }
 0x32f   : > { %3411 = vmatprep.mubr.f32.mxu1 %v9072_v1 }
 0x330   : > { %5447 = vmatmul.mubr.msk.f32.gmra.mrb[98].mxu0 %vm606_vm2, %v7305_v22 }
 0x331   : > { %3268 = vmatprep.mubr.f32.mxu0 %v9072_v1 }
 0x332   : > { %5463 = vmatmul.mubr.msk.f32.gmra.mrb[48].mxu1 %vm606_vm2, %v7247_v11 }
 0x333   : > { %3417 = vmatprep.mubr.f32.mxu1 %v9072_v1 }
 0x334   : > { %5448 = vmatmul.mubr.msk.f32.gmra.mrb[100].mxu0 %vm606_vm2, %v7319_v35 }
 0x335   : > { %3274 = vmatprep.mubr.f32.mxu0 %v9072_v1 }
 0x336   : > { %5464 = vmatmul.mubr.msk.f32.gmra.mrb[50].mxu1 %vm606_vm2, %v7114_v49  ;;  %v3531_v49 = vmul.u32 50, %v6683_v30 }
 0x337   : > { %3423 = vmatprep.mubr.f32.mxu1 %v9072_v1 }
 0x338   : > { %5449 = vmatmul.mubr.msk.f32.gmra.mrb[102].mxu0 %vm606_vm2, %v7333_v60  ;;  %vm3532_vm14 = vcmp.ge.s32.totalorder %v7505_v5, %v3531_v49 }
 0x339   : > { %3280 = vmatprep.mubr.f32.mxu0 %v9072_v1  ;;  %vm7517_vm5 = vmand %vm3532_vm14, %vm3536_vm3 }
 0x33a   : > { %5465 = vmatmul.mubr.msk.f32.gmra.mrb[52].mxu1 %vm606_vm2, %v7138_v17  ;;  %v3528_v17 = vadd.s32 128, %v7505_v5 }
 0x33b   : > { %3429 = vmatprep.mubr.f32.mxu1 %v9072_v1 }
 0x33c   : > { %5450 = vmatmul.mubr.msk.f32.gmra.mrb[104].mxu0 %vm606_vm2, %v7342_v43  ;;  %vm3533_vm15 = vcmp.ge.s32.totalorder %v3528_v17, %v3531_v49  ;;  %vm3537_vm0 = vcmp.lt.s32.totalorder %v3528_v17, %v3535_v56  ;;  %v2371_v17 = vsub.s32 3, %v6683_v30 }
 0x33d   : > { %3286 = vmatprep.mubr.f32.mxu0 %v9072_v1  ;;  %vm3539_vm4 = vmand %vm3533_vm15, %vm3537_vm0 }
 0x33e   : > { %5466 = vmatmul.mubr.msk.f32.gmra.mrb[54].mxu1 %vm606_vm2, %v7174_v29  ;;  %v7515_v59 = vsel %vm3539_vm4, 1.0, %v9072_v1  ;;  %v3927_v29 = vadd.s32 8, %v6683_v30 }
 0x33f   : > { %3435 = vmatprep.mubr.f32.mxu1 %v9072_v1 }
 0x340   : > { %5451 = vmatmul.mubr.msk.f32.gmra.mrb[106].mxu0 %vm606_vm2, %v7354_v25 }
 0x341   : > { %3292 = vmatprep.mubr.f32.mxu0 %v9072_v1 }
 0x342   : > { %5467 = vmatmul.mubr.msk.f32.gmra.mrb[56].mxu1 %vm606_vm2, %v7186_v38 }
 0x343   : > { %3441 = vmatprep.mubr.f32.mxu1 %v9072_v1 }
 0x344   : > { %5452 = vmatmul.mubr.msk.f32.gmra.mrb[108].mxu0 %vm606_vm2, %v7367_v21 }
 0x345   : > { %3298 = vmatprep.mubr.f32.mxu0 %v9072_v1 }
 0x346   : > { %5468 = vmatmul.mubr.msk.f32.gmra.mrb[58].mxu1 %vm606_vm2, %v7207_v8  ;;  %v2363_v8 = vsub.s32 1, %v6683_v30 }
 0x347   : > { %3447 = vmatprep.mubr.f32.mxu1 %v9072_v1 }
 0x348   : > { %5453 = vmatmul.mubr.msk.f32.gmra.mrb[110].mxu0 %vm606_vm2, %v7377_v52 }
 0x349   : > { %3304 = vmatprep.mubr.f32.mxu0 %v9072_v1 }
 0x34a   : > { %5469 = vmatmul.mubr.msk.f32.gmra.mrb[60].mxu1 %vm606_vm2, %v7241_v51  ;;  %v2359_v51 = vsub.s32 0, %v6683_v30 }
 0x34b   : > { %3453 = vmatprep.mubr.f32.mxu1 %v9072_v1 }
 0x34c   : > { %5454 = vmatmul.mubr.msk.f32.gmra.mrb[112].mxu0 %vm606_vm2, %v7383_v13 }
 0x34d   : > { %5482 = vmatprep.mubr.msk.f32.mxu0 %vm3692_vm1, %v7515_v59 }
 0x34e   : > { %5470 = vmatmul.mubr.msk.f32.gmra.mrb[62].mxu1 %vm606_vm2, %v7256_v0  ;;  %v7530_v0 = vrot.slane %v7526_v58, %v2363_v8 }
 0x34f   : > { %3459 = vmatprep.mubr.f32.mxu1 %v9072_v1 }
 0x352   : > { %5471 = vmatmul.mubr.msk.f32.gmra.mrb[64].mxu1 %vm606_vm2, %v7268_v62 }
 0x353   : > { %3465 = vmatprep.mubr.f32.mxu1 %v9072_v1 }
 0x356   : > { %5472 = vmatmul.mubr.msk.f32.gmra.mrb[66].mxu1 %vm606_vm2, %v7280_v18  ;;  %v7533_v18 = vrot.slane %v7526_v58, %v2359_v51 }
 0x357   : > { %3471 = vmatprep.mubr.f32.mxu1 %v9072_v1 }
 0x35a   : > { %5473 = vmatmul.mubr.msk.f32.gmra.mrb[68].mxu1 %vm606_vm2, %v7295_v3 }
 0x35b   : > { %3477 = vmatprep.mubr.f32.mxu1 %v9072_v1 }
 0x35e   : > { %5474 = vmatmul.mubr.msk.f32.gmra.mrb[70].mxu1 %vm606_vm2, %v7305_v22 }
 0x35f   : > { %3483 = vmatprep.mubr.f32.mxu1 %v9072_v1 }
 0x362   : > { %5475 = vmatmul.mubr.msk.f32.gmra.mrb[72].mxu1 %vm606_vm2, %v7319_v35 }
 0x363   : > { %3489 = vmatprep.mubr.f32.mxu1 %v9072_v1 }
 0x366   : > { %5476 = vmatmul.mubr.msk.f32.gmra.mrb[74].mxu1 %vm606_vm2, %v7333_v60 }
 0x367   : > { %3495 = vmatprep.mubr.f32.mxu1 %v9072_v1 }
 0x36a   : > { %5477 = vmatmul.mubr.msk.f32.gmra.mrb[76].mxu1 %vm606_vm2, %v7342_v43 }
 0x36b   : > { %3501 = vmatprep.mubr.f32.mxu1 %v9072_v1 }
 0x36e   : > { %5478 = vmatmul.mubr.msk.f32.gmra.mrb[78].mxu1 %vm606_vm2, %v7354_v25 }
 0x36f   : > { %3507 = vmatprep.mubr.f32.mxu1 %v9072_v1 }
 0x372   : > { %5479 = vmatmul.mubr.msk.f32.gmra.mrb[80].mxu1 %vm606_vm2, %v7367_v21 }
 0x373   : > { %3513 = vmatprep.mubr.f32.mxu1 %v9072_v1 }
 0x376   : > { %5480 = vmatmul.mubr.msk.f32.gmra.mrb[82].mxu1 %vm606_vm2, %v7377_v52 }
 0x377   : > { %3519 = vmatprep.mubr.f32.mxu1 %v9072_v1 }
 0x37a   : > { %5481 = vmatmul.mubr.msk.f32.gmra.mrb[84].mxu1 %vm606_vm2, %v7383_v13 }
 0x37b   : > { %5484 = vmatprep.mubr.msk.f32.mxu1 %vm3692_vm1, %v7515_v59 }
 0x399   : > { %v2989_v6 = vpop.f32.mrb[0].mxu1 }
 0x39a   : > { %v2991_v38 = vpop.f32.mrb[1].mxu1  ;;  %v7593_v52 = vadd.f32 %v2989_v6, %v7533_v18 }
 0x39b   : > { %v7596_v13 = vadd.f32 %v2991_v38, %v7530_v0 }
 0x39e   : > { %v2947_v39 = vpop.f32.mrb[50].mxu0 }
 0x39f   : > { %v2949_v61 = vpop.f32.mrb[51].mxu0  ;;  %v7539_v10 = vadd.f32 %v2947_v39, %v7533_v18 }
 0x3a0   : > { %v2995_v11 = vpop.f32.mrb[2].mxu1  ;;  %v7536_v3 = vadd.f32 %v2949_v61, %v7530_v0 }
 0x3a1   : > { %v2997_v62 = vpop.f32.mrb[3].mxu1  ;;  %v3542_v16 = vmul.f32 %v7539_v10, %v7539_v10  ;;  %v7612_v61 = vadd.f32 %v2995_v11, %v7533_v18 }
 0x3a2   : > { %v3543_v50 = vmul.f32 %v7536_v3, %v7536_v3  ;;  %v7602_v56 = vadd.f32 %v2997_v62, %v7530_v0 }
 0x3a6   : > { %v2953_v22 = vpop.f32.mrb[52].mxu0 }
 0x3a7   : > { %v7542_v35 = vadd.f32 %v2953_v22, %v7533_v18  ;;  %v2955_v26 = vpop.f32.mrb[53].mxu0 }
 0x3a8   : > { %v7545_v12 = vadd.f32 %v2955_v26, %v7530_v0  ;;  %v3001_v9 = vpop.f32.mrb[4].mxu1 }
 0x3a9   : > { %v3548_v31 = vmul.f32 %v7542_v35, %v7542_v35  ;;  %v3003_v47 = vpop.f32.mrb[5].mxu1  ;;  %v7615_v51 = vadd.f32 %v3001_v9, %v7533_v18 }
 0x3aa   : > { %v3549_v15 = vmul.f32 %v7545_v12, %v7545_v12  ;;  %v2959_v36 = vpop.f32.mrb[54].mxu0  ;;  %v7605_v39 = vadd.f32 %v3003_v47, %v7530_v0 }
 0x3ab   : > { %v2961_v24 = vpop.f32.mrb[55].mxu0  ;;  %v5719_v19 = vpack.c.bf16 %v3548_v31, %v3542_v16  ;;  %v7561_v41 = vadd.f32 %v2959_v36, %v7533_v18  ;;  %v7634_v16 = vrot.slane %v7526_v58, %v2367_v42 }
 0x3ac   : > { %v5717_v60 = vpack.c.bf16 %v3549_v15, %v3543_v50  ;;  %v7555_v46 = vpop.f32.mrb[6].mxu1  ;;  %v7558_v54 = vadd.f32 %v2961_v24, %v7530_v0  ;;  %v7637_v24 = vrot.slane %v7526_v58, %v2371_v17 }
 0x3ad   : > { %v3009_v34 = vpop.f32.mrb[7].mxu1  ;;  %v3554_v25 = vmul.f32 %v7561_v41, %v7561_v41 }
 0x3ae   : > { %v2965_v57 = vpop.f32.mrb[56].mxu0  ;;  %5718 = vmatprep.subr.bf16.mxu0 %v5717_v60  ;;  %v3555_v44 = vmul.f32 %v7558_v54, %v7558_v54  ;;  %v7623_v31 = vadd.f32 %v3009_v34, %v7530_v0  ;;  %v3591_v34 = vmul.f32 %v7602_v56, %v7602_v56 }
 0x3af   : > { %v7564_v43 = vadd.f32 %v2965_v57, %v7533_v18  ;;  %v2967_v53 = vpop.f32.mrb[57].mxu0  ;;  %5720 = vmatpush1.bf16.msra.mxu0 %v5719_v19  ;;  %v3585_v19 = vmul.f32 %v7596_v13, %v7596_v13  ;;  %v3597_v57 = vmul.f32 %v7605_v39, %v7605_v39 }
 0x3b0   : > { %v7567_v40 = vadd.f32 %v2967_v53, %v7530_v0  ;;  %v3013_v28 = vpop.f32.mrb[8].mxu1 }
 0x3b1   : > { %v3560_v2 = vmul.f32 %v7564_v43, %v7564_v43  ;;  %v3015_v63 = vpop.f32.mrb[9].mxu1 }
 0x3b2   : > { %v3561_v23 = vmul.f32 %v7567_v40, %v7567_v40  ;;  %v2971_v7 = vpop.f32.mrb[58].mxu0  ;;  %v7626_v47 = vadd.f32 %v3015_v63, %v7530_v0  ;;  %v3584_v63 = vmul.f32 %v7593_v52, %v7593_v52 }
 0x3b3   : > { %v2973_v45 = vpop.f32.mrb[59].mxu0  ;;  %v5723_v14 = vpack.c.bf16 %v3560_v2, %v3554_v25  ;;  %v7581_v32 = vadd.f32 %v2971_v7, %v7533_v18  ;;  %v7655_v7 = vadd.f32 %v7555_v46, %v7533_v18 }
 0x3b4   : > { %v5721_v4 = vpack.c.bf16 %v3561_v23, %v3555_v44  ;;  %v7578_v27 = vadd.f32 %v2973_v45, %v7530_v0  ;;  %v3590_v44 = vmul.f32 %v7612_v61, %v7612_v61  ;;  %v3596_v23 = vmul.f32 %v7615_v51, %v7615_v51 }
 0x3b5   : > { %v3566_v62 = vmul.f32 %v7581_v32, %v7581_v32  ;;  %v3603_v45 = vmul.f32 %v7623_v31, %v7623_v31 }
 0x3b6   : > { %v2977_v48 = vpop.f32.mrb[60].mxu0  ;;  %5722 = vmatprep.subr.bf16.mxu0 %v5721_v4  ;;  %v3567_v8 = vmul.f32 %v7578_v27, %v7578_v27  ;;  %v7660_v4 = vadd.f32 %v3013_v28, %v7533_v18  ;;  %v3602_v28 = vmul.f32 %v7655_v7, %v7655_v7 }
 0x3b7   : > { %v7584_v37 = vadd.f32 %v2977_v48, %v7533_v18  ;;  %v2979_v55 = vpop.f32.mrb[61].mxu0  ;;  %5724 = vmatpush1.bf16.msra.mxu0 %v5723_v14  ;;  %v3609_v14 = vmul.f32 %v7626_v47, %v7626_v47 }
 0x3b8   : > { %v7587_v21 = vadd.f32 %v2979_v55, %v7530_v0 }
 0x3b9   : > { %v7589_v33 = vpop.f32.mrb[10].mxu1  ;;  %v3572_v49 = vmul.f32 %v7584_v37, %v7584_v37 }
 0x3ba   : > { %v3021_v20 = vpop.f32.mrb[11].mxu1  ;;  %v3573_v6 = vmul.f32 %v7587_v21, %v7587_v21 }
 0x3bb   : > { %v2983_v38 = vpop.f32.mrb[62].mxu0  ;;  %v5727_v9 = vpack.c.bf16 %v3572_v49, %v3566_v62 }
 0x3bc   : > { %v7620_v22 = vadd.f32 %v2983_v38, %v7533_v18  ;;  %v2985_v26 = vpop.f32.mrb[63].mxu0  ;;  %v5725_v11 = vpack.c.bf16 %v3573_v6, %v3567_v8  ;;  %v5733_v6 = vpack.c.bf16 %v3597_v57, %v3591_v34  ;;  %v5735_v38 = vpack.c.bf16 %v3596_v23, %v3590_v44 }
 0x3bd   : > { %v7629_v50 = vadd.f32 %v2985_v26, %v7530_v0  ;;  %v3025_v15 = vpop.f32.mrb[12].mxu1  ;;  %v5737_v34 = vpack.c.bf16 %v3609_v14, %v3603_v45  ;;  %v7688_v57 = vadd.f32 %v7589_v33, %v7533_v18 }
 0x3be   : > { %v3578_v36 = vmul.f32 %v7620_v22, %v7620_v22  ;;  %v3027_v60 = vpop.f32.mrb[13].mxu1  ;;  %5726 = vmatprep.subr.bf16.mxu0 %v5725_v11 }
 0x3bf   : > { %v3579_v53 = vmul.f32 %v7629_v50, %v7629_v50  ;;  %v3162_v2 = vpop.f32.mrb[64].mxu0  ;;  %5728 = vmatpush1.bf16.msra.mxu0 %v5727_v9  ;;  %v7665_v49 = vadd.f32 %v3027_v60, %v7530_v0  ;;  %v3608_v9 = vmul.f32 %v7660_v4, %v7660_v4 }
 0x3c0   : > { %v3164_v25 = vpop.f32.mrb[65].mxu0  ;;  %v5731_v42 = vpack.c.bf16 %v3584_v63, %v3578_v36  ;;  %v7673_v62 = vadd.f32 %v3162_v2, %v7634_v16  ;;  %v7681_v36 = vadd.f32 %v3021_v20, %v7530_v0 }
 0x3c1   : > { %v5729_v48 = vpack.c.bf16 %v3585_v19, %v3579_v53  ;;  %v3031_v55 = vpop.f32.mrb[14].mxu1  ;;  %v7668_v46 = vadd.f32 %v3164_v25, %v7637_v24  ;;  %v7691_v53 = vadd.f32 %v3025_v15, %v7533_v18  ;;  %v3621_v2 = vmul.f32 %v7665_v49, %v7665_v49 }
 0x3c2   : > { %v3033_v17 = vpop.f32.mrb[15].mxu1  ;;  %v3544_v45 = vmul.f32 %v7673_v62, %v7673_v62 }
 0x3c3   : > { %v3168_v8 = vpop.f32.mrb[66].mxu0  ;;  %5730 = vmatprep.subr.bf16.mxu0 %v5729_v48  ;;  %v3545_v44 = vmul.f32 %v7668_v46, %v7668_v46  ;;  %v7702_v25 = vadd.f32 %v3033_v17, %v7530_v0  ;;  %v3615_v48 = vmul.f32 %v7681_v36, %v7681_v36  ;;  %v5739_v17 = vpack.c.bf16 %v3608_v9, %v3602_v28 }
 0x3c4   : > { %v7676_v26 = vadd.f32 %v3168_v8, %v7634_v16  ;;  %v3170_v11 = vpop.f32.mrb[67].mxu0  ;;  %5732 = vmatpush1.bf16.msra.mxu0 %v5731_v42  ;;  %v7726_v9 = vadd.f32 %v3031_v55, %v7533_v18 }
 0x3c5   : > { %v7684_v60 = vadd.f32 %v3170_v11, %v7637_v24  ;;  %5734 = vmatprep.subr.bf16.mxu0 %v5733_v6  ;;  %v3037_v19 = vpop.f32.mrb[16].mxu1  ;;  %9212 = vst [vmem:[#allocation17_spill] sm:$0xff] %v7702_v25  ;;  %v3620_v11 = vmul.f32 %v7691_v53, %v7691_v53  ;;  %v5741_v28 = vpack.c.bf16 %v3621_v2, %v3615_v48 }
 0x3c6   : > { %9210 = vst [vmem:[#allocation15_spill] sm:$0xff] %v7676_v26  ;;  %v3550_v20 = vmul.f32 %v7676_v26, %v7676_v26  ;;  %v3039_v63 = vpop.f32.mrb[17].mxu1  ;;  %v7716_v1 = vadd.f32 %v3037_v19, %v7533_v18 }
 0x3c7   : > { %9211 = vst [vmem:[#allocation16_spill] sm:$0xff] %v7684_v60  ;;  %v3551_v23 = vmul.f32 %v7684_v60, %v7684_v60  ;;  %v3174_v33 = vpop.f32.mrb[68].mxu0  ;;  %v7705_v15 = vadd.f32 %v3039_v63, %v7530_v0 }
 0x3c8   : > { %v3176_v14 = vpop.f32.mrb[69].mxu0  ;;  %5736 = vmatpush1.bf16.msra.mxu0 %v5735_v38  ;;  %v5767_v63 = vpack.c.bf16 %v3550_v20, %v3544_v45  ;;  %9214 = vst [vmem:[#allocation19_spill] sm:$0xff] %v7716_v1  ;;  %v3614_v38 = vmul.f32 %v7688_v57, %v7688_v57  ;;  %v7729_v20 = vadd.f32 %v3174_v33, %v7634_v16 }
 0x3c9   : > { %9213 = vst [vmem:[#allocation18_spill] sm:$0xff] %v7705_v15  ;;  %5738 = vmatprep.subr.bf16.mxu0 %v5737_v34  ;;  %v3633_v42 = vmul.f32 %v7705_v15, %v7705_v15  ;;  %v5765_v8 = vpack.c.bf16 %v3551_v23, %v3545_v44  ;;  %v3043_v6 = vpop.f32.mrb[18].mxu1  ;;  %v3627_v34 = vmul.f32 %v7702_v25, %v7702_v25 }
 0x3ca   : > { %v3045_v60 = vpop.f32.mrb[19].mxu1  ;;  %v7723_v26 = vadd.f32 %v3176_v14, %v7637_v24  ;;  %9216 = vst [vmem:[#allocation21_spill] sm:$0xff] %v7729_v20  ;;  %v5743_v55 = vpack.c.bf16 %v3620_v11, %v3614_v38  ;;  %v3632_v33 = vmul.f32 %v7716_v1, %v7716_v1  ;;  %v3626_v11 = vmul.f32 %v7726_v9, %v7726_v9 }
 0x3cb   : > { %v3180_v44 = vpop.f32.mrb[70].mxu0  ;;  %5766 = vmatprep.subr.bf16.mxu1 %v5765_v8  ;;  %v7738_v14 = vadd.f32 %v3045_v60, %v7530_v0  ;;  %v5745_v48 = vpack.c.bf16 %v3633_v42, %v3627_v34  ;;  %v3556_v38 = vmul.f32 %v7729_v20, %v7729_v20  ;;  %v7759_v34 = vadd.f32 %v3043_v6, %v7533_v18 }
 0x3cc   : > { %9215 = vst [vmem:[#allocation20_spill] sm:$0xff] %v7723_v26  ;;  %v7732_v19 = vadd.f32 %v3180_v44, %v7634_v16  ;;  %v3182_v23 = vpop.f32.mrb[71].mxu0  ;;  %5740 = vmatpush1.bf16.msra.mxu0 %v5739_v17  ;;  %5768 = vmatpush1.bf16.msra.mxu1 %v5767_v63  ;;  %v3557_v63 = vmul.f32 %v7723_v26, %v7723_v26 }
 0x3cd   : > { %v7735_v45 = vadd.f32 %v3182_v23, %v7637_v24  ;;  %5742 = vmatprep.subr.bf16.mxu0 %v5741_v28  ;;  %9219 = vst [vmem:[#allocation24_spill] sm:$0xff] %v7738_v14  ;;  %v3049_v2 = vpop.f32.mrb[20].mxu1  ;;  %v5747_v26 = vpack.c.bf16 %v3632_v33, %v3626_v11 }
 0x3ce   : > { %9217 = vst [vmem:[#allocation22_spill] sm:$0xff] %v7732_v19  ;;  %v3562_v8 = vmul.f32 %v7732_v19, %v7732_v19  ;;  %v7745_v44 = vadd.f32 %v3049_v2, %v7533_v18  ;;  %v3051_v17 = vpop.f32.mrb[21].mxu1  ;;  %v3639_v2 = vmul.f32 %v7738_v14, %v7738_v14 }
 0x3cf   : > { %9218 = vst [vmem:[#allocation23_spill] sm:$0xff] %v7735_v45  ;;  %v3563_v60 = vmul.f32 %v7735_v45, %v7735_v45  ;;  %v3186_v28 = vpop.f32.mrb[72].mxu0  ;;  %v7752_v42 = vadd.f32 %v3051_v17, %v7530_v0 }
 0x3d0   : > { %9220 = vst [vmem:[#allocation25_spill] sm:$0xff] %v7745_v44  ;;  %v3188_v23 = vpop.f32.mrb[73].mxu0  ;;  %5744 = vmatpush1.bf16.msra.mxu0 %v5743_v55  ;;  %v5771_v15 = vpack.c.bf16 %v3562_v8, %v3556_v38  ;;  %v3644_v1 = vmul.f32 %v7745_v44, %v7745_v44  ;;  %v7773_v14 = vadd.f32 %v3186_v28, %v7634_v16 }
 0x3d1   : > { %9221 = vst [vmem:[#allocation26_spill] sm:$0xff] %v7752_v42  ;;  %5746 = vmatprep.subr.bf16.mxu0 %v5745_v48  ;;  %v3645_v45 = vmul.f32 %v7752_v42, %v7752_v42  ;;  %v5769_v17 = vpack.c.bf16 %v3563_v60, %v3557_v63  ;;  %v3055_v19 = vpop.f32.mrb[22].mxu1  ;;  %v7768_v6 = vadd.f32 %v3188_v23, %v7637_v24 }
 0x3d2   : > { %v3057_v20 = vpop.f32.mrb[23].mxu1  ;;  %v3638_v48 = vmul.f32 %v7759_v34, %v7759_v34  ;;  %9223 = vst [vmem:[#allocation28_spill] sm:$0xff] %v7773_v14  ;;  %v7787_v28 = vadd.f32 %v3055_v19, %v7533_v18 }
 0x3d3   : > { %9222 = vst [vmem:[#allocation27_spill] sm:$0xff] %v7768_v6  ;;  %v3192_v25 = vpop.f32.mrb[74].mxu0  ;;  %5770 = vmatprep.subr.bf16.mxu1 %v5769_v17  ;;  %v5749_v55 = vpack.c.bf16 %v3645_v45, %v3639_v2  ;;  %v7782_v60 = vadd.f32 %v3057_v20, %v7530_v0 }
 0x3d4   : > { %v7776_v63 = vadd.f32 %v3192_v25, %v7634_v16  ;;  %v3194_v33 = vpop.f32.mrb[75].mxu0  ;;  %5748 = vmatpush1.bf16.msra.mxu0 %v5747_v26  ;;  %5772 = vmatpush1.bf16.msra.mxu1 %v5771_v15  ;;  %v5751_v45 = vpack.c.bf16 %v3644_v1, %v3638_v48  ;;  %9227 = vst [vmem:[#allocation32_spill] sm:$0xff] %v7787_v28 }
 0x3d5   : > { %v7779_v8 = vadd.f32 %v3194_v33, %v7637_v24  ;;  %9226 = vst [vmem:[#allocation31_spill] sm:$0xff] %v7782_v60  ;;  %v3061_v11 = vpop.f32.mrb[24].mxu1  ;;  %5750 = vmatprep.subr.bf16.mxu0 %v5749_v55  ;;  %v3569_v15 = vmul.f32 %v7768_v6, %v7768_v6  ;;  %v3568_v1 = vmul.f32 %v7773_v14, %v7773_v14 }
 0x3d6   : > { %9224 = vst [vmem:[#allocation29_spill] sm:$0xff] %v7776_v63  ;;  %v3574_v38 = vmul.f32 %v7776_v63, %v7776_v63  ;;  %v7790_v25 = vadd.f32 %v3061_v11, %v7533_v18  ;;  %v3063_v26 = vpop.f32.mrb[25].mxu1  ;;  %v3651_v55 = vmul.f32 %v7782_v60, %v7782_v60 }
 0x3d7   : > { %9225 = vst [vmem:[#allocation30_spill] sm:$0xff] %v7779_v8  ;;  %v3575_v20 = vmul.f32 %v7779_v8, %v7779_v8  ;;  %v3198_v23 = vpop.f32.mrb[76].mxu0  ;;  %v7797_v2 = vadd.f32 %v3063_v26, %v7530_v0  ;;  %v3650_v26 = vmul.f32 %v7787_v28, %v7787_v28 }
 0x3d8   : > { %9228 = vst [vmem:[#allocation33_spill] sm:$0xff] %v7790_v25  ;;  %v3200_v17 = vpop.f32.mrb[77].mxu0  ;;  %v3656_v19 = vmul.f32 %v7790_v25, %v7790_v25  ;;  %5752 = vmatpush1.bf16.msra.mxu0 %v5751_v45  ;;  %v5775_v8 = vpack.c.bf16 %v3574_v38, %v3568_v1  ;;  %v7813_v45 = vadd.f32 %v3198_v23, %v7634_v16 }
 0x3d9   : > { %9229 = vst [vmem:[#allocation34_spill] sm:$0xff] %v7797_v2  ;;  %v3657_v48 = vmul.f32 %v7797_v2, %v7797_v2  ;;  %v5773_v33 = vpack.c.bf16 %v3575_v20, %v3569_v15  ;;  %v3067_v11 = vpop.f32.mrb[26].mxu1  ;;  %v7810_v6 = vadd.f32 %v3200_v17, %v7637_v24 }
 0x3da   : > { %v3069_v63 = vpop.f32.mrb[27].mxu1  ;;  %9231 = vst [vmem:[#allocation36_spill] sm:$0xff] %v7813_v45  ;;  %v5755_v60 = vpack.c.bf16 %v3656_v19, %v3650_v26  ;;  %v7827_v23 = vadd.f32 %v3067_v11, %v7533_v18 }
 0x3db   : > { %9230 = vst [vmem:[#allocation35_spill] sm:$0xff] %v7810_v6  ;;  %v3204_v14 = vpop.f32.mrb[78].mxu0  ;;  %5774 = vmatprep.subr.bf16.mxu1 %v5773_v33  ;;  %v5753_v25 = vpack.c.bf16 %v3657_v48, %v3651_v55  ;;  %v7822_v20 = vadd.f32 %v3069_v63, %v7530_v0  ;;  %v3580_v48 = vmul.f32 %v7813_v45, %v7813_v45 }
 0x3dc   : > { %v7816_v42 = vadd.f32 %v3204_v14, %v7634_v16  ;;  %v3206_v15 = vpop.f32.mrb[79].mxu0  ;;  %5776 = vmatpush1.bf16.msra.mxu1 %v5775_v8  ;;  %9235 = vst [vmem:[#allocation40_spill] sm:$0xff] %v7827_v23  ;;  %v3581_v8 = vmul.f32 %v7810_v6, %v7810_v6 }
 0x3dd   : > { %v7819_v38 = vadd.f32 %v3206_v15, %v7637_v24  ;;  %9234 = vst [vmem:[#allocation39_spill] sm:$0xff] %v7822_v20  ;;  %v3073_v1 = vpop.f32.mrb[28].mxu1  ;;  %5754 = vmatprep.subr.bf16.mxu0 %v5753_v25 }
 0x3de   : > { %9232 = vst [vmem:[#allocation37_spill] sm:$0xff] %v7816_v42  ;;  %v3586_v17 = vmul.f32 %v7816_v42, %v7816_v42  ;;  %v7830_v19 = vadd.f32 %v3073_v1, %v7533_v18  ;;  %v3075_v14 = vpop.f32.mrb[29].mxu1  ;;  %5756 = vmatpush1.bf16.msra.mxu0 %v5755_v60  ;;  %v3663_v60 = vmul.f32 %v7822_v20, %v7822_v20 }
 0x3df   : > { %9233 = vst [vmem:[#allocation38_spill] sm:$0xff] %v7819_v38  ;;  %v3587_v63 = vmul.f32 %v7819_v38, %v7819_v38  ;;  %v3210_v55 = vpop.f32.mrb[80].mxu0  ;;  %v7837_v25 = vadd.f32 %v3075_v14, %v7530_v0  ;;  %v3662_v14 = vmul.f32 %v7827_v23, %v7827_v23 }
 0x3e0   : > { %9236 = vst [vmem:[#allocation41_spill] sm:$0xff] %v7830_v19  ;;  %v3212_v33 = vpop.f32.mrb[81].mxu0  ;;  %v3668_v11 = vmul.f32 %v7830_v19, %v7830_v19  ;;  %v5779_v38 = vpack.c.bf16 %v3586_v17, %v3580_v48  ;;  %v7853_v19 = vadd.f32 %v3210_v55, %v7634_v16 }
 0x3e1   : > { %9237 = vst [vmem:[#allocation42_spill] sm:$0xff] %v7837_v25  ;;  %v3669_v26 = vmul.f32 %v7837_v25, %v7837_v25  ;;  %v5777_v15 = vpack.c.bf16 %v3587_v63, %v3581_v8  ;;  %v3079_v1 = vpop.f32.mrb[30].mxu1  ;;  %v7850_v6 = vadd.f32 %v3212_v33, %v7637_v24 }
 0x3e2   : > { %v3081_v42 = vpop.f32.mrb[31].mxu1  ;;  %9239 = vst [vmem:[#allocation44_spill] sm:$0xff] %v7853_v19  ;;  %v5759_v20 = vpack.c.bf16 %v3668_v11, %v3662_v14  ;;  %v7867_v55 = vadd.f32 %v3079_v1, %v7533_v18 }
 0x3e3   : > { %9238 = vst [vmem:[#allocation43_spill] sm:$0xff] %v7850_v6  ;;  %v3216_v45 = vpop.f32.mrb[82].mxu0  ;;  %5778 = vmatprep.subr.bf16.mxu1 %v5777_v15  ;;  %v5757_v2 = vpack.c.bf16 %v3669_v26, %v3663_v60  ;;  %v7862_v63 = vadd.f32 %v3081_v42, %v7530_v0  ;;  %v3592_v26 = vmul.f32 %v7853_v19, %v7853_v19  ;;  %v2375_v19 = vsub.s32 4, %v6683_v30 }
 0x3e4   : > { %v7856_v28 = vadd.f32 %v3216_v45, %v7634_v16  ;;  %v3218_v8 = vpop.f32.mrb[83].mxu0  ;;  %5780 = vmatpush1.bf16.msra.mxu1 %v5779_v38  ;;  %9243 = vst [vmem:[#allocation48_spill] sm:$0xff] %v7867_v55  ;;  %v3593_v38 = vmul.f32 %v7850_v6, %v7850_v6 }
 0x3e5   : > { %v7859_v17 = vadd.f32 %v3218_v8, %v7637_v24  ;;  %9242 = vst [vmem:[#allocation47_spill] sm:$0xff] %v7862_v63  ;;  %v3085_v48 = vpop.f32.mrb[32].mxu1  ;;  %5758 = vmatprep.subr.bf16.mxu0 %v5757_v2 }
 0x3e6   : > { %9240 = vst [vmem:[#allocation45_spill] sm:$0xff] %v7856_v28  ;;  %v3598_v33 = vmul.f32 %v7856_v28, %v7856_v28  ;;  %v7870_v11 = vadd.f32 %v3085_v48, %v7533_v18  ;;  %v3087_v45 = vpop.f32.mrb[33].mxu1  ;;  %5760 = vmatpush1.bf16.msra.mxu0 %v5759_v20  ;;  %v3675_v20 = vmul.f32 %v7862_v63, %v7862_v63 }
 0x3e7   : > { %9241 = vst [vmem:[#allocation46_spill] sm:$0xff] %v7859_v17  ;;  %v3599_v42 = vmul.f32 %v7859_v17, %v7859_v17  ;;  %v3222_v60 = vpop.f32.mrb[84].mxu0  ;;  %v7877_v2 = vadd.f32 %v3087_v45, %v7530_v0  ;;  %v2379_v17 = vsub.s32 5, %v6683_v30  ;;  %v3674_v45 = vmul.f32 %v7867_v55, %v7867_v55 }
 0x3e8   : > { %9244 = vst [vmem:[#allocation49_spill] sm:$0xff] %v7870_v11  ;;  %v3224_v15 = vpop.f32.mrb[85].mxu0  ;;  %v3680_v1 = vmul.f32 %v7870_v11, %v7870_v11  ;;  %v5783_v28 = vpack.c.bf16 %v3598_v33, %v3592_v26 }
 0x3e9   : > { %9245 = vst [vmem:[#allocation50_spill] sm:$0xff] %v7877_v2  ;;  %v3681_v14 = vmul.f32 %v7877_v2, %v7877_v2  ;;  %v5781_v8 = vpack.c.bf16 %v3599_v42, %v3593_v38  ;;  %v3091_v48 = vpop.f32.mrb[34].mxu1  ;;  %v7892_v25 = vadd.f32 %v3224_v15, %v7637_v24  ;;  %v7898_v38 = vadd.f32 %v3222_v60, %v7634_v16 }
 0x3ea   : > { %v3093_v6 = vpop.f32.mrb[35].mxu1  ;;  %v5763_v42 = vpack.c.bf16 %v3680_v1, %v3674_v45  ;;  %v7904_v55 = vadd.f32 %v3091_v48, %v7533_v18  ;;  %v7912_v60 = vrot.slane %v7526_v58, %v2379_v17  ;;  %v7917_v1 = vrot.slane %v7526_v58, %v2375_v19 }
 0x3eb   : > { %9246 = vst [vmem:[#allocation51_spill] sm:$0xff] %v7892_v25  ;;  %v3228_v11 = vpop.f32.mrb[86].mxu0  ;;  %5782 = vmatprep.subr.bf16.mxu1 %v5781_v8  ;;  %v7895_v63 = vadd.f32 %v3093_v6, %v7530_v0  ;;  %v5761_v2 = vpack.c.bf16 %v3681_v14, %v3675_v20  ;;  %9248 = vst [vmem:[#allocation53_spill] sm:$0xff] %v7898_v38  ;;  %v3605_v18 = vmul.f32 %v7892_v25, %v7892_v25 }
 0x3ec   : > { %v7901_v33 = vadd.f32 %v3228_v11, %v7634_v16  ;;  %v3230_v26 = vpop.f32.mrb[87].mxu0  ;;  %5784 = vmatpush1.bf16.msra.mxu1 %v5783_v28  ;;  %9250 = vst [vmem:[#allocation55_spill] sm:$0xff] %v7904_v55  ;;  %v3604_v17 = vmul.f32 %v7898_v38, %v7898_v38 }
 0x3ed   : > { %9247 = vst [vmem:[#allocation52_spill] sm:$0xff] %v7895_v63  ;;  %v7907_v15 = vadd.f32 %v3230_v26, %v7637_v24  ;;  %v3687_v0 = vmul.f32 %v7895_v63, %v7895_v63  ;;  %v3377_v6 = vpop.f32.mrb[36].mxu1  ;;  %5762 = vmatprep.subr.bf16.mxu0 %v5761_v2  ;;  %v3686_v2 = vmul.f32 %v7904_v55, %v7904_v55 }
 0x3ee   : > { %9249 = vst [vmem:[#allocation54_spill] sm:$0xff] %v7901_v33  ;;  %v3610_v11 = vmul.f32 %v7901_v33, %v7901_v33  ;;  %v3379_v28 = vpop.f32.mrb[37].mxu1  ;;  %5764 = vmatpush1.bf16.msra.mxu0 %v5763_v42  ;;  %v7931_v42 = vadd.f32 %v3377_v6, %v7917_v1 }
 0x3ef   : > { %9251 = vst [vmem:[#allocation56_spill] sm:$0xff] %v7907_v15  ;;  %v3611_v20 = vmul.f32 %v7907_v15, %v7907_v15  ;;  %v3234_v14 = vpop.f32.mrb[88].mxu0  ;;  %3744 = vmatprep.subr.mxu0 %v3687_v0  ;;  %v7928_v58 = vadd.f32 %v3379_v28, %v7912_v60  ;;  %v9111_v28 = vmov 1.0  }
 0x3f0   : > { %v3236_v8 = vpop.f32.mrb[89].mxu0  ;;  %v5787_v45 = vpack.c.bf16 %v3610_v11, %v3604_v17  ;;  %9253 = vst [vmem:[#allocation58_spill] sm:$0xff] %v7931_v42  ;;  %v7946_v6 = vadd.f32 %v3234_v14, %v7634_v16 }
 0x3f1   : > { %9252 = vst [vmem:[#allocation57_spill] sm:$0xff] %v7928_v58  ;;  %v5785_v19 = vpack.c.bf16 %v3611_v20, %v3605_v18  ;;  %v3383_v48 = vpop.f32.mrb[38].mxu1  ;;  %v7937_v15 = vadd.f32 %v3236_v8, %v7637_v24  ;;  %v3547_v17 = vmul.f32 %v7928_v58, %v7928_v58 }
 0x3f2   : > { %v7934_v26 = vadd.f32 %v3383_v48, %v7917_v1  ;;  %v3385_v0 = vpop.f32.mrb[39].mxu1  ;;  %3745 = vmatpush1.msra.mxu0 %v3686_v2  ;;  %9257 = vst [vmem:[#allocation62_spill] sm:$0xff] %v7946_v6 }
 0x3f3   : > { %9255 = vst [vmem:[#allocation60_spill] sm:$0xff] %v7937_v15  ;;  %v3240_v33 = vpop.f32.mrb[90].mxu0  ;;  %5786 = vmatprep.subr.bf16.mxu1 %v5785_v19  ;;  %v7940_v63 = vadd.f32 %v3385_v0, %v7912_v60  ;;  %5483 = vmatmul.mubr.msk.f32.vlgmr.msra.gmra.mrb[114].mxu0 %vm7517_vm5, %v9111_v28  ;;  %v3616_v28 = vmul.f32 %v7946_v6, %v7946_v6 }
 0x3f4   : > { %9254 = vst [vmem:[#allocation59_spill] sm:$0xff] %v7934_v26  ;;  %v7949_v11 = vadd.f32 %v3240_v33, %v7634_v16  ;;  %v3242_v18 = vpop.f32.mrb[91].mxu0  ;;  %5788 = vmatpush1.bf16.msra.mxu1 %v5787_v45  ;;  %v3552_v20 = vmul.f32 %v7934_v26, %v7934_v26  ;;  %5486 = vmatprep.mubr.msk.f32.mxu0 %vm3692_vm1, %v7515_v59 }
 0x3f5   : > { %9256 = vst [vmem:[#allocation61_spill] sm:$0xff] %v7940_v63  ;;  %v7958_v2 = vadd.f32 %v3242_v18, %v7637_v24  ;;  %v3553_v14 = vmul.f32 %v7940_v63, %v7940_v63  ;;  %v3389_v8 = vpop.f32.mrb[40].mxu1  ;;  %v3546_v33 = vmul.f32 %v7931_v42, %v7931_v42  ;;  %v3617_v59 = vmul.f32 %v7937_v15, %v7937_v15 }
 0x3f6   : > { %9258 = vst [vmem:[#allocation63_spill] sm:$0xff] %v7949_v11  ;;  %v3622_v19 = vmul.f32 %v7949_v11, %v7949_v11  ;;  %v3391_v48 = vpop.f32.mrb[41].mxu1  ;;  %v7976_v25 = vadd.f32 %v3389_v8, %v7917_v1 }
 0x3f7   : > { %9259 = vst [vmem:[#allocation64_spill] sm:$0xff] %v7958_v2  ;;  %v3623_v45 = vmul.f32 %v7958_v2, %v7958_v2  ;;  %v3246_v0 = vpop.f32.mrb[92].mxu0  ;;  %v5813_v18 = vpack.c.bf16 %v3553_v14, %v3547_v17  ;;  %v5815_v63 = vpack.c.bf16 %v3552_v20, %v3546_v33  ;;  %v7973_v58 = vadd.f32 %v3391_v48, %v7912_v60 }
 0x3f8   : > { %v3248_v26 = vpop.f32.mrb[93].mxu0  ;;  %v5791_v11 = vpack.c.bf16 %v3622_v19, %v3616_v28  ;;  %9261 = vst [vmem:[#allocation66_spill] sm:$0xff] %v7976_v25  ;;  %v7988_v33 = vadd.f32 %v3246_v0, %v7634_v16  ;;  %v3558_v19 = vmul.f32 %v7976_v25, %v7976_v25 }
 0x3f9   : > { %9260 = vst [vmem:[#allocation65_spill] sm:$0xff] %v7973_v58  ;;  %v5789_v42 = vpack.c.bf16 %v3623_v45, %v3617_v59  ;;  %v3395_v55 = vpop.f32.mrb[42].mxu1  ;;  %5814 = vmatprep.subr.bf16.mxu0 %v5813_v18  ;;  %v7982_v17 = vadd.f32 %v3248_v26, %v7637_v24 }
 0x3fa   : > { %v7979_v15 = vadd.f32 %v3395_v55, %v7917_v1  ;;  %v3397_v2 = vpop.f32.mrb[43].mxu1  ;;  %5816 = vmatpush1.bf16.msra.mxu0 %v5815_v63  ;;  %9265 = vst [vmem:[#allocation70_spill] sm:$0xff] %v7988_v33  ;;  %v3559_v63 = vmul.f32 %v7973_v58, %v7973_v58 }
 0x3fb   : > { %9263 = vst [vmem:[#allocation68_spill] sm:$0xff] %v7982_v17  ;;  %v3252_v20 = vpop.f32.mrb[94].mxu0  ;;  %5790 = vmatprep.subr.bf16.mxu1 %v5789_v42  ;;  %v7985_v14 = vadd.f32 %v3397_v2, %v7912_v60  ;;  %v3629_v59 = vmul.f32 %v7982_v17, %v7982_v17 }
 0x3fc   : > { %9262 = vst [vmem:[#allocation67_spill] sm:$0xff] %v7979_v15  ;;  %v7991_v28 = vadd.f32 %v3252_v20, %v7634_v16  ;;  %v3254_v8 = vpop.f32.mrb[95].mxu0  ;;  %5792 = vmatpush1.bf16.msra.mxu1 %v5791_v11  ;;  %v3564_v55 = vmul.f32 %v7979_v15, %v7979_v15  ;;  %v3628_v20 = vmul.f32 %v7988_v33, %v7988_v33 }
 0x3fd   : > { %9264 = vst [vmem:[#allocation69_spill] sm:$0xff] %v7985_v14  ;;  %v7998_v26 = vadd.f32 %v3254_v8, %v7637_v24  ;;  %v3565_v42 = vmul.f32 %v7985_v14, %v7985_v14  ;;  %v3401_v2 = vpop.f32.mrb[44].mxu1 }
 0x3fe   : > { %9266 = vst [vmem:[#allocation71_spill] sm:$0xff] %v7991_v28  ;;  %v3634_v48 = vmul.f32 %v7991_v28, %v7991_v28  ;;  %v3403_v11 = vpop.f32.mrb[45].mxu1  ;;  %v5819_v8 = vpack.c.bf16 %v3564_v55, %v3558_v19  ;;  %v8016_v6 = vadd.f32 %v3401_v2, %v7917_v1 }
 0x3ff   : > { %9267 = vst [vmem:[#allocation72_spill] sm:$0xff] %v7998_v26  ;;  %v3635_v45 = vmul.f32 %v7998_v26, %v7998_v26  ;;  %v3258_v0 = vpop.f32.mrb[96].mxu0  ;;  %v5817_v18 = vpack.c.bf16 %v3565_v42, %v3559_v63  ;;  %v8013_v15 = vadd.f32 %v3403_v11, %v7912_v60 }
 0x400   : > { %v3260_v14 = vpop.f32.mrb[97].mxu0  ;;  %v5795_v28 = vpack.c.bf16 %v3634_v48, %v3628_v20  ;;  %9269 = vst [vmem:[#allocation74_spill] sm:$0xff] %v8016_v6  ;;  %v8028_v19 = vadd.f32 %v3258_v0, %v7634_v16 }
 0x401   : > { %9268 = vst [vmem:[#allocation73_spill] sm:$0xff] %v8013_v15  ;;  %v5793_v58 = vpack.c.bf16 %v3635_v45, %v3629_v59  ;;  %v3407_v25 = vpop.f32.mrb[46].mxu1  ;;  %5818 = vmatprep.subr.bf16.mxu0 %v5817_v18  ;;  %v8022_v63 = vadd.f32 %v3260_v14, %v7637_v24  ;;  %v3571_v14 = vmul.f32 %v8013_v15, %v8013_v15 }
 0x402   : > { %v8019_v17 = vadd.f32 %v3407_v25, %v7917_v1  ;;  %v3409_v26 = vpop.f32.mrb[47].mxu1  ;;  %5820 = vmatpush1.bf16.msra.mxu0 %v5819_v8  ;;  %9273 = vst [vmem:[#allocation78_spill] sm:$0xff] %v8028_v19  ;;  %v3570_v59 = vmul.f32 %v8016_v6, %v8016_v6 }
 0x403   : > { %9271 = vst [vmem:[#allocation76_spill] sm:$0xff] %v8022_v63  ;;  %v3264_v55 = vpop.f32.mrb[98].mxu0  ;;  %5794 = vmatprep.subr.bf16.mxu1 %v5793_v58  ;;  %v8025_v42 = vadd.f32 %v3409_v26, %v7912_v60  ;;  %v3641_v0 = vmul.f32 %v8022_v63, %v8022_v63 }
 0x404   : > { %9270 = vst [vmem:[#allocation75_spill] sm:$0xff] %v8019_v17  ;;  %v8031_v48 = vadd.f32 %v3264_v55, %v7634_v16  ;;  %v3266_v2 = vpop.f32.mrb[99].mxu0  ;;  %5796 = vmatpush1.bf16.msra.mxu1 %v5795_v28  ;;  %v3576_v25 = vmul.f32 %v8019_v17, %v8019_v17  ;;  %v3640_v55 = vmul.f32 %v8028_v19, %v8028_v19 }
 0x405   : > { %9272 = vst [vmem:[#allocation77_spill] sm:$0xff] %v8025_v42  ;;  %v8038_v11 = vadd.f32 %v3266_v2, %v7637_v24  ;;  %v3577_v58 = vmul.f32 %v8025_v42, %v8025_v42  ;;  %v3413_v26 = vpop.f32.mrb[48].mxu1 }
 0x406   : > { %9274 = vst [vmem:[#allocation79_spill] sm:$0xff] %v8031_v48  ;;  %v3646_v45 = vmul.f32 %v8031_v48, %v8031_v48  ;;  %v3415_v28 = vpop.f32.mrb[49].mxu1  ;;  %v5823_v2 = vpack.c.bf16 %v3576_v25, %v3570_v59  ;;  %v8056_v33 = vadd.f32 %v3413_v26, %v7917_v1 }
 0x407   : > { %9275 = vst [vmem:[#allocation80_spill] sm:$0xff] %v8038_v11  ;;  %v3647_v18 = vmul.f32 %v8038_v11, %v8038_v11  ;;  %v3270_v20 = vpop.f32.mrb[100].mxu0  ;;  %v5821_v8 = vpack.c.bf16 %v3577_v58, %v3571_v14  ;;  %v8053_v17 = vadd.f32 %v3415_v28, %v7912_v60 }
 0x408   : > { %v3272_v42 = vpop.f32.mrb[101].mxu0  ;;  %v5799_v48 = vpack.c.bf16 %v3646_v45, %v3640_v55  ;;  %9277 = vst [vmem:[#allocation82_spill] sm:$0xff] %v8056_v33  ;;  %v8068_v59 = vadd.f32 %v3270_v20, %v7634_v16 }
 0x409   : > { %9276 = vst [vmem:[#allocation81_spill] sm:$0xff] %v8053_v17  ;;  %v5797_v15 = vpack.c.bf16 %v3647_v18, %v3641_v0  ;;  %v3419_v6 = vpop.f32.mrb[50].mxu1  ;;  %5822 = vmatprep.subr.bf16.mxu0 %v5821_v8  ;;  %v8062_v14 = vadd.f32 %v3272_v42, %v7637_v24  ;;  %v3583_v42 = vmul.f32 %v8053_v17, %v8053_v17 }
 0x40a   : > { %v8059_v63 = vadd.f32 %v3419_v6, %v7917_v1  ;;  %v3421_v11 = vpop.f32.mrb[51].mxu1  ;;  %5824 = vmatpush1.bf16.msra.mxu0 %v5823_v2  ;;  %9281 = vst [vmem:[#allocation86_spill] sm:$0xff] %v8068_v59  ;;  %v3582_v0 = vmul.f32 %v8056_v33, %v8056_v33 }
 0x40b   : > { %9279 = vst [vmem:[#allocation84_spill] sm:$0xff] %v8062_v14  ;;  %v3276_v25 = vpop.f32.mrb[102].mxu0  ;;  %5798 = vmatprep.subr.bf16.mxu1 %v5797_v15  ;;  %v8065_v58 = vadd.f32 %v3421_v11, %v7912_v60  ;;  %v3653_v20 = vmul.f32 %v8062_v14, %v8062_v14 }
 0x40c   : > { %9278 = vst [vmem:[#allocation83_spill] sm:$0xff] %v8059_v63  ;;  %v8071_v45 = vadd.f32 %v3276_v25, %v7634_v16  ;;  %v3278_v26 = vpop.f32.mrb[103].mxu0  ;;  %5800 = vmatpush1.bf16.msra.mxu1 %v5799_v48  ;;  %v3588_v6 = vmul.f32 %v8059_v63, %v8059_v63  ;;  %v3652_v25 = vmul.f32 %v8068_v59, %v8068_v59 }
 0x40d   : > { %9280 = vst [vmem:[#allocation85_spill] sm:$0xff] %v8065_v58  ;;  %v8078_v28 = vadd.f32 %v3278_v26, %v7637_v24  ;;  %v3589_v15 = vmul.f32 %v8065_v58, %v8065_v58  ;;  %v3425_v11 = vpop.f32.mrb[52].mxu1 }
 0x40e   : > { %9282 = vst [vmem:[#allocation87_spill] sm:$0xff] %v8071_v45  ;;  %v3658_v18 = vmul.f32 %v8071_v45, %v8071_v45  ;;  %v3427_v48 = vpop.f32.mrb[53].mxu1  ;;  %v5827_v26 = vpack.c.bf16 %v3588_v6, %v3582_v0  ;;  %v8096_v19 = vadd.f32 %v3425_v11, %v7917_v1 }
 0x40f   : > { %9283 = vst [vmem:[#allocation88_spill] sm:$0xff] %v8078_v28  ;;  %v3659_v8 = vmul.f32 %v8078_v28, %v8078_v28  ;;  %v3282_v55 = vpop.f32.mrb[104].mxu0  ;;  %v5825_v2 = vpack.c.bf16 %v3589_v15, %v3583_v42  ;;  %v8093_v63 = vadd.f32 %v3427_v48, %v7912_v60 }
 0x410   : > { %v3284_v58 = vpop.f32.mrb[105].mxu0  ;;  %v5803_v45 = vpack.c.bf16 %v3658_v18, %v3652_v25  ;;  %9285 = vst [vmem:[#allocation90_spill] sm:$0xff] %v8096_v19  ;;  %v8108_v0 = vadd.f32 %v3282_v55, %v7634_v16 }
 0x411   : > { %9284 = vst [vmem:[#allocation89_spill] sm:$0xff] %v8093_v63  ;;  %v5801_v17 = vpack.c.bf16 %v3659_v8, %v3653_v20  ;;  %v3431_v33 = vpop.f32.mrb[54].mxu1  ;;  %5826 = vmatprep.subr.bf16.mxu0 %v5825_v2  ;;  %v8102_v42 = vadd.f32 %v3284_v58, %v7637_v24  ;;  %v3595_v58 = vmul.f32 %v8093_v63, %v8093_v63 }
 0x412   : > { %v8099_v14 = vadd.f32 %v3431_v33, %v7917_v1  ;;  %v3433_v28 = vpop.f32.mrb[55].mxu1  ;;  %5828 = vmatpush1.bf16.msra.mxu0 %v5827_v26  ;;  %9289 = vst [vmem:[#allocation94_spill] sm:$0xff] %v8108_v0  ;;  %v3594_v20 = vmul.f32 %v8096_v19, %v8096_v19 }
 0x413   : > { %9287 = vst [vmem:[#allocation92_spill] sm:$0xff] %v8102_v42  ;;  %v3288_v6 = vpop.f32.mrb[106].mxu0  ;;  %5802 = vmatprep.subr.bf16.mxu1 %v5801_v17  ;;  %v8105_v15 = vadd.f32 %v3433_v28, %v7912_v60  ;;  %v3665_v55 = vmul.f32 %v8102_v42, %v8102_v42 }
 0x414   : > { %9286 = vst [vmem:[#allocation91_spill] sm:$0xff] %v8099_v14  ;;  %v8111_v18 = vadd.f32 %v3288_v6, %v7634_v16  ;;  %v3290_v11 = vpop.f32.mrb[107].mxu0  ;;  %5804 = vmatpush1.bf16.msra.mxu1 %v5803_v45  ;;  %v3600_v33 = vmul.f32 %v8099_v14, %v8099_v14  ;;  %v3664_v6 = vmul.f32 %v8108_v0, %v8108_v0 }
 0x415   : > { %9288 = vst [vmem:[#allocation93_spill] sm:$0xff] %v8105_v15  ;;  %v8118_v48 = vadd.f32 %v3290_v11, %v7637_v24  ;;  %v3601_v17 = vmul.f32 %v8105_v15, %v8105_v15  ;;  %v3437_v28 = vpop.f32.mrb[56].mxu1 }
 0x416   : > { %9290 = vst [vmem:[#allocation95_spill] sm:$0xff] %v8111_v18  ;;  %v3670_v8 = vmul.f32 %v8111_v18, %v8111_v18  ;;  %v3439_v45 = vpop.f32.mrb[57].mxu1  ;;  %v5831_v11 = vpack.c.bf16 %v3600_v33, %v3594_v20  ;;  %v8136_v59 = vadd.f32 %v3437_v28, %v7917_v1 }
 0x417   : > { %9291 = vst [vmem:[#allocation96_spill] sm:$0xff] %v8118_v48  ;;  %v3671_v2 = vmul.f32 %v8118_v48, %v8118_v48  ;;  %v3294_v25 = vpop.f32.mrb[108].mxu0  ;;  %v5829_v26 = vpack.c.bf16 %v3601_v17, %v3595_v58  ;;  %v8133_v14 = vadd.f32 %v3439_v45, %v7912_v60 }
 0x418   : > { %v3296_v15 = vpop.f32.mrb[109].mxu0  ;;  %v5807_v18 = vpack.c.bf16 %v3670_v8, %v3664_v6  ;;  %9293 = vst [vmem:[#allocation98_spill] sm:$0xff] %v8136_v59  ;;  %v8148_v20 = vadd.f32 %v3294_v25, %v7634_v16 }
 0x419   : > { %9292 = vst [vmem:[#allocation97_spill] sm:$0xff] %v8133_v14  ;;  %v5805_v63 = vpack.c.bf16 %v3671_v2, %v3665_v55  ;;  %v3443_v19 = vpop.f32.mrb[58].mxu1  ;;  %5830 = vmatprep.subr.bf16.mxu0 %v5829_v26  ;;  %v8142_v58 = vadd.f32 %v3296_v15, %v7637_v24  ;;  %v3607_v15 = vmul.f32 %v8133_v14, %v8133_v14 }
 0x41a   : > { %v8139_v42 = vadd.f32 %v3443_v19, %v7917_v1  ;;  %v3445_v48 = vpop.f32.mrb[59].mxu1  ;;  %5832 = vmatpush1.bf16.msra.mxu0 %v5831_v11  ;;  %9297 = vst [vmem:[#allocation102_spill] sm:$0xff] %v8148_v20  ;;  %v3606_v55 = vmul.f32 %v8136_v59, %v8136_v59 }
 0x41b   : > { %9295 = vst [vmem:[#allocation100_spill] sm:$0xff] %v8142_v58  ;;  %v3300_v33 = vpop.f32.mrb[110].mxu0  ;;  %5806 = vmatprep.subr.bf16.mxu1 %v5805_v63  ;;  %v8145_v17 = vadd.f32 %v3445_v48, %v7912_v60  ;;  %v3677_v25 = vmul.f32 %v8142_v58, %v8142_v58 }
 0x41c   : > { %9294 = vst [vmem:[#allocation99_spill] sm:$0xff] %v8139_v42  ;;  %v8151_v8 = vadd.f32 %v3300_v33, %v7634_v16  ;;  %v3302_v28 = vpop.f32.mrb[111].mxu0  ;;  %5808 = vmatpush1.bf16.msra.mxu1 %v5807_v18  ;;  %v3612_v19 = vmul.f32 %v8139_v42, %v8139_v42  ;;  %v3676_v33 = vmul.f32 %v8148_v20, %v8148_v20 }
 0x41d   : > { %9296 = vst [vmem:[#allocation101_spill] sm:$0xff] %v8145_v17  ;;  %v8158_v45 = vadd.f32 %v3302_v28, %v7637_v24  ;;  %v3613_v63 = vmul.f32 %v8145_v17, %v8145_v17  ;;  %v3449_v48 = vpop.f32.mrb[60].mxu1 }
 0x41e   : > { %9298 = vst [vmem:[#allocation103_spill] sm:$0xff] %v8151_v8  ;;  %v3682_v2 = vmul.f32 %v8151_v8, %v8151_v8  ;;  %v3451_v18 = vpop.f32.mrb[61].mxu1  ;;  %v5835_v28 = vpack.c.bf16 %v3612_v19, %v3606_v55 }
 0x41f   : > { %9299 = vst [vmem:[#allocation104_spill] sm:$0xff] %v8158_v45  ;;  %v3683_v26 = vmul.f32 %v8158_v45, %v8158_v45  ;;  %v3306_v6 = vpop.f32.mrb[112].mxu0  ;;  %v5833_v11 = vpack.c.bf16 %v3613_v63, %v3607_v15  ;;  %v8176_v14 = vadd.f32 %v3451_v18, %v7912_v60  ;;  %v8182_v15 = vadd.f32 %v3449_v48, %v7917_v1 }
 0x420   : > { %v3308_v17 = vpop.f32.mrb[113].mxu0  ;;  %v5811_v58 = vpack.c.bf16 %v3682_v2, %v3676_v33  ;;  %v8179_v0 = vadd.f32 %v3306_v6, %v7634_v16 }
 0x421   : > { %v8173_v42 = vadd.f32 %v3308_v17, %v7637_v24  ;;  %9301 = vst [vmem:[#allocation106_spill] sm:$0xff] %v8176_v14  ;;  %v5809_v8 = vpack.c.bf16 %v3683_v26, %v3677_v25  ;;  %v3455_v59 = vpop.f32.mrb[62].mxu1  ;;  %5834 = vmatprep.subr.bf16.mxu0 %v5833_v11  ;;  %9303 = vst [vmem:[#allocation108_spill] sm:$0xff] %v8182_v15  ;;  %v3619_v48 = vmul.f32 %v8176_v14, %v8176_v14  ;;  %v9306_v26 = vmov 1.0  }
 0x422   : > { %9302 = vst [vmem:[#allocation107_spill] sm:$0xff] %v8179_v0  ;;  %v8185_v63 = vadd.f32 %v3455_v59, %v7917_v1  ;;  %v3457_v19 = vpop.f32.mrb[63].mxu1  ;;  %5836 = vmatpush1.bf16.msra.mxu0 %v5835_v28  ;;  %v3688_v2 = vmul.f32 %v8179_v0, %v8179_v0 }
 0x423   : > { %9300 = vst [vmem:[#allocation105_spill] sm:$0xff] %v8173_v42  ;;  %v3689_v24 = vmul.f32 %v8173_v42, %v8173_v42  ;;  %5810 = vmatprep.subr.bf16.mxu1 %v5809_v8  ;;  %v8190_v17 = vadd.f32 %v3457_v19, %v7912_v60  ;;  %v3618_v8 = vmul.f32 %v8182_v15, %v8182_v15 }
 0x424   : > { %9304 = vst [vmem:[#allocation109_spill] sm:$0xff] %v8185_v63  ;;  %5812 = vmatpush1.bf16.msra.mxu1 %v5811_v58  ;;  %v3624_v16 = vmul.f32 %v8185_v63, %v8185_v63 }
 0x425   : > { %9305 = vst [vmem:[#allocation110_spill] sm:$0xff] %v8190_v17  ;;  %3815 = vmatprep.subr.mxu1 %v3689_v24  ;;  %v3625_v59 = vmul.f32 %v8190_v17, %v8190_v17  ;;  %v3461_v55 = vpop.f32.mrb[64].mxu1  ;;  %v9310_v24 = vmov 0.0  }
 0x426   : > { %v3463_v18 = vpop.f32.mrb[65].mxu1  ;;  %v5839_v58 = vpack.c.bf16 %v3624_v16, %v3618_v8  ;;  %v8209_v33 = vadd.f32 %v3461_v55, %v7917_v1 }
 0x427   : > { %v5837_v25 = vpack.c.bf16 %v3625_v59, %v3619_v48  ;;  %v8206_v6 = vadd.f32 %v3463_v18, %v7912_v60 }
 0x428   : > { %3816 = vmatpush1.msra.mxu1 %v3688_v2  ;;  %9308 = vst [vmem:[#allocation112_spill] sm:$0xff] %v8209_v33  ;;  %v3630_v8 = vmul.f32 %v8209_v33, %v8209_v33 }
 0x429   : > { %5485 = vmatmul.mubr.msk.f32.vlgmr.msra.gmra.mrb[86].mxu1 %vm7517_vm5, %v9306_v26  ;;  %9307 = vst [vmem:[#allocation111_spill] sm:$0xff] %v8206_v6  ;;  %v3467_v11 = vpop.f32.mrb[66].mxu1  ;;  %5838 = vmatprep.subr.bf16.mxu0 %v5837_v25  ;;  %v3631_v59 = vmul.f32 %v8206_v6, %v8206_v6 }
 0x42a   : > { %v8212_v28 = vadd.f32 %v3467_v11, %v7917_v1  ;;  %v3469_v19 = vpop.f32.mrb[67].mxu1  ;;  %5840 = vmatpush1.bf16.msra.mxu0 %v5839_v58  ;;  %4213 = vmatprep.mubr.f32.mxu1 %v9310_v24 }
 0x42b   : > { %v8216_v16 = vadd.f32 %v3469_v19, %v7912_v60 }
 0x42c   : > { %9309 = vst [vmem:[#allocation113_spill] sm:$0xff] %v8212_v28  ;;  %v3636_v48 = vmul.f32 %v8212_v28, %v8212_v28 }
 0x42d   : > { %9311 = vst [vmem:[#allocation114_spill] sm:$0xff] %v8216_v16  ;;  %v3637_v55 = vmul.f32 %v8216_v16, %v8216_v16  ;;  %v3473_v2 = vpop.f32.mrb[68].mxu1 }
 0x42e   : > { %v3475_v18 = vpop.f32.mrb[69].mxu1  ;;  %v5843_v58 = vpack.c.bf16 %v3636_v48, %v3630_v8  ;;  %v8230_v28 = vadd.f32 %v3473_v2, %v7917_v1 }
 0x42f   : > { %v5841_v25 = vpack.c.bf16 %v3637_v55, %v3631_v59  ;;  %v8227_v11 = vadd.f32 %v3475_v18, %v7912_v60 }
 0x430   : > { %9313 = vst [vmem:[#allocation116_spill] sm:$0xff] %v8230_v28  ;;  %v3642_v2 = vmul.f32 %v8230_v28, %v8230_v28 }
 0x431   : > { %9312 = vst [vmem:[#allocation115_spill] sm:$0xff] %v8227_v11  ;;  %v3479_v19 = vpop.f32.mrb[70].mxu1  ;;  %5842 = vmatprep.subr.bf16.mxu0 %v5841_v25  ;;  %v3643_v48 = vmul.f32 %v8227_v11, %v8227_v11 }
 0x432   : > { %v8233_v6 = vadd.f32 %v3479_v19, %v7917_v1  ;;  %v3481_v17 = vpop.f32.mrb[71].mxu1  ;;  %5844 = vmatpush1.bf16.msra.mxu0 %v5843_v58 }
 0x433   : > { %v8236_v16 = vadd.f32 %v3481_v17, %v7912_v60 }
 0x434   : > { %9314 = vst [vmem:[#allocation117_spill] sm:$0xff] %v8233_v6  ;;  %v3648_v59 = vmul.f32 %v8233_v6, %v8233_v6 }
 0x435   : > { %9315 = vst [vmem:[#allocation118_spill] sm:$0xff] %v8236_v16  ;;  %v3649_v55 = vmul.f32 %v8236_v16, %v8236_v16  ;;  %v3485_v8 = vpop.f32.mrb[72].mxu1 }
 0x436   : > { %v3487_v18 = vpop.f32.mrb[73].mxu1  ;;  %v5847_v19 = vpack.c.bf16 %v3648_v59, %v3642_v2  ;;  %v8250_v6 = vadd.f32 %v3485_v8, %v7917_v1 }
 0x437   : > { %v5845_v25 = vpack.c.bf16 %v3649_v55, %v3643_v48  ;;  %v8247_v58 = vadd.f32 %v3487_v18, %v7912_v60 }
 0x438   : > { %9317 = vst [vmem:[#allocation120_spill] sm:$0xff] %v8250_v6  ;;  %v3654_v8 = vmul.f32 %v8250_v6, %v8250_v6 }
 0x439   : > { %9316 = vst [vmem:[#allocation119_spill] sm:$0xff] %v8247_v58  ;;  %v3491_v17 = vpop.f32.mrb[74].mxu1  ;;  %5846 = vmatprep.subr.bf16.mxu0 %v5845_v25  ;;  %v3655_v59 = vmul.f32 %v8247_v58, %v8247_v58 }
 0x43a   : > { %v8253_v11 = vadd.f32 %v3491_v17, %v7917_v1  ;;  %v3493_v33 = vpop.f32.mrb[75].mxu1  ;;  %5848 = vmatpush1.bf16.msra.mxu0 %v5847_v19 }
 0x43b   : > { %v8256_v16 = vadd.f32 %v3493_v33, %v7912_v60 }
 0x43c   : > { %9318 = vst [vmem:[#allocation121_spill] sm:$0xff] %v8253_v11  ;;  %v3660_v48 = vmul.f32 %v8253_v11, %v8253_v11 }
 0x43d   : > { %9319 = vst [vmem:[#allocation122_spill] sm:$0xff] %v8256_v16  ;;  %v3661_v55 = vmul.f32 %v8256_v16, %v8256_v16  ;;  %v3497_v2 = vpop.f32.mrb[76].mxu1 }
 0x43e   : > { %v3499_v18 = vpop.f32.mrb[77].mxu1  ;;  %v5851_v17 = vpack.c.bf16 %v3660_v48, %v3654_v8  ;;  %v8270_v11 = vadd.f32 %v3497_v2, %v7917_v1 }
 0x43f   : > { %v5849_v25 = vpack.c.bf16 %v3661_v55, %v3655_v59  ;;  %v8267_v19 = vadd.f32 %v3499_v18, %v7912_v60 }
 0x440   : > { %9321 = vst [vmem:[#allocation124_spill] sm:$0xff] %v8270_v11  ;;  %v3666_v2 = vmul.f32 %v8270_v11, %v8270_v11  ;;  %v3941_v11 = vadd.s32 120, %v6683_v30 }
 0x441   : > { %9320 = vst [vmem:[#allocation123_spill] sm:$0xff] %v8267_v19  ;;  %v3503_v33 = vpop.f32.mrb[78].mxu1  ;;  %5850 = vmatprep.subr.bf16.mxu0 %v5849_v25  ;;  %v3667_v48 = vmul.f32 %v8267_v19, %v8267_v19 }
 0x442   : > { %v8273_v58 = vadd.f32 %v3503_v33, %v7917_v1  ;;  %v3505_v28 = vpop.f32.mrb[79].mxu1  ;;  %5852 = vmatpush1.bf16.msra.mxu0 %v5851_v17 }
 0x443   : > { %v8276_v16 = vadd.f32 %v3505_v28, %v7912_v60 }
 0x444   : > { %9322 = vst [vmem:[#allocation125_spill] sm:$0xff] %v8273_v58  ;;  %v3672_v59 = vmul.f32 %v8273_v58, %v8273_v58 }
 0x445   : > { %9323 = vst [vmem:[#allocation126_spill] sm:$0xff] %v8276_v16  ;;  %v3673_v55 = vmul.f32 %v8276_v16, %v8276_v16  ;;  %v3509_v8 = vpop.f32.mrb[80].mxu1 }
 0x446   : > { %v3511_v18 = vpop.f32.mrb[81].mxu1  ;;  %v5855_v33 = vpack.c.bf16 %v3672_v59, %v3666_v2  ;;  %v8290_v58 = vadd.f32 %v3509_v8, %v7917_v1 }
 0x447   : > { %v5853_v25 = vpack.c.bf16 %v3673_v55, %v3667_v48  ;;  %v8287_v17 = vadd.f32 %v3511_v18, %v7912_v60 }
 0x448   : > { %9325 = vst [vmem:[#allocation128_spill] sm:$0xff] %v8290_v58  ;;  %v3678_v8 = vmul.f32 %v8290_v58, %v8290_v58  ;;  %v3940_v58 = vadd.s32 112, %v6683_v30 }
 0x449   : > { %9324 = vst [vmem:[#allocation127_spill] sm:$0xff] %v8287_v17  ;;  %v3515_v28 = vpop.f32.mrb[82].mxu1  ;;  %5854 = vmatprep.subr.bf16.mxu0 %v5853_v25  ;;  %v3679_v59 = vmul.f32 %v8287_v17, %v8287_v17 }
 0x44a   : > { %v8293_v19 = vadd.f32 %v3515_v28, %v7917_v1  ;;  %v3517_v6 = vpop.f32.mrb[83].mxu1  ;;  %5856 = vmatpush1.bf16.msra.mxu0 %v5855_v33 }
 0x44b   : > { %v8296_v16 = vadd.f32 %v3517_v6, %v7912_v60 }
 0x44c   : > { %9326 = vst [vmem:[#allocation129_spill] sm:$0xff] %v8293_v19  ;;  %v3684_v48 = vmul.f32 %v8293_v19, %v8293_v19 }
 0x44d   : > { %9327 = vst [vmem:[#allocation130_spill] sm:$0xff] %v8296_v16  ;;  %v3685_v55 = vmul.f32 %v8296_v16, %v8296_v16  ;;  %v3521_v2 = vpop.f32.mrb[84].mxu1 }
 0x44e   : > { %v3523_v18 = vpop.f32.mrb[85].mxu1  ;;  %v5859_v6 = vpack.c.bf16 %v3684_v48, %v3678_v8  ;;  %v8310_v28 = vadd.f32 %v3521_v2, %v7917_v1 }
 0x44f   : > { %v8307_v25 = vadd.f32 %v3523_v18, %v7912_v60  ;;  %v5857_v33 = vpack.c.bf16 %v3685_v55, %v3679_v59  ;;  %v3977_v60 = vadd.s32 1, %v7505_v5  ;;  %v8322_v59 = vmul.u32 50, %v7505_v5 }
 0x450   : > { %9329 = vst [vmem:[#allocation132_spill] sm:$0xff] %v8310_v28  ;;  %v3690_v16 = vmul.f32 %v8310_v28, %v8310_v28  ;;  %v3928_v5 = vadd.s32 16, %v6683_v30  ;;  %v3929_v18 = vadd.s32 24, %v6683_v30 }
 0x451   : > { %9328 = vst [vmem:[#allocation131_spill] sm:$0xff] %v8307_v25  ;;  %v3691_v19 = vmul.f32 %v8307_v25, %v8307_v25  ;;  %5858 = vmatprep.subr.bf16.mxu0 %v5857_v33  ;;  %vm3952_vm2 = vcmp.ge.s32.totalorder %v6683_v30, %v8322_v59  ;;  %vm3953_vm9 = vcmp.ge.s32.totalorder %v3927_v29, %v8322_v59 }
 0x452   : > { %5860 = vmatpush1.bf16.msra.mxu0 %v5859_v6  ;;  %vm3954_vm15 = vcmp.ge.s32.totalorder %v3928_v5, %v8322_v59  ;;  %vm3955_vm3 = vcmp.ge.s32.totalorder %v3929_v18, %v8322_v59  ;;  %v3930_v6 = vadd.s32 32, %v6683_v30 }
 0x453   : > { %3886 = vmatprep.subr.mxu0 %v3691_v19  ;;  %v8324_v19 = vmul.u32 50, %v3977_v60 }
 0x455   : > { %vm3979_vm6 = vcmp.lt.s32.totalorder %v6683_v30, %v8324_v19  ;;  %vm3980_vm10 = vcmp.lt.s32.totalorder %v3927_v29, %v8324_v19  ;;  %vm3981_vm0 = vcmp.lt.s32.totalorder %v3928_v5, %v8324_v19  ;;  %vm3982_vm4 = vcmp.lt.s32.totalorder %v3929_v18, %v8324_v19 }
 0x456   : > { %3887 = vmatpush1.msra.mxu0 %v3690_v16  ;;  %vm4004_vm7 = vmand %vm3952_vm2, %vm3979_vm6  ;;  %vm3956_vm2 = vcmp.ge.s32.totalorder %v3930_v6, %v8322_v59  ;;  %vm3983_vm6 = vcmp.lt.s32.totalorder %v3930_v6, %v8324_v19  ;;  %v3932_v29 = vadd.s32 48, %v6683_v30  ;;  %v3933_v5 = vadd.s32 56, %v6683_v30 }
 0x457   : > { %5487 = vmatmul.mubr.msk.f32.vlgmr.msra.gmra.mrb[116].mxu0 %vm7517_vm5, %v9306_v26  ;;  %v8335_v2 = vsel %vm4004_vm7, 1.0, %v9310_v24  ;;  %vm4005_vm14 = vmand %vm3953_vm9, %vm3980_vm10  ;;  %v3935_v18 = vadd.s32 72, %v6683_v30 }
 0x458   : > { %4428 = vmatprep.mubr.f32.mxu0 %v9310_v24  ;;  %v8346_v33 = vsel %vm4005_vm14, 1.0, %v9310_v24  ;;  %vm4006_vm1 = vmand %vm3954_vm15, %vm3981_vm0  ;;  %vm3985_vm14 = vcmp.lt.s32.totalorder %v3932_v29, %v8324_v19  ;;  %vm3959_vm0 = vcmp.ge.s32.totalorder %v3933_v5, %v8322_v59 }
 0x459   : > { %v8355_v60 = vsel %vm4006_vm1, 1.0, %v9310_v24  ;;  %vm4007_vm5 = vmand %vm3955_vm3, %vm3982_vm4  ;;  %vm3986_vm1 = vcmp.lt.s32.totalorder %v3933_v5, %v8324_v19  ;;  %v3937_v5 = vadd.s32 88, %v6683_v30 }
 0x45a   : > { %vm4008_vm7 = vmand %vm3956_vm2, %vm3983_vm6  ;;  %vm3961_vm6 = vcmp.ge.s32.totalorder %v3935_v18, %v8322_v59 }
 0x45b   : > { %vm4011_vm3 = vmand %vm3959_vm0, %vm3986_vm1 }
 0x45c   : > { %v8400_v6 = vsel %vm4011_vm3, 1.0, %v9310_v24 }
 0x4c6   : > { %v3762_v1 = vpop.f32.mrb[114].mxu0 }
 0x4c7   : > { %6013 = vrsqrt.f32 %v3762_v1  ;;  %v3764_v48 = vpop.f32.mrb[115].mxu0  ;;  %vm3909_vm12 = vcmp.gt.f32.partialorder %v3762_v1, 1e-24  ;;  %v3931_v1 = vadd.s32 40, %v6683_v30 }
 0x4c8   : > { %6015 = vrsqrt.f32 %v3764_v48  ;;  %vm3910_vm11 = vcmp.gt.f32.partialorder %v3764_v48, 1e-24  ;;  %v8364_v48 = vsel %vm4007_vm5, 1.0, %v9310_v24 }
 0x4c9   : > { %vm3957_vm9 = vcmp.ge.s32.totalorder %v3931_v1, %v8322_v59  ;;  %vm3984_vm10 = vcmp.lt.s32.totalorder %v3931_v1, %v8324_v19  ;;  %v3936_v1 = vadd.s32 80, %v6683_v30 }
 0x4d1   : > { %v6014_v26 = vpop.eup %6013 }
 0x4d2   : > { %v6016_v16 = vpop.eup %6015  ;;  %v3921_v8 = vsel %vm3909_vm12, %v6014_v26, 1e+12  ;;  %v8373_v26 = vsel %vm4008_vm7, 1.0, %v9310_v24  ;;  %vm3958_vm12 = vcmp.ge.s32.totalorder %v3932_v29, %v8322_v59  ;;  %vm3988_vm7 = vcmp.lt.s32.totalorder %v3935_v18, %v8324_v19 }
 0x4d3   : > { %v3922_v55 = vsel %vm3910_vm11, %v6016_v16, 1e+12  ;;  %vm4009_vm11 = vmand %vm3957_vm9, %vm3984_vm10  ;;  %vm3962_vm10 = vcmp.ge.s32.totalorder %v3936_v1, %v8322_v59  ;;  %v3938_v18 = vadd.s32 96, %v6683_v30 }
 0x4d4   : > { %5488 = vmatprep.subr.msk.mxu1 %vm4130_vm8, %v3922_v55  ;;  %v8382_v16 = vsel %vm4009_vm11, 1.0, %v9310_v24  ;;  %vm4010_vm15 = vmand %vm3958_vm12, %vm3985_vm14  ;;  %v3934_v55 = vadd.s32 64, %v6683_v30  ;;  %vm3989_vm11 = vcmp.lt.s32.totalorder %v3936_v1, %v8324_v19  ;;  %vm3963_vm14 = vcmp.ge.s32.totalorder %v3937_v5, %v8322_v59 }
 0x4d5   : > { %5489 = vmatpush1.msk.msra.mxu1 %vm4130_vm8, %v3921_v8  ;;  %v8391_v8 = vsel %vm4010_vm15, 1.0, %v9310_v24  ;;  %vm4013_vm9 = vmand %vm3961_vm6, %vm3988_vm7  ;;  %vm3990_vm15 = vcmp.lt.s32.totalorder %v3937_v5, %v8324_v19  ;;  %vm3964_vm1 = vcmp.ge.s32.totalorder %v3938_v18, %v8322_v59  ;;  %vm3991_vm3 = vcmp.lt.s32.totalorder %v3938_v18, %v8324_v19 }
 0x4d6   : > { %5490 = vmatmul.mubr.msk.f32.vlgmr.msra.gmra.mrb[88].mxu1 %vm4054_vm13, %v8335_v2  ;;  %vm3960_vm4 = vcmp.ge.s32.totalorder %v3934_v55, %v8322_v59  ;;  %vm3987_vm5 = vcmp.lt.s32.totalorder %v3934_v55, %v8324_v19  ;;  %v8418_v55 = vsel %vm4013_vm9, 1.0, %v9310_v24  ;;  %vm4014_vm12 = vmand %vm3962_vm10, %vm3989_vm11  ;;  %v3939_v5 = vadd.s32 104, %v6683_v30 }
 0x4d7   : > { %4219 = vmatprep.mubr.f32.mxu1 %v9310_v24  ;;  %vm4012_vm2 = vmand %vm3960_vm4, %vm3987_vm5  ;;  %v8427_v1 = vsel %vm4014_vm12, 1.0, %v9310_v24  ;;  %vm3966_vm9 = vcmp.ge.s32.totalorder %v3940_v58, %v8322_v59  ;;  %vm3993_vm10 = vcmp.lt.s32.totalorder %v3940_v58, %v8324_v19  ;;  %v3942_v58 = vadd.s32 128, %v6683_v30 }
 0x4d8   : > { %v8409_v29 = vsel %vm4012_vm2, 1.0, %v9310_v24  ;;  %vm4015_vm0 = vmand %vm3963_vm14, %vm3990_vm15  ;;  %vm3965_vm5 = vcmp.ge.s32.totalorder %v3939_v5, %v8322_v59  ;;  %vm3992_vm2 = vcmp.lt.s32.totalorder %v3939_v5, %v8324_v19  ;;  %vm3967_vm14 = vcmp.ge.s32.totalorder %v3941_v11, %v8322_v59 }
 0x4d9   : > { %v8436_v17 = vsel %vm4015_vm0, 1.0, %v9310_v24  ;;  %vm4016_vm4 = vmand %vm3964_vm1, %vm3991_vm3  ;;  %vm3994_vm15 = vcmp.lt.s32.totalorder %v3941_v11, %v8324_v19  ;;  %vm3968_vm1 = vcmp.ge.s32.totalorder %v3942_v58, %v8322_v59  ;;  %vm3995_vm3 = vcmp.lt.s32.totalorder %v3942_v58, %v8324_v19 }
 0x4da   : > { %5491 = vmatmul.mubr.msk.f32.gmra.mrb[90].mxu1 %vm4054_vm13, %v8346_v33  ;;  %v8445_v18 = vsel %vm4016_vm4, 1.0, %v9310_v24  ;;  %vm4017_vm6 = vmand %vm3965_vm5, %vm3992_vm2  ;;  %v3944_v11 = vadd.s32 144, %v6683_v30 }
 0x4db   : > { %4225 = vmatprep.mubr.f32.mxu1 %v9310_v24  ;;  %v8454_v63 = vsel %vm4017_vm6, 1.0, %v9310_v24  ;;  %vm4018_vm12 = vmand %vm3966_vm9, %vm3993_vm10 }
 0x4dc   : > { %vm4019_vm0 = vmand %vm3967_vm14, %vm3994_vm15  ;;  %vm3997_vm9 = vcmp.lt.s32.totalorder %v3944_v11, %v8324_v19 }
 0x4dd   : > { %vm4020_vm4 = vmand %vm3968_vm1, %vm3995_vm3 }
 0x4de   : > { %5492 = vmatmul.mubr.msk.f32.gmra.mrb[92].mxu1 %vm4054_vm13, %v8355_v60 }
 0x4df   : > { %4231 = vmatprep.mubr.f32.mxu1 %v9310_v24 }
 0x4e2   : > { %5493 = vmatmul.mubr.msk.f32.gmra.mrb[94].mxu1 %vm4054_vm13, %v8364_v48 }
 0x4e3   : > { %4237 = vmatprep.mubr.f32.mxu1 %v9310_v24 }
 0x4e6   : > { %5494 = vmatmul.mubr.msk.f32.gmra.mrb[96].mxu1 %vm4054_vm13, %v8373_v26 }
 0x4e7   : > { %4243 = vmatprep.mubr.f32.mxu1 %v9310_v24 }
 0x4ea   : > { %5495 = vmatmul.mubr.msk.f32.gmra.mrb[98].mxu1 %vm4054_vm13, %v8382_v16 }
 0x4eb   : > { %4249 = vmatprep.mubr.f32.mxu1 %v9310_v24 }
 0x4ee   : > { %5496 = vmatmul.mubr.msk.f32.gmra.mrb[100].mxu1 %vm4054_vm13, %v8391_v8 }
 0x4ef   : > { %4255 = vmatprep.mubr.f32.mxu1 %v9310_v24 }
 0x4f2   : > { %5497 = vmatmul.mubr.msk.f32.gmra.mrb[102].mxu1 %vm4054_vm13, %v8400_v6 }
 0x4f3   : > { %4261 = vmatprep.mubr.f32.mxu1 %v9310_v24 }
 0x4f6   : > { %5498 = vmatmul.mubr.msk.f32.gmra.mrb[104].mxu1 %vm4054_vm13, %v8409_v29 }
 0x4f7   : > { %4267 = vmatprep.mubr.f32.mxu1 %v9310_v24 }
 0x4fa   : > { %5499 = vmatmul.mubr.msk.f32.gmra.mrb[106].mxu1 %vm4054_vm13, %v8418_v55 }
 0x4fb   : > { %4273 = vmatprep.mubr.f32.mxu1 %v9310_v24 }
 0x4fc   : > { %v3833_v25 = vpop.f32.mrb[86].mxu1 }
 0x4fd   : > { %6017 = vrsqrt.f32 %v3833_v25  ;;  %v3835_v28 = vpop.f32.mrb[87].mxu1  ;;  %vm3911_vm7 = vcmp.gt.f32.partialorder %v3833_v25, 1e-24 }
 0x4fe   : > { %6019 = vrsqrt.f32 %v3835_v28  ;;  %5500 = vmatmul.mubr.msk.f32.gmra.mrb[108].mxu1 %vm4054_vm13, %v8427_v1  ;;  %vm3912_vm11 = vcmp.gt.f32.partialorder %v3835_v28, 1e-24  ;;  %v8465_v28 = vsel %vm4018_vm12, 1.0, %v9310_v24 }
 0x4ff   : > { %4279 = vmatprep.mubr.f32.mxu1 %v9310_v24 }
 0x502   : > { %5501 = vmatmul.mubr.msk.f32.gmra.mrb[110].mxu1 %vm4054_vm13, %v8436_v17 }
 0x503   : > { %4285 = vmatprep.mubr.f32.mxu1 %v9310_v24 }
 0x506   : > { %5502 = vmatmul.mubr.msk.f32.gmra.mrb[112].mxu1 %vm4054_vm13, %v8445_v18 }
 0x507   : > { %v6018_v5 = vpop.eup %6017  ;;  %4291 = vmatprep.mubr.f32.mxu1 %v9310_v24 }
 0x508   : > { %v6020_v42 = vpop.eup %6019  ;;  %v3923_v0 = vsel %vm3911_vm7, %v6018_v5, 1e+12  ;;  %v8489_v5 = vsel %vm4020_vm4, 1.0, %v9310_v24  ;;  %vm3970_vm7 = vcmp.ge.s32.totalorder %v3944_v11, %v8322_v59 }
 0x509   : > { %v3924_v25 = vsel %vm3912_vm11, %v6020_v42, 1e+12  ;;  %v3943_v42 = vadd.s32 136, %v6683_v30  ;;  %vm4022_vm10 = vmand %vm3970_vm7, %vm3997_vm9 }
 0x50a   : > { %5515 = vmatprep.subr.msk.mxu0 %vm4130_vm8, %v3924_v25  ;;  %5503 = vmatmul.mubr.msk.f32.gmra.mrb[114].mxu1 %vm4054_vm13, %v8454_v63  ;;  %v3945_v25 = vadd.s32 152, %v6683_v30  ;;  %v8513_v11 = vsel %vm4022_vm10, 1.0, %v9310_v24 }
 0x50b   : > { %5516 = vmatpush1.msk.msra.mxu0 %vm4130_vm8, %v3923_v0  ;;  %4297 = vmatprep.mubr.f32.mxu1 %v9310_v24  ;;  %v8477_v0 = vsel %vm4019_vm0, 1.0, %v9310_v24  ;;  %vm3969_vm5 = vcmp.ge.s32.totalorder %v3943_v42, %v8322_v59  ;;  %vm3996_vm2 = vcmp.lt.s32.totalorder %v3943_v42, %v8324_v19  ;;  %v3946_v42 = vadd.s32 160, %v6683_v30 }
 0x50c   : > { %5517 = vmatmul.mubr.msk.f32.vlgmr.msra.gmra.mrb[118].mxu0 %vm4054_vm13, %v8335_v2  ;;  %vm4021_vm6 = vmand %vm3969_vm5, %vm3996_vm2  ;;  %vm3971_vm11 = vcmp.ge.s32.totalorder %v3945_v25, %v8322_v59  ;;  %vm3998_vm12 = vcmp.lt.s32.totalorder %v3945_v25, %v8324_v19  ;;  %v3947_v25 = vadd.s32 168, %v6683_v30 }
 0x50d   : > { %4434 = vmatprep.mubr.f32.mxu0 %v9310_v24  ;;  %v8501_v58 = vsel %vm4021_vm6, 1.0, %v9310_v24  ;;  %vm4023_vm14 = vmand %vm3971_vm11, %vm3998_vm12  ;;  %vm3972_vm15 = vcmp.ge.s32.totalorder %v3946_v42, %v8322_v59  ;;  %vm3999_vm0 = vcmp.lt.s32.totalorder %v3946_v42, %v8324_v19  ;;  %v3948_v42 = vadd.s32 176, %v6683_v30 }
 0x50e   : > { %5504 = vmatmul.mubr.msk.f32.gmra.mrb[116].mxu1 %vm4054_vm13, %v8465_v28  ;;  %v8525_v14 = vsel %vm4023_vm14, 1.0, %v9310_v24  ;;  %vm4024_vm1 = vmand %vm3972_vm15, %vm3999_vm0  ;;  %vm3973_vm3 = vcmp.ge.s32.totalorder %v3947_v25, %v8322_v59  ;;  %vm4000_vm4 = vcmp.lt.s32.totalorder %v3947_v25, %v8324_v19  ;;  %v3949_v25 = vadd.s32 184, %v6683_v30 }
 0x50f   : > { %4303 = vmatprep.mubr.f32.mxu1 %v9310_v24  ;;  %v8537_v15 = vsel %vm4024_vm1, 1.0, %v9310_v24  ;;  %vm4025_vm5 = vmand %vm3973_vm3, %vm4000_vm4  ;;  %vm3974_vm2 = vcmp.ge.s32.totalorder %v3948_v42, %v8322_v59  ;;  %vm4001_vm6 = vcmp.lt.s32.totalorder %v3948_v42, %v8324_v19  ;;  %v3950_v42 = vadd.s32 192, %v6683_v30 }
 0x510   : > { %5518 = vmatmul.mubr.msk.f32.gmra.mrb[120].mxu0 %vm4054_vm13, %v8346_v33  ;;  %v8549_v45 = vsel %vm4025_vm5, 1.0, %v9310_v24  ;;  %vm4026_vm7 = vmand %vm3974_vm2, %vm4001_vm6  ;;  %vm3975_vm9 = vcmp.ge.s32.totalorder %v3949_v25, %v8322_v59  ;;  %vm4002_vm10 = vcmp.lt.s32.totalorder %v3949_v25, %v8324_v19 }
 0x511   : > { %4440 = vmatprep.mubr.f32.mxu0 %v9310_v24  ;;  %v8561_v23 = vsel %vm4026_vm7, 1.0, %v9310_v24  ;;  %vm4027_vm11 = vmand %vm3975_vm9, %vm4002_vm10  ;;  %vm3976_vm12 = vcmp.ge.s32.totalorder %v3950_v42, %v8322_v59  ;;  %vm4003_vm14 = vcmp.lt.s32.totalorder %v3950_v42, %v8324_v19 }
 0x512   : > { %5505 = vmatmul.mubr.msk.f32.gmra.mrb[118].mxu1 %vm4054_vm13, %v8477_v0  ;;  %v8572_v30 = vsel %vm4027_vm11, 1.0, %v9310_v24  ;;  %vm4028_vm15 = vmand %vm3976_vm12, %vm4003_vm14 }
 0x513   : > { %4309 = vmatprep.mubr.f32.mxu1 %v9310_v24  ;;  %v8581_v59 = vsel %vm4028_vm15, 1.0, %v9310_v24 }
 0x514   : > { %5519 = vmatmul.mubr.msk.f32.gmra.mrb[122].mxu0 %vm4054_vm13, %v8355_v60 }
 0x515   : > { %4446 = vmatprep.mubr.f32.mxu0 %v9310_v24 }
 0x516   : > { %5506 = vmatmul.mubr.msk.f32.gmra.mrb[120].mxu1 %vm4054_vm13, %v8489_v5 }
 0x517   : > { %4315 = vmatprep.mubr.f32.mxu1 %v9310_v24 }
 0x518   : > { %5520 = vmatmul.mubr.msk.f32.gmra.mrb[124].mxu0 %vm4054_vm13, %v8364_v48 }
 0x519   : > { %4452 = vmatprep.mubr.f32.mxu0 %v9310_v24 }
 0x51a   : > { %5507 = vmatmul.mubr.msk.f32.gmra.mrb[122].mxu1 %vm4054_vm13, %v8501_v58 }
 0x51b   : > { %4321 = vmatprep.mubr.f32.mxu1 %v9310_v24 }
 0x51c   : > { %5521 = vmatmul.mubr.msk.f32.gmra.mrb[126].mxu0 %vm4054_vm13, %v8373_v26 }
 0x51d   : > { %4458 = vmatprep.mubr.f32.mxu0 %v9310_v24 }
 0x51e   : > { %5508 = vmatmul.mubr.msk.f32.gmra.mrb[124].mxu1 %vm4054_vm13, %v8513_v11 }
 0x51f   : > { %4327 = vmatprep.mubr.f32.mxu1 %v9310_v24 }
 0x520   : > { %5522 = vmatmul.mubr.msk.f32.gmra.mrb[128].mxu0 %vm4054_vm13, %v8382_v16 }
 0x521   : > { %4464 = vmatprep.mubr.f32.mxu0 %v9310_v24 }
 0x522   : > { %5509 = vmatmul.mubr.msk.f32.gmra.mrb[126].mxu1 %vm4054_vm13, %v8525_v14 }
 0x523   : > { %4333 = vmatprep.mubr.f32.mxu1 %v9310_v24 }
 0x524   : > { %5523 = vmatmul.mubr.msk.f32.gmra.mrb[130].mxu0 %vm4054_vm13, %v8391_v8 }
 0x525   : > { %4470 = vmatprep.mubr.f32.mxu0 %v9310_v24 }
 0x526   : > { %5510 = vmatmul.mubr.msk.f32.gmra.mrb[128].mxu1 %vm4054_vm13, %v8537_v15 }
 0x527   : > { %4339 = vmatprep.mubr.f32.mxu1 %v9310_v24 }
 0x528   : > { %5524 = vmatmul.mubr.msk.f32.gmra.mrb[132].mxu0 %vm4054_vm13, %v8400_v6 }
 0x529   : > { %4476 = vmatprep.mubr.f32.mxu0 %v9310_v24 }
 0x52a   : > { %v3904_v20 = vpop.f32.mrb[116].mxu0  ;;  %5511 = vmatmul.mubr.msk.f32.gmra.mrb[130].mxu1 %vm4054_vm13, %v8549_v45 }
 0x52b   : > { %6021 = vrsqrt.f32 %v3904_v20  ;;  %v3906_v38 = vpop.f32.mrb[117].mxu0  ;;  %4345 = vmatprep.mubr.f32.mxu1 %v9310_v24  ;;  %vm3913_vm1 = vcmp.gt.f32.partialorder %v3904_v20, 1e-24 }
 0x52c   : > { %5525 = vmatmul.mubr.msk.f32.gmra.mrb[134].mxu0 %vm4054_vm13, %v8409_v29  ;;  %6023 = vrsqrt.f32 %v3906_v38  ;;  %vm3914_vm0 = vcmp.gt.f32.partialorder %v3906_v38, 1e-24 }
 0x52d   : > { %4482 = vmatprep.mubr.f32.mxu0 %v9310_v24 }
 0x52e   : > { %5512 = vmatmul.mubr.msk.f32.gmra.mrb[132].mxu1 %vm4054_vm13, %v8561_v23 }
 0x52f   : > { %4351 = vmatprep.mubr.f32.mxu1 %v9310_v24 }
 0x530   : > { %5526 = vmatmul.mubr.msk.f32.gmra.mrb[136].mxu0 %vm4054_vm13, %v8418_v55 }
 0x531   : > { %4488 = vmatprep.mubr.f32.mxu0 %v9310_v24 }
 0x532   : > { %5513 = vmatmul.mubr.msk.f32.gmra.mrb[134].mxu1 %vm4054_vm13, %v8572_v30 }
 0x533   : > { %4357 = vmatprep.mubr.f32.mxu1 %v9310_v24 }
 0x534   : > { %5527 = vmatmul.mubr.msk.f32.gmra.mrb[138].mxu0 %vm4054_vm13, %v8427_v1 }
 0x535   : > { %v6022_v19 = vpop.eup %6021  ;;  %4494 = vmatprep.mubr.f32.mxu0 %v9310_v24 }
 0x536   : > { %v6024_v25 = vpop.eup %6023  ;;  %5514 = vmatmul.mubr.msk.f32.gmra.mrb[136].mxu1 %vm4054_vm13, %v8581_v59  ;;  %v3925_v44 = vsel %vm3913_vm1, %v6022_v19, 1e+12 }
 0x537   : > { %v3926_v42 = vsel %vm3914_vm0, %v6024_v25, 1e+12  ;;  %4643 = vmatprep.mubr.f32.mxu1 %v9310_v24 }
 0x538   : > { %5528 = vmatmul.mubr.msk.f32.gmra.mrb[140].mxu0 %vm4054_vm13, %v8436_v17  ;;  %5542 = vmatprep.subr.msk.mxu1 %vm4130_vm8, %v3926_v42 }
 0x539   : > { %4500 = vmatprep.mubr.f32.mxu0 %v9310_v24  ;;  %5543 = vmatpush1.msk.msra.mxu1 %vm4130_vm8, %v3925_v44 }
 0x53a   : > { %5544 = vmatmul.mubr.msk.f32.vlgmr.msra.gmra.mrb[138].mxu1 %vm4054_vm13, %v8335_v2 }
 0x53b   : > { %4649 = vmatprep.mubr.f32.mxu1 %v9310_v24 }
 0x53c   : > { %5529 = vmatmul.mubr.msk.f32.gmra.mrb[142].mxu0 %vm4054_vm13, %v8445_v18 }
 0x53d   : > { %4506 = vmatprep.mubr.f32.mxu0 %v9310_v24 }
 0x53e   : > { %5545 = vmatmul.mubr.msk.f32.gmra.mrb[140].mxu1 %vm4054_vm13, %v8346_v33 }
 0x53f   : > { %4655 = vmatprep.mubr.f32.mxu1 %v9310_v24 }
 0x540   : > { %5530 = vmatmul.mubr.msk.f32.gmra.mrb[144].mxu0 %vm4054_vm13, %v8454_v63 }
 0x541   : > { %4512 = vmatprep.mubr.f32.mxu0 %v9310_v24 }
 0x542   : > { %5546 = vmatmul.mubr.msk.f32.gmra.mrb[142].mxu1 %vm4054_vm13, %v8355_v60 }
 0x543   : > { %4661 = vmatprep.mubr.f32.mxu1 %v9310_v24 }
 0x544   : > { %5531 = vmatmul.mubr.msk.f32.gmra.mrb[146].mxu0 %vm4054_vm13, %v8465_v28 }
 0x545   : > { %4518 = vmatprep.mubr.f32.mxu0 %v9310_v24 }
 0x546   : > { %5547 = vmatmul.mubr.msk.f32.gmra.mrb[144].mxu1 %vm4054_vm13, %v8364_v48 }
 0x547   : > { %4667 = vmatprep.mubr.f32.mxu1 %v9310_v24 }
 0x548   : > { %5532 = vmatmul.mubr.msk.f32.gmra.mrb[148].mxu0 %vm4054_vm13, %v8477_v0 }
 0x549   : > { %4524 = vmatprep.mubr.f32.mxu0 %v9310_v24 }
 0x54a   : > { %5548 = vmatmul.mubr.msk.f32.gmra.mrb[146].mxu1 %vm4054_vm13, %v8373_v26 }
 0x54b   : > { %4673 = vmatprep.mubr.f32.mxu1 %v9310_v24 }
 0x54c   : > { %5533 = vmatmul.mubr.msk.f32.gmra.mrb[150].mxu0 %vm4054_vm13, %v8489_v5 }
 0x54d   : > { %4530 = vmatprep.mubr.f32.mxu0 %v9310_v24 }
 0x54e   : > { %5549 = vmatmul.mubr.msk.f32.gmra.mrb[148].mxu1 %vm4054_vm13, %v8382_v16 }
 0x54f   : > { %4679 = vmatprep.mubr.f32.mxu1 %v9310_v24 }
 0x550   : > { %5534 = vmatmul.mubr.msk.f32.gmra.mrb[152].mxu0 %vm4054_vm13, %v8501_v58 }
 0x551   : > { %4536 = vmatprep.mubr.f32.mxu0 %v9310_v24 }
 0x552   : > { %5550 = vmatmul.mubr.msk.f32.gmra.mrb[150].mxu1 %vm4054_vm13, %v8391_v8 }
 0x553   : > { %4685 = vmatprep.mubr.f32.mxu1 %v9310_v24 }
 0x554   : > { %5535 = vmatmul.mubr.msk.f32.gmra.mrb[154].mxu0 %vm4054_vm13, %v8513_v11 }
 0x555   : > { %4542 = vmatprep.mubr.f32.mxu0 %v9310_v24 }
 0x556   : > { %5551 = vmatmul.mubr.msk.f32.gmra.mrb[152].mxu1 %vm4054_vm13, %v8400_v6 }
 0x557   : > { %4691 = vmatprep.mubr.f32.mxu1 %v9310_v24 }
 0x558   : > { %5536 = vmatmul.mubr.msk.f32.gmra.mrb[156].mxu0 %vm4054_vm13, %v8525_v14 }
 0x559   : > { %4548 = vmatprep.mubr.f32.mxu0 %v9310_v24 }
 0x55a   : > { %5552 = vmatmul.mubr.msk.f32.gmra.mrb[154].mxu1 %vm4054_vm13, %v8409_v29 }
 0x55b   : > { %4697 = vmatprep.mubr.f32.mxu1 %v9310_v24 }
 0x55c   : > { %5537 = vmatmul.mubr.msk.f32.gmra.mrb[158].mxu0 %vm4054_vm13, %v8537_v15 }
 0x55d   : > { %4554 = vmatprep.mubr.f32.mxu0 %v9310_v24 }
 0x55e   : > { %5553 = vmatmul.mubr.msk.f32.gmra.mrb[156].mxu1 %vm4054_vm13, %v8418_v55 }
 0x55f   : > { %4703 = vmatprep.mubr.f32.mxu1 %v9310_v24 }
 0x560   : > { %5538 = vmatmul.mubr.msk.f32.gmra.mrb[160].mxu0 %vm4054_vm13, %v8549_v45 }
 0x561   : > { %4560 = vmatprep.mubr.f32.mxu0 %v9310_v24 }
 0x562   : > { %5554 = vmatmul.mubr.msk.f32.gmra.mrb[158].mxu1 %vm4054_vm13, %v8427_v1 }
 0x563   : > { %4709 = vmatprep.mubr.f32.mxu1 %v9310_v24 }
 0x564   : > { %5539 = vmatmul.mubr.msk.f32.gmra.mrb[162].mxu0 %vm4054_vm13, %v8561_v23 }
 0x565   : > { %4566 = vmatprep.mubr.f32.mxu0 %v9310_v24 }
 0x566   : > { %5555 = vmatmul.mubr.msk.f32.gmra.mrb[160].mxu1 %vm4054_vm13, %v8436_v17 }
 0x567   : > { %4715 = vmatprep.mubr.f32.mxu1 %v9310_v24 }
 0x568   : > { %5540 = vmatmul.mubr.msk.f32.gmra.mrb[164].mxu0 %vm4054_vm13, %v8572_v30 }
 0x569   : > { %4572 = vmatprep.mubr.f32.mxu0 %v9310_v24 }
 0x56a   : > { %5556 = vmatmul.mubr.msk.f32.gmra.mrb[162].mxu1 %vm4054_vm13, %v8445_v18 }
 0x56b   : > { %4721 = vmatprep.mubr.f32.mxu1 %v9310_v24 }
 0x56c   : > { %5541 = vmatmul.mubr.msk.f32.gmra.mrb[166].mxu0 %vm4054_vm13, %v8581_v59 }
 0x56e   : > { %5557 = vmatmul.mubr.msk.f32.gmra.mrb[164].mxu1 %vm4054_vm13, %v8454_v63 }
 0x56f   : > { %4727 = vmatprep.mubr.f32.mxu1 %v9310_v24 }
 0x572   : > { %5558 = vmatmul.mubr.msk.f32.gmra.mrb[166].mxu1 %vm4054_vm13, %v8465_v28 }
 0x573   : > { %4733 = vmatprep.mubr.f32.mxu1 %v9310_v24 }
 0x576   : > { %5559 = vmatmul.mubr.msk.f32.gmra.mrb[168].mxu1 %vm4054_vm13, %v8477_v0 }
 0x577   : > { %4739 = vmatprep.mubr.f32.mxu1 %v9310_v24 }
 0x57a   : > { %5560 = vmatmul.mubr.msk.f32.gmra.mrb[170].mxu1 %vm4054_vm13, %v8489_v5 }
 0x57b   : > { %4745 = vmatprep.mubr.f32.mxu1 %v9310_v24 }
 0x57e   : > { %5561 = vmatmul.mubr.msk.f32.gmra.mrb[172].mxu1 %vm4054_vm13, %v8501_v58 }
 0x57f   : > { %4751 = vmatprep.mubr.f32.mxu1 %v9310_v24 }
 0x582   : > { %5562 = vmatmul.mubr.msk.f32.gmra.mrb[174].mxu1 %vm4054_vm13, %v8513_v11 }
 0x583   : > { %4757 = vmatprep.mubr.f32.mxu1 %v9310_v24 }
 0x586   : > { %5563 = vmatmul.mubr.msk.f32.gmra.mrb[176].mxu1 %vm4054_vm13, %v8525_v14 }
 0x587   : > { %4763 = vmatprep.mubr.f32.mxu1 %v9310_v24 }
 0x58a   : > { %5564 = vmatmul.mubr.msk.f32.gmra.mrb[178].mxu1 %vm4054_vm13, %v8537_v15 }
 0x58b   : > { %4769 = vmatprep.mubr.f32.mxu1 %v9310_v24 }
 0x58e   : > { %5565 = vmatmul.mubr.msk.f32.gmra.mrb[180].mxu1 %vm4054_vm13, %v8549_v45 }
 0x58f   : > { %4775 = vmatprep.mubr.f32.mxu1 %v9310_v24 }
 0x592   : > { %5566 = vmatmul.mubr.msk.f32.gmra.mrb[182].mxu1 %vm4054_vm13, %v8561_v23 }
 0x593   : > { %4781 = vmatprep.mubr.f32.mxu1 %v9310_v24 }
 0x596   : > { %5567 = vmatmul.mubr.msk.f32.gmra.mrb[184].mxu1 %vm4054_vm13, %v8572_v30 }
 0x597   : > { %4787 = vmatprep.mubr.f32.mxu1 %v9310_v24 }
 0x59a   : > { %5568 = vmatmul.mubr.msk.f32.gmra.mrb[186].mxu1 %vm4054_vm13, %v8581_v59 }
 0x5a9   : > { %v4215_v44 = vpop.f32.mrb[88].mxu1 }
 0x5aa   : > { %v4794_v38 = vmul.f32 %v4215_v44, %v7539_v10  ;;  %v4217_v14 = vpop.f32.mrb[89].mxu1 }
 0x5ab   : > { %v4795_v20 = vmul.f32 %v4217_v14, %v7536_v3 }
 0x5ac   : > { %v4944_v23 = vmax.f32 %v4794_v38, 0.0 }
 0x5ad   : > { %v4945_v45 = vmax.f32 %v4795_v20, 0.0  ;;  %v4221_v15 = vpop.f32.mrb[90].mxu1 }
 0x5ae   : > { %5094 = vst [vmem:[%s8711_s16] sm:$0xff] %v4944_v23  ;;  %v4800_v63 = vmul.f32 %v4221_v15, %v7542_v35  ;;  %v4223_v24 = vpop.f32.mrb[91].mxu1 }
 0x5af   : > { %5095 = vst [vmem:[%s8711_s16 + $0x8] sm:$0xff] %v4945_v45  ;;  %v4801_v10 = vmul.f32 %v4223_v24, %v7545_v12 }
 0x5b0   : > { %v4950_v17 = vmax.f32 %v4800_v63, 0.0 }
 0x5b1   : > { %v4951_v3 = vmax.f32 %v4801_v10, 0.0  ;;  %v4227_v2 = vpop.f32.mrb[92].mxu1 }
 0x5b2   : > { %5100 = vst [vmem:[%s8711_s16 + $0x30] sm:$0xff] %v4950_v17  ;;  %v4806_v33 = vmul.f32 %v4227_v2, %v7561_v41  ;;  %v4229_v60 = vpop.f32.mrb[93].mxu1 }
 0x5b3   : > { %5101 = vst [vmem:[%s8711_s16 + $0x38] sm:$0xff] %v4951_v3  ;;  %v4807_v48 = vmul.f32 %v4229_v60, %v7558_v54 }
 0x5b4   : > { %v4956_v26 = vmax.f32 %v4806_v33, 0.0 }
 0x5b5   : > { %v4957_v16 = vmax.f32 %v4807_v48, 0.0  ;;  %v4233_v35 = vpop.f32.mrb[94].mxu1 }
 0x5b6   : > { %5106 = vst [vmem:[%s8711_s16 + $0x60] sm:$0xff] %v4956_v26  ;;  %v4812_v8 = vmul.f32 %v4233_v35, %v7564_v43  ;;  %v4235_v12 = vpop.f32.mrb[95].mxu1 }
 0x5b7   : > { %5107 = vst [vmem:[%s8711_s16 + $0x68] sm:$0xff] %v4957_v16  ;;  %v4813_v6 = vmul.f32 %v4235_v12, %v7567_v40 }
 0x5b8   : > { %v4962_v29 = vmax.f32 %v4812_v8, 0.0 }
 0x5b9   : > { %v4963_v55 = vmax.f32 %v4813_v6, 0.0  ;;  %v4239_v41 = vpop.f32.mrb[96].mxu1 }
 0x5ba   : > { %5112 = vst [vmem:[%s8711_s16 + $0x90] sm:$0xff] %v4962_v29  ;;  %v4818_v1 = vmul.f32 %v4239_v41, %v7581_v32  ;;  %v4241_v54 = vpop.f32.mrb[97].mxu1 }
 0x5bb   : > { %5113 = vst [vmem:[%s8711_s16 + $0x98] sm:$0xff] %v4963_v55  ;;  %v4819_v18 = vmul.f32 %v4241_v54, %v7578_v27 }
 0x5bc   : > { %v4968_v28 = vmax.f32 %v4818_v1, 0.0 }
 0x5bd   : > { %v4969_v0 = vmax.f32 %v4819_v18, 0.0  ;;  %v4245_v43 = vpop.f32.mrb[98].mxu1 }
 0x5be   : > { %5118 = vst [vmem:[%s8711_s16 + $0xc0] sm:$0xff] %v4968_v28  ;;  %v4824_v5 = vmul.f32 %v4245_v43, %v7584_v37  ;;  %v4247_v40 = vpop.f32.mrb[99].mxu1 }
 0x5bf   : > { %5119 = vst [vmem:[%s8711_s16 + $0xc8] sm:$0xff] %v4969_v0  ;;  %v4825_v58 = vmul.f32 %v4247_v40, %v7587_v21 }
 0x5c0   : > { %v4974_v11 = vmax.f32 %v4824_v5, 0.0 }
 0x5c1   : > { %v4975_v30 = vmax.f32 %v4825_v58, 0.0  ;;  %v4251_v32 = vpop.f32.mrb[100].mxu1 }
 0x5c2   : > { %5124 = vst [vmem:[%s8711_s16 + $0xf0] sm:$0xff] %v4974_v11  ;;  %v4830_v59 = vmul.f32 %v4251_v32, %v7620_v22  ;;  %v4253_v27 = vpop.f32.mrb[101].mxu1 }
 0x5c3   : > { %5125 = vst [vmem:[%s8711_s16 + $0xf8] sm:$0xff] %v4975_v30  ;;  %v4831_v19 = vmul.f32 %v4253_v27, %v7629_v50  ;;  %v9332_v27 = vld [vmem:[#allocation16_spill] sm:$0xff] }
 0x5c4   : > { %v4980_v25 = vmax.f32 %v4830_v59, 0.0 }
 0x5c5   : > { %v4981_v42 = vmax.f32 %v4831_v19, 0.0  ;;  %v4257_v37 = vpop.f32.mrb[102].mxu1 }
 0x5c6   : > { %5130 = vst [vmem:[%s8711_s16 + $0x120] sm:$0xff] %v4980_v25  ;;  %v4836_v44 = vmul.f32 %v4257_v37, %v7593_v52  ;;  %v4259_v21 = vpop.f32.mrb[103].mxu1  ;;  %v9333_v37 = vld [vmem:[#allocation19_spill] sm:$0xff] }
 0x5c7   : > { %5131 = vst [vmem:[%s8711_s16 + $0x128] sm:$0xff] %v4981_v42  ;;  %v4837_v38 = vmul.f32 %v4259_v21, %v7596_v13 }
 0x5c8   : > { %v4986_v14 = vmax.f32 %v4836_v44, 0.0 }
 0x5c9   : > { %v4987_v20 = vmax.f32 %v4837_v38, 0.0  ;;  %v4263_v22 = vpop.f32.mrb[104].mxu1 }
 0x5ca   : > { %5136 = vst [vmem:[%s8711_s16 + $0x150] sm:$0xff] %v4986_v14  ;;  %v4842_v23 = vmul.f32 %v4263_v22, %v7612_v61  ;;  %v4265_v50 = vpop.f32.mrb[105].mxu1 }
 0x5cb   : > { %5137 = vst [vmem:[%s8711_s16 + $0x158] sm:$0xff] %v4987_v20  ;;  %v4843_v45 = vmul.f32 %v4265_v50, %v7602_v56  ;;  %v9334_v20 = vld [vmem:[#allocation18_spill] sm:$0xff] }
 0x5cc   : > { %v4992_v15 = vmax.f32 %v4842_v23, 0.0  ;;  %v9335_v23 = vld [vmem:[#allocation21_spill] sm:$0xff] }
 0x5cd   : > { %v4993_v63 = vmax.f32 %v4843_v45, 0.0  ;;  %v4269_v52 = vpop.f32.mrb[106].mxu1 }
 0x5ce   : > { %5142 = vst [vmem:[%s8711_s16 + $0x180] sm:$0xff] %v4992_v15  ;;  %v4848_v24 = vmul.f32 %v4269_v52, %v7615_v51  ;;  %v4271_v13 = vpop.f32.mrb[107].mxu1 }
 0x5cf   : > { %5143 = vst [vmem:[%s8711_s16 + $0x188] sm:$0xff] %v4993_v63  ;;  %v4849_v10 = vmul.f32 %v4271_v13, %v7605_v39  ;;  %v9336_v63 = vld [vmem:[#allocation20_spill] sm:$0xff] }
 0x5d0   : > { %v4998_v17 = vmax.f32 %v4848_v24, 0.0 }
 0x5d1   : > { %v4999_v3 = vmax.f32 %v4849_v10, 0.0  ;;  %v4275_v61 = vpop.f32.mrb[108].mxu1 }
 0x5d2   : > { %5148 = vst [vmem:[%s8711_s16 + $0x1b0] sm:$0xff] %v4998_v17  ;;  %v4854_v2 = vmul.f32 %v4275_v61, %v7655_v7  ;;  %v4277_v56 = vpop.f32.mrb[109].mxu1 }
 0x5d3   : > { %5149 = vst [vmem:[%s8711_s16 + $0x1b8] sm:$0xff] %v4999_v3  ;;  %v4855_v33 = vmul.f32 %v4277_v56, %v7623_v31  ;;  %v9337_v56 = vld [vmem:[#allocation24_spill] sm:$0xff] }
 0x5d4   : > { %v5004_v60 = vmax.f32 %v4854_v2, 0.0 }
 0x5d5   : > { %v5005_v48 = vmax.f32 %v4855_v33, 0.0  ;;  %v4281_v51 = vpop.f32.mrb[110].mxu1 }
 0x5d6   : > { %5154 = vst [vmem:[%s8711_s16 + $0x1e0] sm:$0xff] %v5004_v60  ;;  %v4860_v26 = vmul.f32 %v4281_v51, %v7660_v4  ;;  %v4283_v39 = vpop.f32.mrb[111].mxu1  ;;  %v9338_v60 = vld [vmem:[#allocation22_spill] sm:$0xff] }
 0x5d7   : > { %5155 = vst [vmem:[%s8711_s16 + $0x1e8] sm:$0xff] %v5005_v48  ;;  %v4861_v16 = vmul.f32 %v4283_v39, %v7626_v47  ;;  %v9339_v39 = vld [vmem:[#allocation23_spill] sm:$0xff] }
 0x5d8   : > { %v5010_v35 = vmax.f32 %v4860_v26, 0.0 }
 0x5d9   : > { %v5011_v8 = vmax.f32 %v4861_v16, 0.0  ;;  %v4287_v7 = vpop.f32.mrb[112].mxu1 }
 0x5da   : > { %5160 = vst [vmem:[%s8711_s16 + $0x210] sm:$0xff] %v5010_v35  ;;  %v4866_v12 = vmul.f32 %v4287_v7, %v7688_v57  ;;  %v4289_v6 = vpop.f32.mrb[113].mxu1  ;;  %v9340_v7 = vld [vmem:[#allocation25_spill] sm:$0xff] }
 0x5db   : > { %5161 = vst [vmem:[%s8711_s16 + $0x218] sm:$0xff] %v5011_v8  ;;  %v4867_v31 = vmul.f32 %v4289_v6, %v7681_v36 }
 0x5dc   : > { %v5016_v29 = vmax.f32 %v4866_v12, 0.0 }
 0x5dd   : > { %v5017_v55 = vmax.f32 %v4867_v31, 0.0  ;;  %v4293_v41 = vpop.f32.mrb[114].mxu1 }
 0x5de   : > { %5166 = vst [vmem:[%s8711_s16 + $0x240] sm:$0xff] %v5016_v29  ;;  %v4872_v4 = vmul.f32 %v4293_v41, %v7691_v53  ;;  %v4295_v1 = vpop.f32.mrb[115].mxu1 }
 0x5df   : > { %5167 = vst [vmem:[%s8711_s16 + $0x248] sm:$0xff] %v5017_v55  ;;  %v4430_v47 = vpop.f32.mrb[118].mxu0  ;;  %v4873_v54 = vmul.f32 %v4295_v1, %v7665_v49  ;;  %v9330_v49 = vld [vmem:[#allocation17_spill] sm:$0xff]  ;;  %v9341_v55 = vld [vmem:[#allocation26_spill] sm:$0xff] }
 0x5e0   : > { %v4796_v57 = vmul.f32 %v4430_v47, %v7673_v62  ;;  %v4432_v18 = vpop.f32.mrb[119].mxu0  ;;  %v5022_v28 = vmax.f32 %v4872_v4, 0.0  ;;  %v9331_v62 = vld [vmem:[#allocation15_spill] sm:$0xff]  ;;  %v9342_v4 = vld [vmem:[#allocation28_spill] sm:$0xff] }
 0x5e1   : > { %v4797_v36 = vmul.f32 %v4432_v18, %v7668_v46  ;;  %v5023_v0 = vmax.f32 %v4873_v54, 0.0  ;;  %v4299_v43 = vpop.f32.mrb[116].mxu1 }
 0x5e2   : > { %v4946_v5 = vmax.f32 %v4796_v57, 0.0  ;;  %5172 = vst [vmem:[%s8711_s16 + $0x270] sm:$0xff] %v5022_v28  ;;  %v4878_v53 = vmul.f32 %v4299_v43, %v7726_v9  ;;  %v4301_v40 = vpop.f32.mrb[117].mxu1  ;;  %v9343_v57 = vld [vmem:[#allocation27_spill] sm:$0xff]  ;;  %v9344_v43 = vld [vmem:[#allocation32_spill] sm:$0xff] }
 0x5e3   : > { %v4947_v58 = vmax.f32 %v4797_v36, 0.0  ;;  %5173 = vst [vmem:[%s8711_s16 + $0x278] sm:$0xff] %v5023_v0  ;;  %v4436_v11 = vpop.f32.mrb[120].mxu0  ;;  %v4879_v30 = vmul.f32 %v4301_v40, %v9330_v49 }
 0x5e4   : > { %5096 = vst [vmem:[%s8711_s16 + $0x10] sm:$0xff] %v4946_v5  ;;  %v4802_v32 = vmul.f32 %v4436_v11, %v9331_v62  ;;  %v4438_v59 = vpop.f32.mrb[121].mxu0  ;;  %v5028_v46 = vmax.f32 %v4878_v53, 0.0  ;;  %v9345_v11 = vld [vmem:[#allocation31_spill] sm:$0xff] }
 0x5e5   : > { %5097 = vst [vmem:[%s8711_s16 + $0x18] sm:$0xff] %v4947_v58  ;;  %v4803_v19 = vmul.f32 %v4438_v59, %v9332_v27  ;;  %v5029_v25 = vmax.f32 %v4879_v30, 0.0  ;;  %v4305_v42 = vpop.f32.mrb[118].mxu1  ;;  %v9346_v30 = vld [vmem:[#allocation29_spill] sm:$0xff] }
 0x5e6   : > { %v4952_v9 = vmax.f32 %v4802_v32, 0.0  ;;  %5178 = vst [vmem:[%s8711_s16 + $0x2a0] sm:$0xff] %v5028_v46  ;;  %v4884_v44 = vmul.f32 %v4305_v42, %v9333_v37  ;;  %v4307_v21 = vpop.f32.mrb[119].mxu1  ;;  %v9347_v46 = vld [vmem:[#allocation30_spill] sm:$0xff] }
 0x5e7   : > { %v4953_v38 = vmax.f32 %v4803_v19, 0.0  ;;  %5179 = vst [vmem:[%s8711_s16 + $0x2a8] sm:$0xff] %v5029_v25  ;;  %v4442_v14 = vpop.f32.mrb[122].mxu0  ;;  %v4885_v22 = vmul.f32 %v4307_v21, %v9334_v20 }
 0x5e8   : > { %5102 = vst [vmem:[%s8711_s16 + $0x40] sm:$0xff] %v4952_v9  ;;  %v4808_v50 = vmul.f32 %v4442_v14, %v9335_v23  ;;  %v4444_v45 = vpop.f32.mrb[123].mxu0  ;;  %v5034_v15 = vmax.f32 %v4884_v44, 0.0  ;;  %v9348_v9 = vld [vmem:[#allocation33_spill] sm:$0xff]  ;;  %v9349_v14 = vld [vmem:[#allocation34_spill] sm:$0xff] }
 0x5e9   : > { %5103 = vst [vmem:[%s8711_s16 + $0x48] sm:$0xff] %v4953_v38  ;;  %v4809_v52 = vmul.f32 %v4444_v45, %v9336_v63  ;;  %v5035_v24 = vmax.f32 %v4885_v22, 0.0  ;;  %v4311_v13 = vpop.f32.mrb[120].mxu1  ;;  %v9350_v22 = vld [vmem:[#allocation36_spill] sm:$0xff] }
 0x5ea   : > { %v4958_v10 = vmax.f32 %v4808_v50, 0.0  ;;  %5184 = vst [vmem:[%s8711_s16 + $0x2d0] sm:$0xff] %v5034_v15  ;;  %v4890_v17 = vmul.f32 %v4311_v13, %v7759_v34  ;;  %v4313_v3 = vpop.f32.mrb[121].mxu1  ;;  %v9351_v15 = vld [vmem:[#allocation35_spill] sm:$0xff] }
 0x5eb   : > { %v4959_v61 = vmax.f32 %v4809_v52, 0.0  ;;  %5185 = vst [vmem:[%s8711_s16 + $0x2d8] sm:$0xff] %v5035_v24  ;;  %v4448_v2 = vpop.f32.mrb[124].mxu0  ;;  %v4891_v33 = vmul.f32 %v4313_v3, %v9337_v56  ;;  %v9353_v56 = vld [vmem:[#allocation39_spill] sm:$0xff] }
 0x5ec   : > { %5108 = vst [vmem:[%s8711_s16 + $0x70] sm:$0xff] %v4958_v10  ;;  %v4814_v48 = vmul.f32 %v4448_v2, %v9338_v60  ;;  %v4450_v51 = vpop.f32.mrb[125].mxu0  ;;  %v5040_v26 = vmax.f32 %v4890_v17, 0.0  ;;  %v9352_v10 = vld [vmem:[#allocation40_spill] sm:$0xff]  ;;  %v9354_v60 = vld [vmem:[#allocation37_spill] sm:$0xff] }
 0x5ed   : > { %5109 = vst [vmem:[%s8711_s16 + $0x78] sm:$0xff] %v4959_v61  ;;  %v4815_v16 = vmul.f32 %v4450_v51, %v9339_v39  ;;  %v5041_v35 = vmax.f32 %v4891_v33, 0.0  ;;  %v4317_v8 = vpop.f32.mrb[122].mxu1  ;;  %v9355_v39 = vld [vmem:[#allocation38_spill] sm:$0xff] }
 0x5ee   : > { %v4964_v34 = vmax.f32 %v4814_v48, 0.0  ;;  %5190 = vst [vmem:[%s8711_s16 + $0x300] sm:$0xff] %v5040_v26  ;;  %v4896_v12 = vmul.f32 %v4317_v8, %v9340_v7  ;;  %v4319_v6 = vpop.f32.mrb[123].mxu1  ;;  %v9356_v7 = vld [vmem:[#allocation41_spill] sm:$0xff] }
 0x5ef   : > { %v4965_v31 = vmax.f32 %v4815_v16, 0.0  ;;  %5191 = vst [vmem:[%s8711_s16 + $0x308] sm:$0xff] %v5041_v35  ;;  %v4454_v29 = vpop.f32.mrb[126].mxu0  ;;  %v4897_v41 = vmul.f32 %v4319_v6, %v9341_v55  ;;  %v9357_v55 = vld [vmem:[#allocation42_spill] sm:$0xff] }
 0x5f0   : > { %5114 = vst [vmem:[%s8711_s16 + $0xa0] sm:$0xff] %v4964_v34  ;;  %v4820_v1 = vmul.f32 %v4454_v29, %v9342_v4  ;;  %v4456_v47 = vpop.f32.mrb[127].mxu0  ;;  %v5046_v54 = vmax.f32 %v4896_v12, 0.0  ;;  %v9358_v4 = vld [vmem:[#allocation44_spill] sm:$0xff] }
 0x5f1   : > { %5115 = vst [vmem:[%s8711_s16 + $0xa8] sm:$0xff] %v4965_v31  ;;  %v4821_v18 = vmul.f32 %v4456_v47, %v9343_v57  ;;  %v5047_v28 = vmax.f32 %v4897_v41, 0.0  ;;  %v4323_v36 = vpop.f32.mrb[124].mxu1  ;;  %v9359_v57 = vld [vmem:[#allocation43_spill] sm:$0xff] }
 0x5f2   : > { %v4970_v0 = vmax.f32 %v4820_v1, 0.0  ;;  %5196 = vst [vmem:[%s8711_s16 + $0x330] sm:$0xff] %v5046_v54  ;;  %v4902_v5 = vmul.f32 %v4323_v36, %v9344_v43  ;;  %v4325_v53 = vpop.f32.mrb[125].mxu1  ;;  %v9360_v43 = vld [vmem:[#allocation48_spill] sm:$0xff] }
 0x5f3   : > { %v4971_v40 = vmax.f32 %v4821_v18, 0.0  ;;  %5197 = vst [vmem:[%s8711_s16 + $0x338] sm:$0xff] %v5047_v28  ;;  %v4460_v58 = vpop.f32.mrb[128].mxu0  ;;  %v4903_v49 = vmul.f32 %v4325_v53, %v9345_v11  ;;  %v9361_v11 = vld [vmem:[#allocation47_spill] sm:$0xff] }
 0x5f4   : > { %5120 = vst [vmem:[%s8711_s16 + $0xd0] sm:$0xff] %v4970_v0  ;;  %v4826_v62 = vmul.f32 %v4460_v58, %v9346_v30  ;;  %v4462_v32 = vpop.f32.mrb[129].mxu0  ;;  %v5052_v59 = vmax.f32 %v4902_v5, 0.0  ;;  %v9362_v30 = vld [vmem:[#allocation45_spill] sm:$0xff] }
 0x5f5   : > { %5121 = vst [vmem:[%s8711_s16 + $0xd8] sm:$0xff] %v4971_v40  ;;  %v4827_v27 = vmul.f32 %v4462_v32, %v9347_v46  ;;  %v5053_v19 = vmax.f32 %v4903_v49, 0.0  ;;  %v4329_v25 = vpop.f32.mrb[126].mxu1  ;;  %v9363_v46 = vld [vmem:[#allocation46_spill] sm:$0xff] }
 0x5f6   : > { %v4976_v42 = vmax.f32 %v4826_v62, 0.0  ;;  %5202 = vst [vmem:[%s8711_s16 + $0x360] sm:$0xff] %v5052_v59  ;;  %v4908_v37 = vmul.f32 %v4329_v25, %v9348_v9  ;;  %v4331_v44 = vpop.f32.mrb[127].mxu1  ;;  %v9364_v9 = vld [vmem:[#allocation49_spill] sm:$0xff] }
 0x5f7   : > { %v4977_v21 = vmax.f32 %v4827_v27, 0.0  ;;  %5203 = vst [vmem:[%s8711_s16 + $0x368] sm:$0xff] %v5053_v19  ;;  %v4466_v38 = vpop.f32.mrb[130].mxu0  ;;  %v4909_v20 = vmul.f32 %v4331_v44, %v9349_v14  ;;  %v9365_v14 = vld [vmem:[#allocation50_spill] sm:$0xff] }
 0x5f8   : > { %5126 = vst [vmem:[%s8711_s16 + $0x100] sm:$0xff] %v4976_v42  ;;  %v4832_v23 = vmul.f32 %v4466_v38, %v9350_v22  ;;  %v4468_v50 = vpop.f32.mrb[131].mxu0  ;;  %v5058_v45 = vmax.f32 %v4908_v37, 0.0  ;;  %v9366_v22 = vld [vmem:[#allocation53_spill] sm:$0xff] }
 0x5f9   : > { %5127 = vst [vmem:[%s8711_s16 + $0x108] sm:$0xff] %v4977_v21  ;;  %v4833_v63 = vmul.f32 %v4468_v50, %v9351_v15  ;;  %v5059_v52 = vmax.f32 %v4909_v20, 0.0  ;;  %v4335_v24 = vpop.f32.mrb[128].mxu1  ;;  %v9367_v15 = vld [vmem:[#allocation51_spill] sm:$0xff] }
 0x5fa   : > { %v4982_v13 = vmax.f32 %v4832_v23, 0.0  ;;  %5208 = vst [vmem:[%s8711_s16 + $0x390] sm:$0xff] %v5058_v45  ;;  %v4914_v17 = vmul.f32 %v4335_v24, %v9352_v10  ;;  %v4337_v3 = vpop.f32.mrb[129].mxu1  ;;  %v9368_v10 = vld [vmem:[#allocation55_spill] sm:$0xff] }
 0x5fb   : > { %v4983_v61 = vmax.f32 %v4833_v63, 0.0  ;;  %5209 = vst [vmem:[%s8711_s16 + $0x398] sm:$0xff] %v5059_v52  ;;  %v4472_v2 = vpop.f32.mrb[132].mxu0  ;;  %v4915_v33 = vmul.f32 %v4337_v3, %v9353_v56  ;;  %v9369_v56 = vld [vmem:[#allocation52_spill] sm:$0xff] }
 0x5fc   : > { %5132 = vst [vmem:[%s8711_s16 + $0x130] sm:$0xff] %v4982_v13  ;;  %v4838_v48 = vmul.f32 %v4472_v2, %v9354_v60  ;;  %v4474_v51 = vpop.f32.mrb[133].mxu0  ;;  %v5064_v26 = vmax.f32 %v4914_v17, 0.0  ;;  %v9370_v60 = vld [vmem:[#allocation54_spill] sm:$0xff] }
 0x5fd   : > { %5133 = vst [vmem:[%s8711_s16 + $0x138] sm:$0xff] %v4983_v61  ;;  %v4839_v16 = vmul.f32 %v4474_v51, %v9355_v39  ;;  %v5065_v35 = vmax.f32 %v4915_v33, 0.0  ;;  %v4341_v8 = vpop.f32.mrb[130].mxu1  ;;  %v9371_v39 = vld [vmem:[#allocation56_spill] sm:$0xff] }
 0x5fe   : > { %v4988_v34 = vmax.f32 %v4838_v48, 0.0  ;;  %5214 = vst [vmem:[%s8711_s16 + $0x3c0] sm:$0xff] %v5064_v26  ;;  %v4920_v12 = vmul.f32 %v4341_v8, %v9356_v7  ;;  %v4343_v6 = vpop.f32.mrb[131].mxu1  ;;  %v9372_v7 = vld [vmem:[#allocation58_spill] sm:$0xff] }
 0x5ff   : > { %v4989_v31 = vmax.f32 %v4839_v16, 0.0  ;;  %5215 = vst [vmem:[%s8711_s16 + $0x3c8] sm:$0xff] %v5065_v35  ;;  %v4478_v29 = vpop.f32.mrb[134].mxu0  ;;  %v4921_v41 = vmul.f32 %v4343_v6, %v9357_v55  ;;  %v9373_v55 = vld [vmem:[#allocation57_spill] sm:$0xff] }
 0x600   : > { %5138 = vst [vmem:[%s8711_s16 + $0x160] sm:$0xff] %v4988_v34  ;;  %v4844_v1 = vmul.f32 %v4478_v29, %v9358_v4  ;;  %v4480_v47 = vpop.f32.mrb[135].mxu0  ;;  %v5070_v54 = vmax.f32 %v4920_v12, 0.0  ;;  %v9374_v4 = vld [vmem:[#allocation62_spill] sm:$0xff] }
 0x601   : > { %5139 = vst [vmem:[%s8711_s16 + $0x168] sm:$0xff] %v4989_v31  ;;  %v4845_v18 = vmul.f32 %v4480_v47, %v9359_v57  ;;  %v5071_v28 = vmax.f32 %v4921_v41, 0.0  ;;  %v4347_v36 = vpop.f32.mrb[132].mxu1  ;;  %v9375_v57 = vld [vmem:[#allocation60_spill] sm:$0xff] }
 0x602   : > { %v4994_v0 = vmax.f32 %v4844_v1, 0.0  ;;  %5220 = vst [vmem:[%s8711_s16 + $0x3f0] sm:$0xff] %v5070_v54  ;;  %v4926_v5 = vmul.f32 %v4347_v36, %v9360_v43  ;;  %v4349_v53 = vpop.f32.mrb[133].mxu1  ;;  %v9376_v43 = vld [vmem:[#allocation59_spill] sm:$0xff] }
 0x603   : > { %v4995_v40 = vmax.f32 %v4845_v18, 0.0  ;;  %5221 = vst [vmem:[%s8711_s16 + $0x3f8] sm:$0xff] %v5071_v28  ;;  %v4484_v58 = vpop.f32.mrb[136].mxu0  ;;  %v4927_v49 = vmul.f32 %v4349_v53, %v9361_v11  ;;  %v9377_v11 = vld [vmem:[#allocation61_spill] sm:$0xff] }
 0x604   : > { %5144 = vst [vmem:[%s8711_s16 + $0x190] sm:$0xff] %v4994_v0  ;;  %v4850_v62 = vmul.f32 %v4484_v58, %v9362_v30  ;;  %v4486_v32 = vpop.f32.mrb[137].mxu0  ;;  %v5076_v59 = vmax.f32 %v4926_v5, 0.0  ;;  %v9378_v30 = vld [vmem:[#allocation63_spill] sm:$0xff] }
 0x605   : > { %5145 = vst [vmem:[%s8711_s16 + $0x198] sm:$0xff] %v4995_v40  ;;  %v4851_v27 = vmul.f32 %v4486_v32, %v9363_v46  ;;  %v5077_v19 = vmax.f32 %v4927_v49, 0.0  ;;  %v4353_v25 = vpop.f32.mrb[134].mxu1  ;;  %v9379_v46 = vld [vmem:[#allocation64_spill] sm:$0xff] }
 0x606   : > { %v5000_v42 = vmax.f32 %v4850_v62, 0.0  ;;  %5226 = vst [vmem:[%s8711_s16 + $0x420] sm:$0xff] %v5076_v59  ;;  %v4932_v37 = vmul.f32 %v4353_v25, %v9364_v9  ;;  %v4355_v44 = vpop.f32.mrb[135].mxu1  ;;  %v9380_v9 = vld [vmem:[#allocation66_spill] sm:$0xff] }
 0x607   : > { %v5001_v21 = vmax.f32 %v4851_v27, 0.0  ;;  %5227 = vst [vmem:[%s8711_s16 + $0x428] sm:$0xff] %v5077_v19  ;;  %v4490_v38 = vpop.f32.mrb[138].mxu0  ;;  %v4933_v20 = vmul.f32 %v4355_v44, %v9365_v14  ;;  %v9381_v14 = vld [vmem:[#allocation65_spill] sm:$0xff] }
 0x608   : > { %5150 = vst [vmem:[%s8711_s16 + $0x1c0] sm:$0xff] %v5000_v42  ;;  %v4856_v23 = vmul.f32 %v4490_v38, %v9366_v22  ;;  %v4492_v50 = vpop.f32.mrb[139].mxu0  ;;  %v5082_v45 = vmax.f32 %v4932_v37, 0.0  ;;  %v9382_v22 = vld [vmem:[#allocation70_spill] sm:$0xff] }
 0x609   : > { %5151 = vst [vmem:[%s8711_s16 + $0x1c8] sm:$0xff] %v5001_v21  ;;  %v4857_v63 = vmul.f32 %v4492_v50, %v9367_v15  ;;  %v5083_v52 = vmax.f32 %v4933_v20, 0.0  ;;  %v4359_v24 = vpop.f32.mrb[136].mxu1  ;;  %v9383_v15 = vld [vmem:[#allocation68_spill] sm:$0xff] }
 0x60a   : > { %v5006_v13 = vmax.f32 %v4856_v23, 0.0  ;;  %5232 = vst [vmem:[%s8711_s16 + $0x450] sm:$0xff] %v5082_v45  ;;  %v4938_v17 = vmul.f32 %v4359_v24, %v9368_v10  ;;  %v4361_v3 = vpop.f32.mrb[137].mxu1  ;;  %v9384_v10 = vld [vmem:[#allocation67_spill] sm:$0xff] }
 0x60b   : > { %v5007_v61 = vmax.f32 %v4857_v63, 0.0  ;;  %5233 = vst [vmem:[%s8711_s16 + $0x458] sm:$0xff] %v5083_v52  ;;  %v4496_v2 = vpop.f32.mrb[140].mxu0  ;;  %v4939_v33 = vmul.f32 %v4361_v3, %v9369_v56  ;;  %v9385_v56 = vld [vmem:[#allocation69_spill] sm:$0xff] }
 0x60c   : > { %5156 = vst [vmem:[%s8711_s16 + $0x1f0] sm:$0xff] %v5006_v13  ;;  %v4862_v48 = vmul.f32 %v4496_v2, %v9370_v60  ;;  %v4498_v51 = vpop.f32.mrb[141].mxu0  ;;  %v5088_v26 = vmax.f32 %v4938_v17, 0.0  ;;  %v9386_v60 = vld [vmem:[#allocation71_spill] sm:$0xff] }
 0x60d   : > { %5157 = vst [vmem:[%s8711_s16 + $0x1f8] sm:$0xff] %v5007_v61  ;;  %v4863_v16 = vmul.f32 %v4498_v51, %v9371_v39  ;;  %v5089_v35 = vmax.f32 %v4939_v33, 0.0  ;;  %v4645_v8 = vpop.f32.mrb[138].mxu1  ;;  %v9387_v39 = vld [vmem:[#allocation72_spill] sm:$0xff] }
 0x60e   : > { %v5012_v34 = vmax.f32 %v4862_v48, 0.0  ;;  %5238 = vst [vmem:[%s8711_s16 + $0x480] sm:$0xff] %v5088_v26  ;;  %v4798_v12 = vmul.f32 %v4645_v8, %v9372_v7  ;;  %v4647_v6 = vpop.f32.mrb[139].mxu1  ;;  %v9388_v7 = vld [vmem:[#allocation74_spill] sm:$0xff] }
 0x60f   : > { %v5013_v31 = vmax.f32 %v4863_v16, 0.0  ;;  %5239 = vst [vmem:[%s8711_s16 + $0x488] sm:$0xff] %v5089_v35  ;;  %v4502_v29 = vpop.f32.mrb[142].mxu0  ;;  %v4799_v41 = vmul.f32 %v4647_v6, %v9373_v55  ;;  %v9389_v55 = vld [vmem:[#allocation73_spill] sm:$0xff] }
 0x610   : > { %5162 = vst [vmem:[%s8711_s16 + $0x220] sm:$0xff] %v5012_v34  ;;  %v4868_v1 = vmul.f32 %v4502_v29, %v9374_v4  ;;  %v4504_v47 = vpop.f32.mrb[143].mxu0  ;;  %v4948_v54 = vmax.f32 %v4798_v12, 0.0  ;;  %v9390_v4 = vld [vmem:[#allocation78_spill] sm:$0xff] }
 0x611   : > { %5163 = vst [vmem:[%s8711_s16 + $0x228] sm:$0xff] %v5013_v31  ;;  %v4869_v18 = vmul.f32 %v4504_v47, %v9375_v57  ;;  %v4949_v28 = vmax.f32 %v4799_v41, 0.0  ;;  %v4651_v36 = vpop.f32.mrb[140].mxu1  ;;  %v9391_v57 = vld [vmem:[#allocation76_spill] sm:$0xff] }
 0x612   : > { %v5018_v0 = vmax.f32 %v4868_v1, 0.0  ;;  %5098 = vst [vmem:[%s8711_s16 + $0x20] sm:$0xff] %v4948_v54  ;;  %v4804_v5 = vmul.f32 %v4651_v36, %v9376_v43  ;;  %v4653_v53 = vpop.f32.mrb[141].mxu1  ;;  %v9392_v43 = vld [vmem:[#allocation75_spill] sm:$0xff] }
 0x613   : > { %v5019_v40 = vmax.f32 %v4869_v18, 0.0  ;;  %5099 = vst [vmem:[%s8711_s16 + $0x28] sm:$0xff] %v4949_v28  ;;  %v4508_v58 = vpop.f32.mrb[144].mxu0  ;;  %v4805_v49 = vmul.f32 %v4653_v53, %v9377_v11  ;;  %v9393_v11 = vld [vmem:[#allocation77_spill] sm:$0xff] }
 0x614   : > { %5168 = vst [vmem:[%s8711_s16 + $0x250] sm:$0xff] %v5018_v0  ;;  %v4874_v62 = vmul.f32 %v4508_v58, %v9378_v30  ;;  %v4510_v32 = vpop.f32.mrb[145].mxu0  ;;  %v4954_v59 = vmax.f32 %v4804_v5, 0.0  ;;  %v9394_v30 = vld [vmem:[#allocation79_spill] sm:$0xff] }
 0x615   : > { %5169 = vst [vmem:[%s8711_s16 + $0x258] sm:$0xff] %v5019_v40  ;;  %v4875_v27 = vmul.f32 %v4510_v32, %v9379_v46  ;;  %v4955_v19 = vmax.f32 %v4805_v49, 0.0  ;;  %v4657_v25 = vpop.f32.mrb[142].mxu1  ;;  %v9395_v46 = vld [vmem:[#allocation80_spill] sm:$0xff] }
 0x616   : > { %v5024_v42 = vmax.f32 %v4874_v62, 0.0  ;;  %5104 = vst [vmem:[%s8711_s16 + $0x50] sm:$0xff] %v4954_v59  ;;  %v4810_v37 = vmul.f32 %v4657_v25, %v9380_v9  ;;  %v4659_v44 = vpop.f32.mrb[143].mxu1  ;;  %v9396_v9 = vld [vmem:[#allocation82_spill] sm:$0xff] }
 0x617   : > { %v5025_v21 = vmax.f32 %v4875_v27, 0.0  ;;  %5105 = vst [vmem:[%s8711_s16 + $0x58] sm:$0xff] %v4955_v19  ;;  %v4514_v38 = vpop.f32.mrb[146].mxu0  ;;  %v4811_v20 = vmul.f32 %v4659_v44, %v9381_v14  ;;  %v9397_v14 = vld [vmem:[#allocation81_spill] sm:$0xff] }
 0x618   : > { %5174 = vst [vmem:[%s8711_s16 + $0x280] sm:$0xff] %v5024_v42  ;;  %v4880_v23 = vmul.f32 %v4514_v38, %v9382_v22  ;;  %v4516_v50 = vpop.f32.mrb[147].mxu0  ;;  %v4960_v45 = vmax.f32 %v4810_v37, 0.0  ;;  %v9398_v22 = vld [vmem:[#allocation86_spill] sm:$0xff] }
 0x619   : > { %5175 = vst [vmem:[%s8711_s16 + $0x288] sm:$0xff] %v5025_v21  ;;  %v4881_v63 = vmul.f32 %v4516_v50, %v9383_v15  ;;  %v4961_v52 = vmax.f32 %v4811_v20, 0.0  ;;  %v4663_v24 = vpop.f32.mrb[144].mxu1  ;;  %v9399_v15 = vld [vmem:[#allocation84_spill] sm:$0xff] }
 0x61a   : > { %v5030_v13 = vmax.f32 %v4880_v23, 0.0  ;;  %5110 = vst [vmem:[%s8711_s16 + $0x80] sm:$0xff] %v4960_v45  ;;  %v4816_v17 = vmul.f32 %v4663_v24, %v9384_v10  ;;  %v4665_v3 = vpop.f32.mrb[145].mxu1  ;;  %v9400_v10 = vld [vmem:[#allocation83_spill] sm:$0xff] }
 0x61b   : > { %v5031_v61 = vmax.f32 %v4881_v63, 0.0  ;;  %5111 = vst [vmem:[%s8711_s16 + $0x88] sm:$0xff] %v4961_v52  ;;  %v4520_v2 = vpop.f32.mrb[148].mxu0  ;;  %v4817_v33 = vmul.f32 %v4665_v3, %v9385_v56  ;;  %v9401_v56 = vld [vmem:[#allocation85_spill] sm:$0xff] }
 0x61c   : > { %5180 = vst [vmem:[%s8711_s16 + $0x2b0] sm:$0xff] %v5030_v13  ;;  %v4886_v48 = vmul.f32 %v4520_v2, %v9386_v60  ;;  %v4522_v51 = vpop.f32.mrb[149].mxu0  ;;  %v4966_v26 = vmax.f32 %v4816_v17, 0.0  ;;  %v9402_v60 = vld [vmem:[#allocation87_spill] sm:$0xff] }
 0x61d   : > { %5181 = vst [vmem:[%s8711_s16 + $0x2b8] sm:$0xff] %v5031_v61  ;;  %v4887_v16 = vmul.f32 %v4522_v51, %v9387_v39  ;;  %v4967_v35 = vmax.f32 %v4817_v33, 0.0  ;;  %v4669_v8 = vpop.f32.mrb[146].mxu1  ;;  %v9403_v39 = vld [vmem:[#allocation88_spill] sm:$0xff] }
 0x61e   : > { %v5036_v34 = vmax.f32 %v4886_v48, 0.0  ;;  %5116 = vst [vmem:[%s8711_s16 + $0xb0] sm:$0xff] %v4966_v26  ;;  %v4822_v12 = vmul.f32 %v4669_v8, %v9388_v7  ;;  %v4671_v6 = vpop.f32.mrb[147].mxu1  ;;  %v9404_v7 = vld [vmem:[#allocation90_spill] sm:$0xff] }
 0x61f   : > { %v5037_v31 = vmax.f32 %v4887_v16, 0.0  ;;  %5117 = vst [vmem:[%s8711_s16 + $0xb8] sm:$0xff] %v4967_v35  ;;  %v4526_v29 = vpop.f32.mrb[150].mxu0  ;;  %v4823_v41 = vmul.f32 %v4671_v6, %v9389_v55  ;;  %v9405_v55 = vld [vmem:[#allocation89_spill] sm:$0xff] }
 0x620   : > { %5186 = vst [vmem:[%s8711_s16 + $0x2e0] sm:$0xff] %v5036_v34  ;;  %v4892_v1 = vmul.f32 %v4526_v29, %v9390_v4  ;;  %v4528_v47 = vpop.f32.mrb[151].mxu0  ;;  %v4972_v54 = vmax.f32 %v4822_v12, 0.0  ;;  %v9406_v4 = vld [vmem:[#allocation94_spill] sm:$0xff] }
 0x621   : > { %5187 = vst [vmem:[%s8711_s16 + $0x2e8] sm:$0xff] %v5037_v31  ;;  %v4893_v18 = vmul.f32 %v4528_v47, %v9391_v57  ;;  %v4973_v28 = vmax.f32 %v4823_v41, 0.0  ;;  %v4675_v36 = vpop.f32.mrb[148].mxu1  ;;  %v9407_v57 = vld [vmem:[#allocation92_spill] sm:$0xff] }
 0x622   : > { %v5042_v0 = vmax.f32 %v4892_v1, 0.0  ;;  %5122 = vst [vmem:[%s8711_s16 + $0xe0] sm:$0xff] %v4972_v54  ;;  %v4828_v5 = vmul.f32 %v4675_v36, %v9392_v43  ;;  %v4677_v53 = vpop.f32.mrb[149].mxu1  ;;  %v9408_v43 = vld [vmem:[#allocation91_spill] sm:$0xff] }
 0x623   : > { %v5043_v40 = vmax.f32 %v4893_v18, 0.0  ;;  %5123 = vst [vmem:[%s8711_s16 + $0xe8] sm:$0xff] %v4973_v28  ;;  %v4532_v58 = vpop.f32.mrb[152].mxu0  ;;  %v4829_v49 = vmul.f32 %v4677_v53, %v9393_v11  ;;  %v9409_v11 = vld [vmem:[#allocation93_spill] sm:$0xff] }
 0x624   : > { %5192 = vst [vmem:[%s8711_s16 + $0x310] sm:$0xff] %v5042_v0  ;;  %v4898_v62 = vmul.f32 %v4532_v58, %v9394_v30  ;;  %v4534_v32 = vpop.f32.mrb[153].mxu0  ;;  %v4978_v59 = vmax.f32 %v4828_v5, 0.0  ;;  %v9410_v30 = vld [vmem:[#allocation95_spill] sm:$0xff] }
 0x625   : > { %5193 = vst [vmem:[%s8711_s16 + $0x318] sm:$0xff] %v5043_v40  ;;  %v4899_v27 = vmul.f32 %v4534_v32, %v9395_v46  ;;  %v4979_v19 = vmax.f32 %v4829_v49, 0.0  ;;  %v4681_v25 = vpop.f32.mrb[150].mxu1  ;;  %v9411_v46 = vld [vmem:[#allocation96_spill] sm:$0xff] }
 0x626   : > { %v5048_v42 = vmax.f32 %v4898_v62, 0.0  ;;  %5128 = vst [vmem:[%s8711_s16 + $0x110] sm:$0xff] %v4978_v59  ;;  %v4834_v37 = vmul.f32 %v4681_v25, %v9396_v9  ;;  %v4683_v44 = vpop.f32.mrb[151].mxu1  ;;  %v9412_v9 = vld [vmem:[#allocation98_spill] sm:$0xff] }
 0x627   : > { %v5049_v21 = vmax.f32 %v4899_v27, 0.0  ;;  %5129 = vst [vmem:[%s8711_s16 + $0x118] sm:$0xff] %v4979_v19  ;;  %v4538_v38 = vpop.f32.mrb[154].mxu0  ;;  %v4835_v20 = vmul.f32 %v4683_v44, %v9397_v14  ;;  %v9413_v14 = vld [vmem:[#allocation97_spill] sm:$0xff] }
 0x628   : > { %5198 = vst [vmem:[%s8711_s16 + $0x340] sm:$0xff] %v5048_v42  ;;  %v4904_v23 = vmul.f32 %v4538_v38, %v9398_v22  ;;  %v4540_v50 = vpop.f32.mrb[155].mxu0  ;;  %v4984_v45 = vmax.f32 %v4834_v37, 0.0  ;;  %v9414_v22 = vld [vmem:[#allocation102_spill] sm:$0xff] }
 0x629   : > { %5199 = vst [vmem:[%s8711_s16 + $0x348] sm:$0xff] %v5049_v21  ;;  %v4905_v63 = vmul.f32 %v4540_v50, %v9399_v15  ;;  %v4985_v52 = vmax.f32 %v4835_v20, 0.0  ;;  %v4687_v24 = vpop.f32.mrb[152].mxu1  ;;  %v9415_v15 = vld [vmem:[#allocation100_spill] sm:$0xff] }
 0x62a   : > { %v5054_v13 = vmax.f32 %v4904_v23, 0.0  ;;  %5134 = vst [vmem:[%s8711_s16 + $0x140] sm:$0xff] %v4984_v45  ;;  %v4840_v17 = vmul.f32 %v4687_v24, %v9400_v10  ;;  %v4689_v3 = vpop.f32.mrb[153].mxu1  ;;  %v9416_v10 = vld [vmem:[#allocation99_spill] sm:$0xff] }
 0x62b   : > { %v5055_v61 = vmax.f32 %v4905_v63, 0.0  ;;  %5135 = vst [vmem:[%s8711_s16 + $0x148] sm:$0xff] %v4985_v52  ;;  %v4544_v2 = vpop.f32.mrb[156].mxu0  ;;  %v4841_v33 = vmul.f32 %v4689_v3, %v9401_v56  ;;  %v9417_v56 = vld [vmem:[#allocation101_spill] sm:$0xff] }
 0x62c   : > { %5204 = vst [vmem:[%s8711_s16 + $0x370] sm:$0xff] %v5054_v13  ;;  %v4910_v48 = vmul.f32 %v4544_v2, %v9402_v60  ;;  %v4546_v51 = vpop.f32.mrb[157].mxu0  ;;  %v4990_v26 = vmax.f32 %v4840_v17, 0.0  ;;  %v9418_v60 = vld [vmem:[#allocation103_spill] sm:$0xff] }
 0x62d   : > { %5205 = vst [vmem:[%s8711_s16 + $0x378] sm:$0xff] %v5055_v61  ;;  %v4911_v16 = vmul.f32 %v4546_v51, %v9403_v39  ;;  %v4991_v35 = vmax.f32 %v4841_v33, 0.0  ;;  %v4693_v8 = vpop.f32.mrb[154].mxu1  ;;  %v9419_v39 = vld [vmem:[#allocation104_spill] sm:$0xff] }
 0x62e   : > { %v5060_v34 = vmax.f32 %v4910_v48, 0.0  ;;  %5140 = vst [vmem:[%s8711_s16 + $0x170] sm:$0xff] %v4990_v26  ;;  %v4846_v12 = vmul.f32 %v4693_v8, %v9404_v7  ;;  %v4695_v6 = vpop.f32.mrb[155].mxu1  ;;  %v9420_v7 = vld [vmem:[#allocation108_spill] sm:$0xff] }
 0x62f   : > { %v5061_v31 = vmax.f32 %v4911_v16, 0.0  ;;  %5141 = vst [vmem:[%s8711_s16 + $0x178] sm:$0xff] %v4991_v35  ;;  %v4550_v29 = vpop.f32.mrb[158].mxu0  ;;  %v4847_v41 = vmul.f32 %v4695_v6, %v9405_v55  ;;  %v9421_v55 = vld [vmem:[#allocation106_spill] sm:$0xff] }
 0x630   : > { %5210 = vst [vmem:[%s8711_s16 + $0x3a0] sm:$0xff] %v5060_v34  ;;  %v4916_v1 = vmul.f32 %v4550_v29, %v9406_v4  ;;  %v4552_v47 = vpop.f32.mrb[159].mxu0  ;;  %v4996_v54 = vmax.f32 %v4846_v12, 0.0  ;;  %v9422_v4 = vld [vmem:[#allocation107_spill] sm:$0xff] }
 0x631   : > { %5211 = vst [vmem:[%s8711_s16 + $0x3a8] sm:$0xff] %v5061_v31  ;;  %v4917_v18 = vmul.f32 %v4552_v47, %v9407_v57  ;;  %v4997_v28 = vmax.f32 %v4847_v41, 0.0  ;;  %v4699_v36 = vpop.f32.mrb[156].mxu1  ;;  %v9423_v57 = vld [vmem:[#allocation105_spill] sm:$0xff] }
 0x632   : > { %v5066_v0 = vmax.f32 %v4916_v1, 0.0  ;;  %5146 = vst [vmem:[%s8711_s16 + $0x1a0] sm:$0xff] %v4996_v54  ;;  %v4852_v5 = vmul.f32 %v4699_v36, %v9408_v43  ;;  %v4701_v53 = vpop.f32.mrb[157].mxu1  ;;  %v9424_v43 = vld [vmem:[#allocation109_spill] sm:$0xff] }
 0x633   : > { %v5067_v40 = vmax.f32 %v4917_v18, 0.0  ;;  %5147 = vst [vmem:[%s8711_s16 + $0x1a8] sm:$0xff] %v4997_v28  ;;  %v4556_v58 = vpop.f32.mrb[160].mxu0  ;;  %v4853_v49 = vmul.f32 %v4701_v53, %v9409_v11 }
 0x634   : > { %5216 = vst [vmem:[%s8711_s16 + $0x3d0] sm:$0xff] %v5066_v0  ;;  %v4922_v62 = vmul.f32 %v4556_v58, %v9410_v30  ;;  %v4558_v32 = vpop.f32.mrb[161].mxu0  ;;  %v5002_v59 = vmax.f32 %v4852_v5, 0.0  ;;  %v9425_v58 = vld [vmem:[#allocation110_spill] sm:$0xff] }
 0x635   : > { %5217 = vst [vmem:[%s8711_s16 + $0x3d8] sm:$0xff] %v5067_v40  ;;  %v4923_v27 = vmul.f32 %v4558_v32, %v9411_v46  ;;  %v5003_v19 = vmax.f32 %v4853_v49, 0.0  ;;  %v4705_v25 = vpop.f32.mrb[158].mxu1  ;;  %v9426_v32 = vld [vmem:[#allocation112_spill] sm:$0xff] }
 0x636   : > { %v5072_v42 = vmax.f32 %v4922_v62, 0.0  ;;  %5152 = vst [vmem:[%s8711_s16 + $0x1d0] sm:$0xff] %v5002_v59  ;;  %v4858_v37 = vmul.f32 %v4705_v25, %v9412_v9  ;;  %v4707_v44 = vpop.f32.mrb[159].mxu1 }
 0x637   : > { %v5073_v21 = vmax.f32 %v4923_v27, 0.0  ;;  %5153 = vst [vmem:[%s8711_s16 + $0x1d8] sm:$0xff] %v5003_v19  ;;  %v4562_v38 = vpop.f32.mrb[162].mxu0  ;;  %v4859_v20 = vmul.f32 %v4707_v44, %v9413_v14  ;;  %v9427_v27 = vld [vmem:[#allocation111_spill] sm:$0xff] }
 0x638   : > { %5222 = vst [vmem:[%s8711_s16 + $0x400] sm:$0xff] %v5072_v42  ;;  %v4928_v23 = vmul.f32 %v4562_v38, %v9414_v22  ;;  %v4564_v50 = vpop.f32.mrb[163].mxu0  ;;  %v5008_v45 = vmax.f32 %v4858_v37, 0.0  ;;  %v9428_v37 = vld [vmem:[#allocation113_spill] sm:$0xff]  ;;  %v9429_v38 = vld [vmem:[#allocation114_spill] sm:$0xff] }
 0x639   : > { %5223 = vst [vmem:[%s8711_s16 + $0x408] sm:$0xff] %v5073_v21  ;;  %v4929_v63 = vmul.f32 %v4564_v50, %v9415_v15  ;;  %v5009_v52 = vmax.f32 %v4859_v20, 0.0  ;;  %v4711_v24 = vpop.f32.mrb[160].mxu1  ;;  %v9430_v50 = vld [vmem:[#allocation116_spill] sm:$0xff] }
 0x63a   : > { %v5078_v13 = vmax.f32 %v4928_v23, 0.0  ;;  %5158 = vst [vmem:[%s8711_s16 + $0x200] sm:$0xff] %v5008_v45  ;;  %v4864_v17 = vmul.f32 %v4711_v24, %v9416_v10  ;;  %v4713_v3 = vpop.f32.mrb[161].mxu1 }
 0x63b   : > { %v5079_v61 = vmax.f32 %v4929_v63, 0.0  ;;  %5159 = vst [vmem:[%s8711_s16 + $0x208] sm:$0xff] %v5009_v52  ;;  %v4568_v2 = vpop.f32.mrb[164].mxu0  ;;  %v4865_v33 = vmul.f32 %v4713_v3, %v9417_v56  ;;  %v9431_v63 = vld [vmem:[#allocation115_spill] sm:$0xff] }
 0x63c   : > { %5228 = vst [vmem:[%s8711_s16 + $0x430] sm:$0xff] %v5078_v13  ;;  %v4934_v48 = vmul.f32 %v4568_v2, %v9418_v60  ;;  %v4570_v51 = vpop.f32.mrb[165].mxu0  ;;  %v5014_v26 = vmax.f32 %v4864_v17, 0.0  ;;  %v9432_v17 = vld [vmem:[#allocation117_spill] sm:$0xff]  ;;  %v9433_v2 = vld [vmem:[#allocation118_spill] sm:$0xff] }
 0x63d   : > { %5229 = vst [vmem:[%s8711_s16 + $0x438] sm:$0xff] %v5079_v61  ;;  %v4935_v16 = vmul.f32 %v4570_v51, %v9419_v39  ;;  %v5015_v35 = vmax.f32 %v4865_v33, 0.0  ;;  %v4717_v8 = vpop.f32.mrb[162].mxu1  ;;  %v9434_v51 = vld [vmem:[#allocation120_spill] sm:$0xff] }
 0x63e   : > { %v5084_v34 = vmax.f32 %v4934_v48, 0.0  ;;  %5164 = vst [vmem:[%s8711_s16 + $0x230] sm:$0xff] %v5014_v26  ;;  %v4870_v12 = vmul.f32 %v4717_v8, %v9420_v7  ;;  %v4719_v6 = vpop.f32.mrb[163].mxu1 }
 0x63f   : > { %v5085_v31 = vmax.f32 %v4935_v16, 0.0  ;;  %5165 = vst [vmem:[%s8711_s16 + $0x238] sm:$0xff] %v5015_v35  ;;  %v4574_v29 = vpop.f32.mrb[166].mxu0  ;;  %v4871_v41 = vmul.f32 %v4719_v6, %v9421_v55  ;;  %v9435_v16 = vld [vmem:[#allocation119_spill] sm:$0xff] }
 0x640   : > { %5234 = vst [vmem:[%s8711_s16 + $0x460] sm:$0xff] %v5084_v34  ;;  %v4940_v1 = vmul.f32 %v4574_v29, %v9422_v4  ;;  %v4576_v47 = vpop.f32.mrb[167].mxu0  ;;  %v5020_v54 = vmax.f32 %v4870_v12, 0.0  ;;  %v9436_v12 = vld [vmem:[#allocation121_spill] sm:$0xff]  ;;  %v9437_v29 = vld [vmem:[#allocation122_spill] sm:$0xff] }
 0x641   : > { %5235 = vst [vmem:[%s8711_s16 + $0x468] sm:$0xff] %v5085_v31  ;;  %v4941_v18 = vmul.f32 %v4576_v47, %v9423_v57  ;;  %v5021_v28 = vmax.f32 %v4871_v41, 0.0  ;;  %v4723_v36 = vpop.f32.mrb[164].mxu1  ;;  %v9438_v47 = vld [vmem:[#allocation124_spill] sm:$0xff] }
 0x642   : > { %v5090_v0 = vmax.f32 %v4940_v1, 0.0  ;;  %5170 = vst [vmem:[%s8711_s16 + $0x260] sm:$0xff] %v5020_v54  ;;  %v4876_v5 = vmul.f32 %v4723_v36, %v9424_v43  ;;  %v4725_v53 = vpop.f32.mrb[165].mxu1 }
 0x643   : > { %v5091_v40 = vmax.f32 %v4941_v18, 0.0  ;;  %5171 = vst [vmem:[%s8711_s16 + $0x268] sm:$0xff] %v5021_v28  ;;  %v4877_v11 = vmul.f32 %v4725_v53, %v9425_v58  ;;  %v9439_v18 = vld [vmem:[#allocation123_spill] sm:$0xff]  ;;  %v9441_v58 = vld [vmem:[#allocation126_spill] sm:$0xff] }
 0x644   : > { %5240 = vst [vmem:[%s8711_s16 + $0x490] sm:$0xff] %v5090_v0  ;;  %v5026_v49 = vmax.f32 %v4876_v5, 0.0  ;;  %v9440_v5 = vld [vmem:[#allocation125_spill] sm:$0xff] }
 0x645   : > { %5241 = vst [vmem:[%s8711_s16 + $0x498] sm:$0xff] %v5091_v40  ;;  %v5027_v30 = vmax.f32 %v4877_v11, 0.0  ;;  %v4729_v62 = vpop.f32.mrb[166].mxu1 }
 0x646   : > { %5176 = vst [vmem:[%s8711_s16 + $0x290] sm:$0xff] %v5026_v49  ;;  %v4882_v59 = vmul.f32 %v4729_v62, %v9426_v32  ;;  %v4731_v46 = vpop.f32.mrb[167].mxu1  ;;  %v9442_v32 = vld [vmem:[#allocation128_spill] sm:$0xff] }
 0x647   : > { %5177 = vst [vmem:[%s8711_s16 + $0x298] sm:$0xff] %v5027_v30  ;;  %v4883_v19 = vmul.f32 %v4731_v46, %v9427_v27  ;;  %v9443_v27 = vld [vmem:[#allocation127_spill] sm:$0xff] }
 0x648   : > { %v5032_v25 = vmax.f32 %v4882_v59, 0.0 }
 0x649   : > { %v5033_v42 = vmax.f32 %v4883_v19, 0.0  ;;  %v4735_v9 = vpop.f32.mrb[168].mxu1 }
 0x64a   : > { %5182 = vst [vmem:[%s8711_s16 + $0x2c0] sm:$0xff] %v5032_v25  ;;  %v4888_v44 = vmul.f32 %v4735_v9, %v9428_v37  ;;  %v4737_v21 = vpop.f32.mrb[169].mxu1  ;;  %v9444_v37 = vld [vmem:[#allocation129_spill] sm:$0xff] }
 0x64b   : > { %5183 = vst [vmem:[%s8711_s16 + $0x2c8] sm:$0xff] %v5033_v42  ;;  %v4889_v14 = vmul.f32 %v4737_v21, %v9429_v38  ;;  %v9445_v38 = vld [vmem:[#allocation130_spill] sm:$0xff] }
 0x64c   : > { %v5038_v20 = vmax.f32 %v4888_v44, 0.0 }
 0x64d   : > { %v5039_v22 = vmax.f32 %v4889_v14, 0.0  ;;  %v4741_v23 = vpop.f32.mrb[170].mxu1 }
 0x64e   : > { %5188 = vst [vmem:[%s8711_s16 + $0x2f0] sm:$0xff] %v5038_v20  ;;  %v4894_v45 = vmul.f32 %v4741_v23, %v9430_v50  ;;  %v4743_v15 = vpop.f32.mrb[171].mxu1  ;;  %v9446_v50 = vld [vmem:[#allocation132_spill] sm:$0xff] }
 0x64f   : > { %5189 = vst [vmem:[%s8711_s16 + $0x2f8] sm:$0xff] %v5039_v22  ;;  %v4895_v52 = vmul.f32 %v4743_v15, %v9431_v63  ;;  %v9447_v63 = vld [vmem:[#allocation131_spill] sm:$0xff] }
 0x650   : > { %v5044_v24 = vmax.f32 %v4894_v45, 0.0 }
 0x651   : > { %v5045_v13 = vmax.f32 %v4895_v52, 0.0  ;;  %v4747_v10 = vpop.f32.mrb[172].mxu1 }
 0x652   : > { %5194 = vst [vmem:[%s8711_s16 + $0x320] sm:$0xff] %v5044_v24  ;;  %v4900_v3 = vmul.f32 %v4747_v10, %v9432_v17  ;;  %v4749_v61 = vpop.f32.mrb[173].mxu1 }
 0x653   : > { %5195 = vst [vmem:[%s8711_s16 + $0x328] sm:$0xff] %v5045_v13  ;;  %v4901_v56 = vmul.f32 %v4749_v61, %v9433_v2 }
 0x654   : > { %v5050_v33 = vmax.f32 %v4900_v3, 0.0 }
 0x655   : > { %v5051_v60 = vmax.f32 %v4901_v56, 0.0  ;;  %v4753_v48 = vpop.f32.mrb[174].mxu1 }
 0x656   : > { %5200 = vst [vmem:[%s8711_s16 + $0x350] sm:$0xff] %v5050_v33  ;;  %v4906_v26 = vmul.f32 %v4753_v48, %v9434_v51  ;;  %v4755_v39 = vpop.f32.mrb[175].mxu1 }
 0x657   : > { %5201 = vst [vmem:[%s8711_s16 + $0x358] sm:$0xff] %v5051_v60  ;;  %v4907_v35 = vmul.f32 %v4755_v39, %v9435_v16 }
 0x658   : > { %v5056_v8 = vmax.f32 %v4906_v26, 0.0 }
 0x659   : > { %v5057_v34 = vmax.f32 %v4907_v35, 0.0  ;;  %v4759_v7 = vpop.f32.mrb[176].mxu1 }
 0x65a   : > { %5206 = vst [vmem:[%s8711_s16 + $0x380] sm:$0xff] %v5056_v8  ;;  %v4912_v6 = vmul.f32 %v4759_v7, %v9436_v12  ;;  %v4761_v31 = vpop.f32.mrb[177].mxu1 }
 0x65b   : > { %5207 = vst [vmem:[%s8711_s16 + $0x388] sm:$0xff] %v5057_v34  ;;  %v4913_v55 = vmul.f32 %v4761_v31, %v9437_v29 }
 0x65c   : > { %v5062_v41 = vmax.f32 %v4912_v6, 0.0 }
 0x65d   : > { %v5063_v4 = vmax.f32 %v4913_v55, 0.0  ;;  %v4765_v1 = vpop.f32.mrb[178].mxu1 }
 0x65e   : > { %5212 = vst [vmem:[%s8711_s16 + $0x3b0] sm:$0xff] %v5062_v41  ;;  %v4918_v54 = vmul.f32 %v4765_v1, %v9438_v47  ;;  %v4767_v57 = vpop.f32.mrb[179].mxu1 }
 0x65f   : > { %5213 = vst [vmem:[%s8711_s16 + $0x3b8] sm:$0xff] %v5063_v4  ;;  %v4919_v28 = vmul.f32 %v4767_v57, %v9439_v18 }
 0x660   : > { %v5068_v36 = vmax.f32 %v4918_v54, 0.0 }
 0x661   : > { %v5069_v0 = vmax.f32 %v4919_v28, 0.0  ;;  %v4771_v43 = vpop.f32.mrb[180].mxu1 }
 0x662   : > { %5218 = vst [vmem:[%s8711_s16 + $0x3e0] sm:$0xff] %v5068_v36  ;;  %v4924_v53 = vmul.f32 %v4771_v43, %v9440_v5  ;;  %v4773_v40 = vpop.f32.mrb[181].mxu1 }
 0x663   : > { %5219 = vst [vmem:[%s8711_s16 + $0x3e8] sm:$0xff] %v5069_v0  ;;  %v4925_v11 = vmul.f32 %v4773_v40, %v9441_v58 }
 0x664   : > { %v5074_v49 = vmax.f32 %v4924_v53, 0.0 }
 0x665   : > { %v5075_v30 = vmax.f32 %v4925_v11, 0.0  ;;  %v4777_v62 = vpop.f32.mrb[182].mxu1 }
 0x666   : > { %5224 = vst [vmem:[%s8711_s16 + $0x410] sm:$0xff] %v5074_v49  ;;  %v4930_v59 = vmul.f32 %v4777_v62, %v9442_v32  ;;  %v4779_v46 = vpop.f32.mrb[183].mxu1 }
 0x667   : > { %5225 = vst [vmem:[%s8711_s16 + $0x418] sm:$0xff] %v5075_v30  ;;  %v4931_v19 = vmul.f32 %v4779_v46, %v9443_v27 }
 0x668   : > { %v5080_v25 = vmax.f32 %v4930_v59, 0.0 }
 0x669   : > { %v5081_v42 = vmax.f32 %v4931_v19, 0.0  ;;  %v4783_v9 = vpop.f32.mrb[184].mxu1 }
 0x66a   : > { %5230 = vst [vmem:[%s8711_s16 + $0x440] sm:$0xff] %v5080_v25  ;;  %v4936_v44 = vmul.f32 %v4783_v9, %v9444_v37  ;;  %v4785_v21 = vpop.f32.mrb[185].mxu1 }
 0x66b   : > { %5231 = vst [vmem:[%s8711_s16 + $0x448] sm:$0xff] %v5081_v42  ;;  %v4937_v14 = vmul.f32 %v4785_v21, %v9445_v38 }
 0x66c   : > { %v5086_v20 = vmax.f32 %v4936_v44, 0.0 }
 0x66d   : > { %v5087_v22 = vmax.f32 %v4937_v14, 0.0  ;;  %v4789_v23 = vpop.f32.mrb[186].mxu1 }
 0x66e   : > { %5236 = vst [vmem:[%s8711_s16 + $0x470] sm:$0xff] %v5086_v20  ;;  %v4942_v45 = vmul.f32 %v4789_v23, %v9446_v50  ;;  %v4791_v15 = vpop.f32.mrb[187].mxu1 }
 0x66f   : > { %5237 = vst [vmem:[%s8711_s16 + $0x478] sm:$0xff] %v5087_v22  ;;  %v4943_v52 = vmul.f32 %v4791_v15, %v9447_v63 }
 0x670   : > { %v5092_v24 = vmax.f32 %v4942_v45, 0.0 }
 0x671   : > { %v5093_v13 = vmax.f32 %v4943_v52, 0.0 }
 0x672   : > { %5242 = vst [vmem:[%s8711_s16 + $0x4a0] sm:$0xff] %v5092_v24 }
 0x673   : > { %5243 = vst [vmem:[%s8711_s16 + $0x4a8] sm:$0xff] %v5093_v13 }
 0x674   : > { %6150 = shalt.err (!%p6147_p1)
}
 0x675   : > { %s6151_s1 = scalar_lea.hbm %s9014_s7, 19200  ;;  %s6155_s23 = scalar_lea.hbm %s9068_s5, 38400 }
 0x676   : > { %p6152_p0 = scmp.ne.s32.totalorder %s9014_s7, %s6151_s1  ;;  %p6156_p9 = scmp.lt.u32.totalorder %s9014_s7, %s9068_s5 }
 0x677   : > { %p6157_p12 = scmp.lt.u32.totalorder %s6155_s23, %s6151_s1  ;;  %p6159_p2 = scmp.lt.u32.totalorder %s6151_s1, %s9014_s7 }
 0x678   : > { %p6153_p6 = pnand %p6152_p0, %p9448_p3 }
 0x679   : > { %p6158_p10 = por %p6157_p12, %p6156_p9 }
 0x67a   : > { %p6154_p5 = pneg %p6153_p6 }
 0x67b   : > { %p6160_p4 = por %p6159_p2, %p6158_p10 }
 0x67d   : > { %p6161_p7 = pnand %p6160_p4, %p6154_p5 }
 0x67f   : > { %6164 = shalt.err (!%p6161_p7)
}
 0x680   : > { %s6227_s15 = smov 768   ;;  %s6228_s16 = smov 48  }
 0x681   : > { %5887 = dma.vmem_to_hbm [thread:$0]  (%p9448_p3), %s9016_s25, 19200, %s9014_s7, %s9022_s22, %s6227_s15, %s6227_s15, %s6228_s16  }
 0x682 PF: > { %p5915_p8 = scmp.ge.s32.totalorder %s6211_s21, 2  ;;  %s5274_s17 = sand.u32 1, %s6199_s18  }
 0x683   : > { %p9449_p11 = scmp.ne.s32.totalorder %s9196_s29, 0  ;;  %s5275_s26 = scalar_lea.sflag [#allocation4], %s5274_s17 }
 0x685   : > { %p5903_p13 = pnand %p5915_p8, %p9449_p11 }
 0x687   : > { %6194 = dma.done.wait (!%p5903_p13), %s5275_s26, 19200  }
 0x688   : > { %6196 = vsyncadd (!%p5903_p13), %s5275_s26, 4294948096  ;;  %p18_p1 = scmp.ge.s32.totalorder %s6284_s24, 4   ;;  %s9450_s18 = smov %s6203_s19 }
 0x689   : > { %s9451_s19 = smov %s6207_s20  ;;  %s9452_s20 = smov %s6295_s27 }
 0x68a   : > { %s9453_s21 = smov %s6284_s24  ;;  %20 = sbr.rel (!%p18_p1) target bundleno = 8 (0x8), region = 92 }
 0x691   :  { %5280 = vsyncpa [#allocation3], 1 }
 0x692   :  { %5282 = vsyncpa [#allocation3 + $0x1], 1 }
 0x693   :  { %5283 = vsyncpa [#allocation6], 1 }
 0x694   :  { %5284 = vsyncpa [#allocation9], 1 }
 0x695   :  { %5285 = vsyncpa [#allocation4], 1 }
 0x696   :  { %5287 = vsyncpa [#allocation4 + $0x1], 1 }

</bundles_post_ra>
